<compile_context>
chip_gen: v7x
topology: tpu7x:2x2x1
jax: 0.10.0
libtpu: 0.0.40
codegen_flags: <defaults>
</compile_context>

<pallas_src>
import functools
import math

import jax
import jax.numpy as jnp
from jax.experimental import pallas as pl
from jax.experimental.pallas import tpu as pltpu


_GELU_C = math.sqrt(2.0 / math.pi)

_ATTN_KEYS = ("ln_g", "ln_b", "wq", "bq", "wk", "bk", "wv", "bv", "wo", "bo")
_MLP_KEYS = ("ln_g", "ln_b", "w1", "b1", "w2", "b2")


def _gelu(x):
    # TODO(synk): PyTorch nn.GELU defaults to exact erf; tanh approximation used here.
    return 0.5 * x * (1.0 + jnp.tanh(_GELU_C * (x + 0.044715 * x * x * x)))


def _layernorm(x, g, b, eps):
    mu = jnp.mean(x, axis=-1, keepdims=True)
    var = jnp.mean(jnp.square(x - mu), axis=-1, keepdims=True)
    return (x - mu) * jax.lax.rsqrt(var + eps) * g + b


# --------------------------- in-kernel building blocks ---------------------------

def _mha(q_in, kv_bf, wq_ref, bq_ref, wk_ref, bk_ref, wv_ref, bv_ref,
         wo_ref, bo_ref, *, num_heads, scale, causal):
    """Multi-head attention on VMEM-resident tensors.

    q_in  : (Sq, E) f32  -- already layer-normed query input
    kv_bf : (Sk, E) bf16 -- key/value source
    Returns (Sq, E) f32 = OutProj(softmax(QK^T * scale) V) + bo.
    """
    E = q_in.shape[-1]
    Dh = E // num_heads

    # Three lane-aligned projections (no slicing of a merged QKV buffer).
    q = jnp.dot(q_in.astype(jnp.bfloat16), wq_ref[...],
                preferred_element_type=jnp.float32) + bq_ref[...]
    k = jnp.dot(kv_bf, wk_ref[...],
                preferred_element_type=jnp.float32) + bk_ref[...]
    v = jnp.dot(kv_bf, wv_ref[...],
                preferred_element_type=jnp.float32) + bv_ref[...]

    Sq, Sk = q.shape[0], k.shape[0]
    k_bf = k.astype(jnp.bfloat16)
    col = jax.lax.broadcasted_iota(jnp.int32, (1, E), 1)
    if causal:
        rows = jax.lax.broadcasted_iota(jnp.int32, (Sq, Sk), 0)
        cols = jax.lax.broadcasted_iota(jnp.int32, (Sq, Sk), 1)
        causal_mask = cols > rows

    # Head selection via lane-aligned column masks (VPU) instead of lane-offset
    # slices; each head's PV result occupies only its own columns, so summing the
    # contributions IS the head concatenation.
    att = jnp.zeros((Sq, E), jnp.float32)
    for h in range(num_heads):
        hm = ((col >= h * Dh) & (col < (h + 1) * Dh)).astype(jnp.float32)
        qh = (q * hm).astype(jnp.bfloat16)
        s = jax.lax.dot_general(qh, k_bf, (((1,), (1,)), ((), ())),
                                preferred_element_type=jnp.float32) * scale
        if causal:
            s = jnp.where(causal_mask, jnp.float32(-1e30), s)
        s = s - jnp.max(s, axis=-1, keepdims=True)
        p = jnp.exp(s)
        p = p * pl.reciprocal(jnp.sum(p, axis=-1, keepdims=True), approx=True)
        att = att + jnp.dot(p.astype(jnp.bfloat16), (v * hm).astype(jnp.bfloat16),
                            preferred_element_type=jnp.float32)

    # Single (Sq,E) x (E,E) output projection (no per-head matmul chain).
    return jnp.dot(att.astype(jnp.bfloat16), wo_ref[...],
                   preferred_element_type=jnp.float32) + bo_ref[...]


def _mlp(x_ln, w1_ref, b1_ref, w2_ref, b2_ref):
    h = jnp.dot(x_ln.astype(jnp.bfloat16), w1_ref[...],
                preferred_element_type=jnp.float32) + b1_ref[...]
    h = _gelu(h)
    return jnp.dot(h.astype(jnp.bfloat16), w2_ref[...],
                   preferred_element_type=jnp.float32) + b2_ref[...]


# ------------------------------ fused layer kernels ------------------------------

def _encoder_layer_kernel(x_ref, *refs, num_heads, eps, scale):
    a = refs[:10]          # attention params
    m = refs[10:16]        # mlp params
    o_ref = refs[16]

    x = x_ref[0].astype(jnp.float32)                    # (S, E) residual stream in f32
    ln = _layernorm(x, a[0][...], a[1][...], eps)
    x = x + _mha(ln, ln.astype(jnp.bfloat16), *a[2:],
                 num_heads=num_heads, scale=scale, causal=False)
    ln = _layernorm(x, m[0][...], m[1][...], eps)
    x = x + _mlp(ln, *m[2:])
    o_ref[0] = x.astype(o_ref.dtype)


def _decoder_layer_kernel(x_ref, mem_ref, *refs, num_heads, eps, scale):
    sa = refs[:10]         # self-attention params
    ml = refs[10:16]       # mlp params
    ca = refs[16:26]       # cross-attention params
    o_ref = refs[26]

    x = x_ref[0].astype(jnp.float32)                    # (S, E)
    mem_bf = mem_ref[0]                                 # (Sk, E) bf16
    # Reference TransformerDecoderBlock order: self-attn -> MLP -> cross-attn.
    ln = _layernorm(x, sa[0][...], sa[1][...], eps)
    x = x + _mha(ln, ln.astype(jnp.bfloat16), *sa[2:],
                 num_heads=num_heads, scale=scale, causal=True)
    ln = _layernorm(x, ml[0][...], ml[1][...], eps)
    x = x + _mlp(ln, *ml[2:])
    ln = _layernorm(x, ca[0][...], ca[1][...], eps)
    x = x + _mha(ln, mem_bf, *ca[2:],
                 num_heads=num_heads, scale=scale, causal=False)
    o_ref[0] = x.astype(o_ref.dtype)


def _const_specs(arrays):
    # Whole-array blocks replicated across the (1-D) grid.
    return [pl.BlockSpec(a.shape, lambda b, _n=a.ndim: (0,) * _n) for a in arrays]


def encoder_layer(x, p, num_heads, eps=1e-5):
    B, S, E = x.shape
    attn = [p["attn"][k] for k in _ATTN_KEYS]
    mlp = [p["mlp"][k] for k in _MLP_KEYS]
    kernel = functools.partial(_encoder_layer_kernel, num_heads=num_heads,
                               eps=eps, scale=1.0 / math.sqrt(E // num_heads))
    return pl.pallas_call(
        kernel,
        out_shape=jax.ShapeDtypeStruct((B, S, E), jnp.bfloat16),
        grid=(B,),
        in_specs=([pl.BlockSpec((1, S, E), lambda b: (b, 0, 0))]
                  + _const_specs(attn + mlp)),
        out_specs=pl.BlockSpec((1, S, E), lambda b: (b, 0, 0)),
        compiler_params=pltpu.CompilerParams(dimension_semantics=("parallel",)),
    )(x, *attn, *mlp)


def decoder_layer(x, memory, p, num_heads, eps=1e-5):
    B, S, E = x.shape
    Sk = memory.shape[1]
    sa = [p["self_attn"][k] for k in _ATTN_KEYS]
    ml = [p["mlp"][k] for k in _MLP_KEYS]
    ca = [p["cross_attn"][k] for k in _ATTN_KEYS]
    kernel = functools.partial(_decoder_layer_kernel, num_heads=num_heads,
                               eps=eps, scale=1.0 / math.sqrt(E // num_heads))
    return pl.pallas_call(
        kernel,
        out_shape=jax.ShapeDtypeStruct((B, S, E), jnp.bfloat16),
        grid=(B,),
        in_specs=([pl.BlockSpec((1, S, E), lambda b: (b, 0, 0)),
                   pl.BlockSpec((1, Sk, E), lambda b: (b, 0, 0))]
                  + _const_specs(sa + ml + ca)),
        out_specs=pl.BlockSpec((1, S, E), lambda b: (b, 0, 0)),
        compiler_params=pltpu.CompilerParams(dimension_semantics=("parallel",)),
    )(x, memory, *sa, *ml, *ca)


# --------------------------- row-tiled linear kernels ---------------------------

def _pick_row_block(M):
    half = M // 2
    return half if (M % 2 == 0 and half % 8 == 0) else M


def _linear_kernel(x_ref, w_ref, b_ref, o_ref):
    y = jnp.dot(x_ref[...].astype(jnp.bfloat16), w_ref[...],
                preferred_element_type=jnp.float32) + b_ref[...]
    o_ref[...] = y.astype(o_ref.dtype)


def linear_rows(x2d, w, b, out_dtype=jnp.bfloat16):
    """x2d: (M, K) @ w: (K, N) bf16 + b: (1, N) f32, row-tiled 2-way parallel grid."""
    M, K = x2d.shape
    N = w.shape[1]
    tm = _pick_row_block(M)
    return pl.pallas_call(
        _linear_kernel,
        out_shape=jax.ShapeDtypeStruct((M, N), out_dtype),
        grid=(M // tm,),
        in_specs=[pl.BlockSpec((tm, K), lambda i: (i, 0)),
                  pl.BlockSpec((K, N), lambda i: (0, 0)),
                  pl.BlockSpec((1, N), lambda i: (0, 0))],
        out_specs=pl.BlockSpec((tm, N), lambda i: (i, 0)),
        compiler_params=pltpu.CompilerParams(dimension_semantics=("parallel",)),
    )(x2d, w, b)


def _ln_linear_kernel(x_ref, g_ref, b_ref, w_ref, bias_ref, o_ref, *, eps):
    ln = _layernorm(x_ref[...].astype(jnp.float32), g_ref[...], b_ref[...], eps)
    y = jnp.dot(ln.astype(jnp.bfloat16), w_ref[...],
                preferred_element_type=jnp.float32) + bias_ref[...]
    o_ref[...] = y.astype(o_ref.dtype)


def ln_linear_rows(x2d, g, b, w, bias, eps=1e-5):
    """Fused LayerNorm + Linear; output last dim lane-dense (padded to 128)."""
    M, K = x2d.shape
    N = w.shape[1]
    tm = _pick_row_block(M)
    return pl.pallas_call(
        functools.partial(_ln_linear_kernel, eps=eps),
        out_shape=jax.ShapeDtypeStruct((M, N), jnp.float32),
        grid=(M // tm,),
        in_specs=[pl.BlockSpec((tm, K), lambda i: (i, 0)),
                  pl.BlockSpec((1, K), lambda i: (0, 0)),
                  pl.BlockSpec((1, K), lambda i: (0, 0)),
                  pl.BlockSpec((K, N), lambda i: (0, 0)),
                  pl.BlockSpec((1, N), lambda i: (0, 0))],
        out_specs=pl.BlockSpec((tm, N), lambda i: (i, 0)),
        compiler_params=pltpu.CompilerParams(dimension_semantics=("parallel",)),
    )(x2d, g, b, w, bias)


# ------------------------------ model forward ------------------------------

def patch_embed(images, p, patch_size):
    # TODO(synk): the unfold-style patch extraction stays XLA glue (reshape/transpose)
    # rather than being folded into the linear kernel's index_map.
    B, C, H, W = images.shape
    nph, npw = H // patch_size, W // patch_size
    patches = images.reshape(B, C, nph, patch_size, npw, patch_size)
    patches = patches.transpose(0, 1, 2, 4, 3, 5).reshape(
        B, C * nph * npw, patch_size * patch_size)
    Pn = patches.shape[1]
    emb = linear_rows(patches.reshape(B * Pn, patch_size * patch_size),
                      p["patch_w"], p["patch_b"])
    return emb.reshape(B, Pn, -1)                       # bf16


def vit_forward(images, p, num_heads, patch_size):
    pe = patch_embed(images, p, patch_size)
    B, _, E = pe.shape
    cls = jnp.broadcast_to(p["cls_token"], (B, 1, E)).astype(jnp.bfloat16)
    x = jnp.concatenate([cls, pe], axis=1) + p["pos_embed"].astype(jnp.bfloat16)
    for blk in p["blocks"]:
        x = encoder_layer(x, blk, num_heads)
    return x[:, 1:, :]          # memory (drop CLS); reference ViT applies no final LN


def ocr_forward(params, images, tgt_input, *, num_heads_enc, num_heads_dec,
                patch_size, vocab):
    memory = vit_forward(images, params["vit"], num_heads_enc, patch_size)
    x = params["token_embedding"][tgt_input].astype(jnp.bfloat16)   # embedding gather
    for blk in params["decoder_blocks"]:
        x = decoder_layer(x, memory, blk, num_heads_dec)
    B, S, E = x.shape
    logits = ln_linear_rows(x.reshape(B * S, E), params["head_ln_g"],
                            params["head_ln_b"], params["head_w"],
                            params["head_b"])
    return logits[:, :vocab].reshape(B, S, vocab)   # slice off lane padding


# ------------------------------ parameter init ------------------------------

def _dense(key, shape, scale=0.02):
    return scale * jax.random.normal(key, shape, jnp.float32)


def _init_attn(key, E):
    kq, kk, kv, ko = jax.random.split(key, 4)
    z = lambda: jnp.zeros((1, E), jnp.float32)
    return dict(
        ln_g=jnp.ones((1, E), jnp.float32), ln_b=z(),
        wq=_dense(kq, (E, E)).astype(jnp.bfloat16), bq=z(),
        wk=_dense(kk, (E, E)).astype(jnp.bfloat16), bk=z(),
        wv=_dense(kv, (E, E)).astype(jnp.bfloat16), bv=z(),
        wo=_dense(ko, (E, E)).astype(jnp.bfloat16), bo=z(),
    )


def _init_mlp(key, E, Hd):
    k1, k2 = jax.random.split(key)
    return dict(
        ln_g=jnp.ones((1, E), jnp.float32), ln_b=jnp.zeros((1, E), jnp.float32),
        w1=_dense(k1, (E, Hd)).astype(jnp.bfloat16),
        b1=jnp.zeros((1, Hd), jnp.float32),
        w2=_dense(k2, (Hd, E)).astype(jnp.bfloat16),
        b2=jnp.zeros((1, E), jnp.float32),
    )


def init_params(key, *, img_h, img_w, patch_size, E, depth, heads_enc,
                E_dec, depth_dec, heads_dec, vocab, vocab_pad,
                mlp_ratio=4.0, mlp_ratio_dec=4.0):
    keys = iter(jax.random.split(key, 256))
    nxt = lambda: next(keys)
    Hd_enc = int(E * mlp_ratio)
    Hd_dec = int(E_dec * mlp_ratio_dec)
    nph, npw = img_h // patch_size, img_w // patch_size
    n_patches = nph * npw

    vit = dict(
        patch_w=_dense(nxt(), (patch_size * patch_size, E)).astype(jnp.bfloat16),
        patch_b=jnp.zeros((1, E), jnp.float32),
        cls_token=jax.random.normal(nxt(), (1, 1, E), jnp.float32),
        pos_embed=jnp.zeros((1, 1 + n_patches, E), jnp.float32),
        blocks=[dict(attn=_init_attn(nxt(), E),
                     mlp=_init_mlp(nxt(), E, Hd_enc)) for _ in range(depth)],
    )

    dec_blocks = [dict(self_attn=_init_attn(nxt(), E_dec),
                       mlp=_init_mlp(nxt(), E_dec, Hd_dec),
                       cross_attn=_init_attn(nxt(), E_dec))
                  for _ in range(depth_dec)]

    # vocab head padded to 128 lanes for lane-dense stores; sliced after the kernel.
    head_w = jnp.zeros((E_dec, vocab_pad), jnp.float32)
    head_w = head_w.at[:, :vocab].set(_dense(nxt(), (E_dec, vocab)))

    return dict(
        vit=vit,
        token_embedding=_dense(nxt(), (vocab, E_dec), scale=1.0),
        decoder_blocks=dec_blocks,
        head_ln_g=jnp.ones((1, E_dec), jnp.float32),
        head_ln_b=jnp.zeros((1, E_dec), jnp.float32),
        head_w=head_w.astype(jnp.bfloat16),
        head_b=jnp.zeros((1, vocab_pad), jnp.float32),
    )


# ----------------------------------- main -----------------------------------

if __name__ == "__main__":
    B = 2
    IMG_H = IMG_W = 16
    PATCH = 4                      # 16 patches -> encoder seq = 17 (with CLS)
    E = 32                         # encoder/decoder embedding dim
    HEADS = 4
    DEPTH_ENC = 1
    DEPTH_DEC = 1
    VOCAB = 24
    VOCAB_PAD = 128                # lane-dense head output
    SEQ = 8

    root = jax.random.PRNGKey(0)
    k_param, k_img, k_tok = jax.random.split(root, 3)

    params = init_params(k_param, img_h=IMG_H, img_w=IMG_W, patch_size=PATCH,
                         E=E, depth=DEPTH_ENC, heads_enc=HEADS,
                         E_dec=E, depth_dec=DEPTH_DEC, heads_dec=HEADS,
                         vocab=VOCAB, vocab_pad=VOCAB_PAD)

    images = jax.random.normal(k_img, (B, 1, IMG_H, IMG_W), jnp.float32)   # NCHW
    tgt_input = jax.random.randint(k_tok, (B, SEQ), 0, VOCAB)

    fwd = jax.jit(functools.partial(ocr_forward,
                                    num_heads_enc=HEADS, num_heads_dec=HEADS,
                                    patch_size=PATCH, vocab=VOCAB))
    logits = jax.block_until_ready(fwd(params, images, tgt_input))

    assert logits.shape == (B, SEQ, VOCAB)
    assert bool(jnp.all(jnp.isfinite(logits)))
    print("KERNEL_OK")
</pallas_src>

<mosaic_0001>
module attributes {stable_mosaic.version = 11 : i64} {
  func.func @_linear_kernel(%arg0: i32, %arg1: memref<16x16xf32, #tpu.memory_space<vmem>>, %arg2: memref<16x32xbf16, #tpu.memory_space<vmem>>, %arg3: memref<1x32xf32, #tpu.memory_space<vmem>>, %arg4: memref<16x32xbf16, #tpu.memory_space<vmem>>) attributes {dimension_semantics = [#tpu.dimension_semantics<parallel>], iteration_bounds = array<i64: 2>, scalar_prefetch = 0 : i64, scratch_operands = 0 : i64, tpu.core_type = #tpu.core_type<tc>, window_params = [{transform_indices = @transform_0, window_bounds = array<i64: 16, 16>}, {pipeline_mode = #tpu.pipeline_mode<synchronous>, transform_indices = @transform_1, window_bounds = array<i64: 16, 32>}, {pipeline_mode = #tpu.pipeline_mode<synchronous>, transform_indices = @transform_2, window_bounds = array<i64: 1, 32>}, {transform_indices = @transform_3, window_bounds = array<i64: 16, 32>}]} {
    %c0 = arith.constant 0 : index
    %c0_0 = arith.constant 0 : index
    %0 = vector.load %arg1[%c0, %c0_0] : memref<16x16xf32, #tpu.memory_space<vmem>>, vector<16x16xf32>
    %1 = arith.truncf %0 : vector<16x16xf32> to vector<16x16xbf16>
    %c0_1 = arith.constant 0 : index
    %c0_2 = arith.constant 0 : index
    %2 = vector.load %arg2[%c0_1, %c0_2] : memref<16x32xbf16, #tpu.memory_space<vmem>>, vector<16x32xbf16>
    %cst = arith.constant dense<0.000000e+00> : vector<16x32xf32>
    %3 = tpu.matmul %1, %2, %cst {dimension_numbers = #tpu.dot_dimension_numbers<[1], [0], [0], [1], [0, 0, 1, 1], [], []>} : vector<16x16xbf16>, vector<16x32xbf16>, vector<16x32xf32> -> vector<16x32xf32>
    %c0_3 = arith.constant 0 : index
    %c0_4 = arith.constant 0 : index
    %4 = vector.load %arg3[%c0_3, %c0_4] : memref<1x32xf32, #tpu.memory_space<vmem>>, vector<1x32xf32>
    %5 = vector.broadcast %4 : vector<1x32xf32> to vector<16x32xf32>
    %6 = arith.addf %3, %5 : vector<16x32xf32>
    %7 = arith.truncf %6 : vector<16x32xf32> to vector<16x32xbf16>
    %c0_5 = arith.constant 0 : index
    %c0_6 = arith.constant 0 : index
    %8 = vector.load %arg4[%c0_5, %c0_6] : memref<16x32xbf16, #tpu.memory_space<vmem>>, vector<16x32xbf16>
    tpu.vector_store %arg4[%c0_5, %c0_6], %7 {strides = array<i32>} : memref<16x32xbf16, #tpu.memory_space<vmem>>, vector<16x32xbf16>,
    return
  }
  func.func @transform_0(%arg0: i32) -> (i32, i32) {
    %c0_i32 = arith.constant 0 : i32
    %c0_i32_0 = arith.constant 0 : i32
    return %arg0, %c0_i32 : i32, i32
  }
  func.func @transform_1(%arg0: i32) -> (i32, i32) {
    %c0_i32 = arith.constant 0 : i32
    %c0_i32_0 = arith.constant 0 : i32
    %c0_i32_1 = arith.constant 0 : i32
    return %c0_i32, %c0_i32_0 : i32, i32
  }
  func.func @transform_2(%arg0: i32) -> (i32, i32) {
    %c0_i32 = arith.constant 0 : i32
    %c0_i32_0 = arith.constant 0 : i32
    %c0_i32_1 = arith.constant 0 : i32
    return %c0_i32, %c0_i32_0 : i32, i32
  }
  func.func @transform_3(%arg0: i32) -> (i32, i32) {
    %c0_i32 = arith.constant 0 : i32
    %c0_i32_0 = arith.constant 0 : i32
    return %arg0, %c0_i32 : i32, i32
  }
}

module attributes {stable_mosaic.version = 11 : i64} {
  func.func @_encoder_layer_kernel(%arg0: i32, %arg1: memref<1x17x32xbf16, #tpu.memory_space<vmem>>, %arg2: memref<1x32xf32, #tpu.memory_space<vmem>>, %arg3: memref<1x32xf32, #tpu.memory_space<vmem>>, %arg4: memref<32x32xbf16, #tpu.memory_space<vmem>>, %arg5: memref<1x32xf32, #tpu.memory_space<vmem>>, %arg6: memref<32x32xbf16, #tpu.memory_space<vmem>>, %arg7: memref<1x32xf32, #tpu.memory_space<vmem>>, %arg8: memref<32x32xbf16, #tpu.memory_space<vmem>>, %arg9: memref<1x32xf32, #tpu.memory_space<vmem>>, %arg10: memref<32x32xbf16, #tpu.memory_space<vmem>>, %arg11: memref<1x32xf32, #tpu.memory_space<vmem>>, %arg12: memref<1x32xf32, #tpu.memory_space<vmem>>, %arg13: memref<1x32xf32, #tpu.memory_space<vmem>>, %arg14: memref<32x128xbf16, #tpu.memory_space<vmem>>, %arg15: memref<1x128xf32, #tpu.memory_space<vmem>>, %arg16: memref<128x32xbf16, #tpu.memory_space<vmem>>, %arg17: memref<1x32xf32, #tpu.memory_space<vmem>>, %arg18: memref<1x17x32xbf16, #tpu.memory_space<vmem>>) attributes {dimension_semantics = [#tpu.dimension_semantics<parallel>], iteration_bounds = array<i64: 2>, scalar_prefetch = 0 : i64, scratch_operands = 0 : i64, tpu.core_type = #tpu.core_type<tc>, window_params = [{transform_indices = @transform_0, window_bounds = array<i64: 1, 17, 32>}, {pipeline_mode = #tpu.pipeline_mode<synchronous>, transform_indices = @transform_1, window_bounds = array<i64: 1, 32>}, {pipeline_mode = #tpu.pipeline_mode<synchronous>, transform_indices = @transform_2, window_bounds = array<i64: 1, 32>}, {pipeline_mode = #tpu.pipeline_mode<synchronous>, transform_indices = @transform_3, window_bounds = array<i64: 32, 32>}, {pipeline_mode = #tpu.pipeline_mode<synchronous>, transform_indices = @transform_4, window_bounds = array<i64: 1, 32>}, {pipeline_mode = #tpu.pipeline_mode<synchronous>, transform_indices = @transform_5, window_bounds = array<i64: 32, 32>}, {pipeline_mode = #tpu.pipeline_mode<synchronous>, transform_indices = @transform_6, window_bounds = array<i64: 1, 32>}, {pipeline_mode = #tpu.pipeline_mode<synchronous>, transform_indices = @transform_7, window_bounds = array<i64: 32, 32>}, {pipeline_mode = #tpu.pipeline_mode<synchronous>, transform_indices = @transform_8, window_bounds = array<i64: 1, 32>}, {pipeline_mode = #tpu.pipeline_mode<synchronous>, transform_indices = @transform_9, window_bounds = array<i64: 32, 32>}, {pipeline_mode = #tpu.pipeline_mode<synchronous>, transform_indices = @transform_10, window_bounds = array<i64: 1, 32>}, {pipeline_mode = #tpu.pipeline_mode<synchronous>, transform_indices = @transform_11, window_bounds = array<i64: 1, 32>}, {pipeline_mode = #tpu.pipeline_mode<synchronous>, transform_indices = @transform_12, window_bounds = array<i64: 1, 32>}, {pipeline_mode = #tpu.pipeline_mode<synchronous>, transform_indices = @transform_13, window_bounds = array<i64: 32, 128>}, {pipeline_mode = #tpu.pipeline_mode<synchronous>, transform_indices = @transform_14, window_bounds = array<i64: 1, 128>}, {pipeline_mode = #tpu.pipeline_mode<synchronous>, transform_indices = @transform_15, window_bounds = array<i64: 128, 32>}, {pipeline_mode = #tpu.pipeline_mode<synchronous>, transform_indices = @transform_16, window_bounds = array<i64: 1, 32>}, {transform_indices = @transform_17, window_bounds = array<i64: 1, 17, 32>}]} {
    %c0 = arith.constant 0 : index
    %c0_0 = arith.constant 0 : index
    %c0_1 = arith.constant 0 : index
    %0 = vector.load %arg1[%c0, %c0_0, %c0_1] : memref<1x17x32xbf16, #tpu.memory_space<vmem>>, vector<1x17x32xbf16>
    %1 = vector.shape_cast %0 : vector<1x17x32xbf16> to vector<17x32xbf16>
    %2 = arith.extf %1 : vector<17x32xbf16> to vector<17x32xf32>
    %c0_2 = arith.constant 0 : index
    %c0_3 = arith.constant 0 : index
    %3 = vector.load %arg2[%c0_2, %c0_3] : memref<1x32xf32, #tpu.memory_space<vmem>>, vector<1x32xf32>
    %c0_4 = arith.constant 0 : index
    %c0_5 = arith.constant 0 : index
    %4 = vector.load %arg3[%c0_4, %c0_5] : memref<1x32xf32, #tpu.memory_space<vmem>>, vector<1x32xf32>
    %cst = arith.constant dense<0.000000e+00> : vector<17xf32>
    %5 = vector.multi_reduction <add>, %2, %cst [1] : vector<17x32xf32> to vector<17xf32>
    %6 = vector.shape_cast %5 : vector<17xf32> to vector<17x1xf32>
    %cst_6 = arith.constant 3.200000e+01 : f32
    %7 = vector.broadcast %cst_6 : f32 to vector<17x1xf32>
    %8 = arith.divf %6, %7 : vector<17x1xf32>
    %9 = vector.broadcast %8 : vector<17x1xf32> to vector<17x32xf32>
    %10 = arith.subf %2, %9 : vector<17x32xf32>
    %11 = arith.mulf %10, %10 : vector<17x32xf32>
    %cst_7 = arith.constant dense<0.000000e+00> : vector<17xf32>
    %12 = vector.multi_reduction <add>, %11, %cst_7 [1] : vector<17x32xf32> to vector<17xf32>
    %13 = vector.shape_cast %12 : vector<17xf32> to vector<17x1xf32>
    %cst_8 = arith.constant 3.200000e+01 : f32
    %14 = vector.broadcast %cst_8 : f32 to vector<17x1xf32>
    %15 = arith.divf %13, %14 : vector<17x1xf32>
    %16 = vector.broadcast %8 : vector<17x1xf32> to vector<17x32xf32>
    %17 = arith.subf %2, %16 : vector<17x32xf32>
    %cst_9 = arith.constant 9.99999974E-6 : f32
    %18 = vector.broadcast %cst_9 : f32 to vector<17x1xf32>
    %19 = arith.addf %15, %18 : vector<17x1xf32>
    %20 = math.rsqrt %19 : vector<17x1xf32>
    %21 = vector.broadcast %20 : vector<17x1xf32> to vector<17x32xf32>
    %22 = arith.mulf %17, %21 : vector<17x32xf32>
    %23 = vector.broadcast %3 : vector<1x32xf32> to vector<17x32xf32>
    %24 = arith.mulf %22, %23 : vector<17x32xf32>
    %25 = vector.broadcast %4 : vector<1x32xf32> to vector<17x32xf32>
    %26 = arith.addf %24, %25 : vector<17x32xf32>
    %27 = arith.truncf %26 : vector<17x32xf32> to vector<17x32xbf16>
    %28 = arith.truncf %26 : vector<17x32xf32> to vector<17x32xbf16>
    %c0_10 = arith.constant 0 : index
    %c0_11 = arith.constant 0 : index
    %29 = vector.load %arg4[%c0_10, %c0_11] : memref<32x32xbf16, #tpu.memory_space<vmem>>, vector<32x32xbf16>
    %cst_12 = arith.constant dense<0.000000e+00> : vector<17x32xf32>
    %30 = tpu.matmul %28, %29, %cst_12 {dimension_numbers = #tpu.dot_dimension_numbers<[1], [0], [0], [1], [0, 0, 1, 1], [], []>} : vector<17x32xbf16>, vector<32x32xbf16>, vector<17x32xf32> -> vector<17x32xf32>
    %c0_13 = arith.constant 0 : index
    %c0_14 = arith.constant 0 : index
    %31 = vector.load %arg5[%c0_13, %c0_14] : memref<1x32xf32, #tpu.memory_space<vmem>>, vector<1x32xf32>
    %32 = vector.broadcast %31 : vector<1x32xf32> to vector<17x32xf32>
    %33 = arith.addf %30, %32 : vector<17x32xf32>
    %c0_15 = arith.constant 0 : index
    %c0_16 = arith.constant 0 : index
    %34 = vector.load %arg6[%c0_15, %c0_16] : memref<32x32xbf16, #tpu.memory_space<vmem>>, vector<32x32xbf16>
    %cst_17 = arith.constant dense<0.000000e+00> : vector<17x32xf32>
    %35 = tpu.matmul %27, %34, %cst_17 {dimension_numbers = #tpu.dot_dimension_numbers<[1], [0], [0], [1], [0, 0, 1, 1], [], []>} : vector<17x32xbf16>, vector<32x32xbf16>, vector<17x32xf32> -> vector<17x32xf32>
    %c0_18 = arith.constant 0 : index
    %c0_19 = arith.constant 0 : index
    %36 = vector.load %arg7[%c0_18, %c0_19] : memref<1x32xf32, #tpu.memory_space<vmem>>, vector<1x32xf32>
    %37 = vector.broadcast %36 : vector<1x32xf32> to vector<17x32xf32>
    %38 = arith.addf %35, %37 : vector<17x32xf32>
    %c0_20 = arith.constant 0 : index
    %c0_21 = arith.constant 0 : index
    %39 = vector.load %arg8[%c0_20, %c0_21] : memref<32x32xbf16, #tpu.memory_space<vmem>>, vector<32x32xbf16>
    %cst_22 = arith.constant dense<0.000000e+00> : vector<17x32xf32>
    %40 = tpu.matmul %27, %39, %cst_22 {dimension_numbers = #tpu.dot_dimension_numbers<[1], [0], [0], [1], [0, 0, 1, 1], [], []>} : vector<17x32xbf16>, vector<32x32xbf16>, vector<17x32xf32> -> vector<17x32xf32>
    %c0_23 = arith.constant 0 : index
    %c0_24 = arith.constant 0 : index
    %41 = vector.load %arg9[%c0_23, %c0_24] : memref<1x32xf32, #tpu.memory_space<vmem>>, vector<1x32xf32>
    %42 = vector.broadcast %41 : vector<1x32xf32> to vector<17x32xf32>
    %43 = arith.addf %40, %42 : vector<17x32xf32>
    %44 = arith.truncf %38 : vector<17x32xf32> to vector<17x32xbf16>
    %45 = tpu.iota {dimensions = array<i32: 1>} : vector<1x32xi32>
    %cst_25 = arith.constant 0.000000e+00 : f32
    %46 = vector.broadcast %cst_25 : f32 to vector<17x32xf32>
    %c0_i32 = arith.constant 0 : i32
    %47 = vector.broadcast %c0_i32 : i32 to vector<1x32xi32>
    %48 = arith.cmpi sge, %45, %47 : vector<1x32xi32>
    %c8_i32 = arith.constant 8 : i32
    %49 = vector.broadcast %c8_i32 : i32 to vector<1x32xi32>
    %50 = arith.cmpi slt, %45, %49 : vector<1x32xi32>
    %51 = arith.andi %48, %50 : vector<1x32xi1>
    %52 = arith.extui %51 : vector<1x32xi1> to vector<1x32xi32>
    %53 = arith.sitofp %52 : vector<1x32xi32> to vector<1x32xf32>
    %54 = vector.broadcast %53 : vector<1x32xf32> to vector<17x32xf32>
    %55 = arith.mulf %33, %54 : vector<17x32xf32>
    %56 = arith.truncf %55 : vector<17x32xf32> to vector<17x32xbf16>
    %cst_26 = arith.constant dense<0.000000e+00> : vector<17x17xf32>
    %57 = tpu.matmul %56, %44, %cst_26 {dimension_numbers = #tpu.dot_dimension_numbers<[1], [1], [0], [0], [0, 0, 1, 0], [], []>} : vector<17x32xbf16>, vector<17x32xbf16>, vector<17x17xf32> -> vector<17x17xf32>
    %cst_27 = arith.constant 0.353553385 : f32
    %58 = vector.broadcast %cst_27 : f32 to vector<17x17xf32>
    %59 = arith.mulf %57, %58 : vector<17x17xf32>
    %cst_28 = arith.constant dense<0xFF800000> : vector<17xf32>
    %60 = vector.multi_reduction <maximumf>, %59, %cst_28 [1] : vector<17x17xf32> to vector<17xf32>
    %61 = vector.shape_cast %60 : vector<17xf32> to vector<17x1xf32>
    %62 = vector.broadcast %61 : vector<17x1xf32> to vector<17x17xf32>
    %63 = arith.subf %59, %62 : vector<17x17xf32>
    %64 = math.exp %63 : vector<17x17xf32>
    %cst_29 = arith.constant dense<0.000000e+00> : vector<17xf32>
    %65 = vector.multi_reduction <add>, %64, %cst_29 [1] : vector<17x17xf32> to vector<17xf32>
    %66 = vector.shape_cast %65 : vector<17xf32> to vector<17x1xf32>
    %67 = tpu.reciprocal %66 {approx = true} : vector<17x1xf32> -> vector<17x1xf32>
    %68 = vector.broadcast %67 : vector<17x1xf32> to vector<17x17xf32>
    %69 = arith.mulf %64, %68 : vector<17x17xf32>
    %70 = arith.truncf %69 : vector<17x17xf32> to vector<17x17xbf16>
    %71 = vector.broadcast %53 : vector<1x32xf32> to vector<17x32xf32>
    %72 = arith.mulf %43, %71 : vector<17x32xf32>
    %73 = arith.truncf %72 : vector<17x32xf32> to vector<17x32xbf16>
    %cst_30 = arith.constant dense<0.000000e+00> : vector<17x32xf32>
    %74 = tpu.matmul %70, %73, %cst_30 {dimension_numbers = #tpu.dot_dimension_numbers<[1], [0], [0], [1], [0, 0, 1, 1], [], []>} : vector<17x17xbf16>, vector<17x32xbf16>, vector<17x32xf32> -> vector<17x32xf32>
    %75 = arith.addf %46, %74 : vector<17x32xf32>
    %c8_i32_31 = arith.constant 8 : i32
    %76 = vector.broadcast %c8_i32_31 : i32 to vector<1x32xi32>
    %77 = arith.cmpi sge, %45, %76 : vector<1x32xi32>
    %c16_i32 = arith.constant 16 : i32
    %78 = vector.broadcast %c16_i32 : i32 to vector<1x32xi32>
    %79 = arith.cmpi slt, %45, %78 : vector<1x32xi32>
    %80 = arith.andi %77, %79 : vector<1x32xi1>
    %81 = arith.extui %80 : vector<1x32xi1> to vector<1x32xi32>
    %82 = arith.sitofp %81 : vector<1x32xi32> to vector<1x32xf32>
    %83 = vector.broadcast %82 : vector<1x32xf32> to vector<17x32xf32>
    %84 = arith.mulf %33, %83 : vector<17x32xf32>
    %85 = arith.truncf %84 : vector<17x32xf32> to vector<17x32xbf16>
    %cst_32 = arith.constant dense<0.000000e+00> : vector<17x17xf32>
    %86 = tpu.matmul %85, %44, %cst_32 {dimension_numbers = #tpu.dot_dimension_numbers<[1], [1], [0], [0], [0, 0, 1, 0], [], []>} : vector<17x32xbf16>, vector<17x32xbf16>, vector<17x17xf32> -> vector<17x17xf32>
    %cst_33 = arith.constant 0.353553385 : f32
    %87 = vector.broadcast %cst_33 : f32 to vector<17x17xf32>
    %88 = arith.mulf %86, %87 : vector<17x17xf32>
    %cst_34 = arith.constant dense<0xFF800000> : vector<17xf32>
    %89 = vector.multi_reduction <maximumf>, %88, %cst_34 [1] : vector<17x17xf32> to vector<17xf32>
    %90 = vector.shape_cast %89 : vector<17xf32> to vector<17x1xf32>
    %91 = vector.broadcast %90 : vector<17x1xf32> to vector<17x17xf32>
    %92 = arith.subf %88, %91 : vector<17x17xf32>
    %93 = math.exp %92 : vector<17x17xf32>
    %cst_35 = arith.constant dense<0.000000e+00> : vector<17xf32>
    %94 = vector.multi_reduction <add>, %93, %cst_35 [1] : vector<17x17xf32> to vector<17xf32>
    %95 = vector.shape_cast %94 : vector<17xf32> to vector<17x1xf32>
    %96 = tpu.reciprocal %95 {approx = true} : vector<17x1xf32> -> vector<17x1xf32>
    %97 = vector.broadcast %96 : vector<17x1xf32> to vector<17x17xf32>
    %98 = arith.mulf %93, %97 : vector<17x17xf32>
    %99 = arith.truncf %98 : vector<17x17xf32> to vector<17x17xbf16>
    %100 = vector.broadcast %82 : vector<1x32xf32> to vector<17x32xf32>
    %101 = arith.mulf %43, %100 : vector<17x32xf32>
    %102 = arith.truncf %101 : vector<17x32xf32> to vector<17x32xbf16>
    %cst_36 = arith.constant dense<0.000000e+00> : vector<17x32xf32>
    %103 = tpu.matmul %99, %102, %cst_36 {dimension_numbers = #tpu.dot_dimension_numbers<[1], [0], [0], [1], [0, 0, 1, 1], [], []>} : vector<17x17xbf16>, vector<17x32xbf16>, vector<17x32xf32> -> vector<17x32xf32>
    %104 = arith.addf %75, %103 : vector<17x32xf32>
    %c16_i32_37 = arith.constant 16 : i32
    %105 = vector.broadcast %c16_i32_37 : i32 to vector<1x32xi32>
    %106 = arith.cmpi sge, %45, %105 : vector<1x32xi32>
    %c24_i32 = arith.constant 24 : i32
    %107 = vector.broadcast %c24_i32 : i32 to vector<1x32xi32>
    %108 = arith.cmpi slt, %45, %107 : vector<1x32xi32>
    %109 = arith.andi %106, %108 : vector<1x32xi1>
    %110 = arith.extui %109 : vector<1x32xi1> to vector<1x32xi32>
    %111 = arith.sitofp %110 : vector<1x32xi32> to vector<1x32xf32>
    %112 = vector.broadcast %111 : vector<1x32xf32> to vector<17x32xf32>
    %113 = arith.mulf %33, %112 : vector<17x32xf32>
    %114 = arith.truncf %113 : vector<17x32xf32> to vector<17x32xbf16>
    %cst_38 = arith.constant dense<0.000000e+00> : vector<17x17xf32>
    %115 = tpu.matmul %114, %44, %cst_38 {dimension_numbers = #tpu.dot_dimension_numbers<[1], [1], [0], [0], [0, 0, 1, 0], [], []>} : vector<17x32xbf16>, vector<17x32xbf16>, vector<17x17xf32> -> vector<17x17xf32>
    %cst_39 = arith.constant 0.353553385 : f32
    %116 = vector.broadcast %cst_39 : f32 to vector<17x17xf32>
    %117 = arith.mulf %115, %116 : vector<17x17xf32>
    %cst_40 = arith.constant dense<0xFF800000> : vector<17xf32>
    %118 = vector.multi_reduction <maximumf>, %117, %cst_40 [1] : vector<17x17xf32> to vector<17xf32>
    %119 = vector.shape_cast %118 : vector<17xf32> to vector<17x1xf32>
    %120 = vector.broadcast %119 : vector<17x1xf32> to vector<17x17xf32>
    %121 = arith.subf %117, %120 : vector<17x17xf32>
    %122 = math.exp %121 : vector<17x17xf32>
    %cst_41 = arith.constant dense<0.000000e+00> : vector<17xf32>
    %123 = vector.multi_reduction <add>, %122, %cst_41 [1] : vector<17x17xf32> to vector<17xf32>
    %124 = vector.shape_cast %123 : vector<17xf32> to vector<17x1xf32>
    %125 = tpu.reciprocal %124 {approx = true} : vector<17x1xf32> -> vector<17x1xf32>
    %126 = vector.broadcast %125 : vector<17x1xf32> to vector<17x17xf32>
    %127 = arith.mulf %122, %126 : vector<17x17xf32>
    %128 = arith.truncf %127 : vector<17x17xf32> to vector<17x17xbf16>
    %129 = vector.broadcast %111 : vector<1x32xf32> to vector<17x32xf32>
    %130 = arith.mulf %43, %129 : vector<17x32xf32>
    %131 = arith.truncf %130 : vector<17x32xf32> to vector<17x32xbf16>
    %cst_42 = arith.constant dense<0.000000e+00> : vector<17x32xf32>
    %132 = tpu.matmul %128, %131, %cst_42 {dimension_numbers = #tpu.dot_dimension_numbers<[1], [0], [0], [1], [0, 0, 1, 1], [], []>} : vector<17x17xbf16>, vector<17x32xbf16>, vector<17x32xf32> -> vector<17x32xf32>
    %133 = arith.addf %104, %132 : vector<17x32xf32>
    %c24_i32_43 = arith.constant 24 : i32
    %134 = vector.broadcast %c24_i32_43 : i32 to vector<1x32xi32>
    %135 = arith.cmpi sge, %45, %134 : vector<1x32xi32>
    %c32_i32 = arith.constant 32 : i32
    %136 = vector.broadcast %c32_i32 : i32 to vector<1x32xi32>
    %137 = arith.cmpi slt, %45, %136 : vector<1x32xi32>
    %138 = arith.andi %135, %137 : vector<1x32xi1>
    %139 = arith.extui %138 : vector<1x32xi1> to vector<1x32xi32>
    %140 = arith.sitofp %139 : vector<1x32xi32> to vector<1x32xf32>
    %141 = vector.broadcast %140 : vector<1x32xf32> to vector<17x32xf32>
    %142 = arith.mulf %33, %141 : vector<17x32xf32>
    %143 = arith.truncf %142 : vector<17x32xf32> to vector<17x32xbf16>
    %cst_44 = arith.constant dense<0.000000e+00> : vector<17x17xf32>
    %144 = tpu.matmul %143, %44, %cst_44 {dimension_numbers = #tpu.dot_dimension_numbers<[1], [1], [0], [0], [0, 0, 1, 0], [], []>} : vector<17x32xbf16>, vector<17x32xbf16>, vector<17x17xf32> -> vector<17x17xf32>
    %cst_45 = arith.constant 0.353553385 : f32
    %145 = vector.broadcast %cst_45 : f32 to vector<17x17xf32>
    %146 = arith.mulf %144, %145 : vector<17x17xf32>
    %cst_46 = arith.constant dense<0xFF800000> : vector<17xf32>
    %147 = vector.multi_reduction <maximumf>, %146, %cst_46 [1] : vector<17x17xf32> to vector<17xf32>
    %148 = vector.shape_cast %147 : vector<17xf32> to vector<17x1xf32>
    %149 = vector.broadcast %148 : vector<17x1xf32> to vector<17x17xf32>
    %150 = arith.subf %146, %149 : vector<17x17xf32>
    %151 = math.exp %150 : vector<17x17xf32>
    %cst_47 = arith.constant dense<0.000000e+00> : vector<17xf32>
    %152 = vector.multi_reduction <add>, %151, %cst_47 [1] : vector<17x17xf32> to vector<17xf32>
    %153 = vector.shape_cast %152 : vector<17xf32> to vector<17x1xf32>
    %154 = tpu.reciprocal %153 {approx = true} : vector<17x1xf32> -> vector<17x1xf32>
    %155 = vector.broadcast %154 : vector<17x1xf32> to vector<17x17xf32>
    %156 = arith.mulf %151, %155 : vector<17x17xf32>
    %157 = arith.truncf %156 : vector<17x17xf32> to vector<17x17xbf16>
    %158 = vector.broadcast %140 : vector<1x32xf32> to vector<17x32xf32>
    %159 = arith.mulf %43, %158 : vector<17x32xf32>
    %160 = arith.truncf %159 : vector<17x32xf32> to vector<17x32xbf16>
    %cst_48 = arith.constant dense<0.000000e+00> : vector<17x32xf32>
    %161 = tpu.matmul %157, %160, %cst_48 {dimension_numbers = #tpu.dot_dimension_numbers<[1], [0], [0], [1], [0, 0, 1, 1], [], []>} : vector<17x17xbf16>, vector<17x32xbf16>, vector<17x32xf32> -> vector<17x32xf32>
    %162 = arith.addf %133, %161 : vector<17x32xf32>
    %163 = arith.truncf %162 : vector<17x32xf32> to vector<17x32xbf16>
    %c0_49 = arith.constant 0 : index
    %c0_50 = arith.constant 0 : index
    %164 = vector.load %arg10[%c0_49, %c0_50] : memref<32x32xbf16, #tpu.memory_space<vmem>>, vector<32x32xbf16>
    %cst_51 = arith.constant dense<0.000000e+00> : vector<17x32xf32>
    %165 = tpu.matmul %163, %164, %cst_51 {dimension_numbers = #tpu.dot_dimension_numbers<[1], [0], [0], [1], [0, 0, 1, 1], [], []>} : vector<17x32xbf16>, vector<32x32xbf16>, vector<17x32xf32> -> vector<17x32xf32>
    %c0_52 = arith.constant 0 : index
    %c0_53 = arith.constant 0 : index
    %166 = vector.load %arg11[%c0_52, %c0_53] : memref<1x32xf32, #tpu.memory_space<vmem>>, vector<1x32xf32>
    %167 = vector.broadcast %166 : vector<1x32xf32> to vector<17x32xf32>
    %168 = arith.addf %165, %167 : vector<17x32xf32>
    %169 = arith.addf %2, %168 : vector<17x32xf32>
    %c0_54 = arith.constant 0 : index
    %c0_55 = arith.constant 0 : index
    %170 = vector.load %arg12[%c0_54, %c0_55] : memref<1x32xf32, #tpu.memory_space<vmem>>, vector<1x32xf32>
    %c0_56 = arith.constant 0 : index
    %c0_57 = arith.constant 0 : index
    %171 = vector.load %arg13[%c0_56, %c0_57] : memref<1x32xf32, #tpu.memory_space<vmem>>, vector<1x32xf32>
    %cst_58 = arith.constant dense<0.000000e+00> : vector<17xf32>
    %172 = vector.multi_reduction <add>, %169, %cst_58 [1] : vector<17x32xf32> to vector<17xf32>
    %173 = vector.shape_cast %172 : vector<17xf32> to vector<17x1xf32>
    %cst_59 = arith.constant 3.200000e+01 : f32
    %174 = vector.broadcast %cst_59 : f32 to vector<17x1xf32>
    %175 = arith.divf %173, %174 : vector<17x1xf32>
    %176 = vector.broadcast %175 : vector<17x1xf32> to vector<17x32xf32>
    %177 = arith.subf %169, %176 : vector<17x32xf32>
    %178 = arith.mulf %177, %177 : vector<17x32xf32>
    %cst_60 = arith.constant dense<0.000000e+00> : vector<17xf32>
    %179 = vector.multi_reduction <add>, %178, %cst_60 [1] : vector<17x32xf32> to vector<17xf32>
    %180 = vector.shape_cast %179 : vector<17xf32> to vector<17x1xf32>
    %cst_61 = arith.constant 3.200000e+01 : f32
    %181 = vector.broadcast %cst_61 : f32 to vector<17x1xf32>
    %182 = arith.divf %180, %181 : vector<17x1xf32>
    %183 = vector.broadcast %175 : vector<17x1xf32> to vector<17x32xf32>
    %184 = arith.subf %169, %183 : vector<17x32xf32>
    %cst_62 = arith.constant 9.99999974E-6 : f32
    %185 = vector.broadcast %cst_62 : f32 to vector<17x1xf32>
    %186 = arith.addf %182, %185 : vector<17x1xf32>
    %187 = math.rsqrt %186 : vector<17x1xf32>
    %188 = vector.broadcast %187 : vector<17x1xf32> to vector<17x32xf32>
    %189 = arith.mulf %184, %188 : vector<17x32xf32>
    %190 = vector.broadcast %170 : vector<1x32xf32> to vector<17x32xf32>
    %191 = arith.mulf %189, %190 : vector<17x32xf32>
    %192 = vector.broadcast %171 : vector<1x32xf32> to vector<17x32xf32>
    %193 = arith.addf %191, %192 : vector<17x32xf32>
    %194 = arith.truncf %193 : vector<17x32xf32> to vector<17x32xbf16>
    %c0_63 = arith.constant 0 : index
    %c0_64 = arith.constant 0 : index
    %195 = vector.load %arg14[%c0_63, %c0_64] : memref<32x128xbf16, #tpu.memory_space<vmem>>, vector<32x128xbf16>
    %cst_65 = arith.constant dense<0.000000e+00> : vector<17x128xf32>
    %196 = tpu.matmul %194, %195, %cst_65 {dimension_numbers = #tpu.dot_dimension_numbers<[1], [0], [0], [1], [0, 0, 1, 1], [], []>} : vector<17x32xbf16>, vector<32x128xbf16>, vector<17x128xf32> -> vector<17x128xf32>
    %c0_66 = arith.constant 0 : index
    %c0_67 = arith.constant 0 : index
    %197 = vector.load %arg15[%c0_66, %c0_67] : memref<1x128xf32, #tpu.memory_space<vmem>>, vector<1x128xf32>
    %198 = vector.broadcast %197 : vector<1x128xf32> to vector<17x128xf32>
    %199 = arith.addf %196, %198 : vector<17x128xf32>
    %cst_68 = arith.constant 5.000000e-01 : f32
    %200 = vector.broadcast %cst_68 : f32 to vector<17x128xf32>
    %201 = arith.mulf %200, %199 : vector<17x128xf32>
    %cst_69 = arith.constant 4.471500e-02 : f32
    %202 = vector.broadcast %cst_69 : f32 to vector<17x128xf32>
    %203 = arith.mulf %202, %199 : vector<17x128xf32>
    %204 = arith.mulf %203, %199 : vector<17x128xf32>
    %205 = arith.mulf %204, %199 : vector<17x128xf32>
    %206 = arith.addf %199, %205 : vector<17x128xf32>
    %cst_70 = arith.constant 0.797884583 : f32
    %207 = vector.broadcast %cst_70 : f32 to vector<17x128xf32>
    %208 = arith.mulf %207, %206 : vector<17x128xf32>
    %209 = math.tanh %208 : vector<17x128xf32>
    %cst_71 = arith.constant 1.000000e+00 : f32
    %210 = vector.broadcast %cst_71 : f32 to vector<17x128xf32>
    %211 = arith.addf %210, %209 : vector<17x128xf32>
    %212 = arith.mulf %201, %211 : vector<17x128xf32>
    %213 = arith.truncf %212 : vector<17x128xf32> to vector<17x128xbf16>
    %c0_72 = arith.constant 0 : index
    %c0_73 = arith.constant 0 : index
    %214 = vector.load %arg16[%c0_72, %c0_73] : memref<128x32xbf16, #tpu.memory_space<vmem>>, vector<128x32xbf16>
    %cst_74 = arith.constant dense<0.000000e+00> : vector<17x32xf32>
    %215 = tpu.matmul %213, %214, %cst_74 {dimension_numbers = #tpu.dot_dimension_numbers<[1], [0], [0], [1], [0, 0, 1, 1], [], []>} : vector<17x128xbf16>, vector<128x32xbf16>, vector<17x32xf32> -> vector<17x32xf32>
    %c0_75 = arith.constant 0 : index
    %c0_76 = arith.constant 0 : index
    %216 = vector.load %arg17[%c0_75, %c0_76] : memref<1x32xf32, #tpu.memory_space<vmem>>, vector<1x32xf32>
    %217 = vector.broadcast %216 : vector<1x32xf32> to vector<17x32xf32>
    %218 = arith.addf %215, %217 : vector<17x32xf32>
    %219 = arith.addf %169, %218 : vector<17x32xf32>
    %220 = arith.truncf %219 : vector<17x32xf32> to vector<17x32xbf16>
    %c0_77 = arith.constant 0 : index
    %c0_78 = arith.constant 0 : index
    %c0_79 = arith.constant 0 : index
    %221 = vector.load %arg18[%c0_77, %c0_78, %c0_79] : memref<1x17x32xbf16, #tpu.memory_space<vmem>>, vector<1x17x32xbf16>
    %222 = vector.shape_cast %221 : vector<1x17x32xbf16> to vector<17x32xbf16>
    %223 = vector.shape_cast %220 : vector<17x32xbf16> to vector<1x17x32xbf16>
    tpu.vector_store %arg18[%c0_77, %c0_78, %c0_79], %223 {strides = array<i32>} : memref<1x17x32xbf16, #tpu.memory_space<vmem>>, vector<1x17x32xbf16>,
    return
  }
  func.func @transform_0(%arg0: i32) -> (i32, i32, i32) {
    %c0_i32 = arith.constant 0 : i32
    %c0_i32_0 = arith.constant 0 : i32
    %c0_i32_1 = arith.constant 0 : i32
    return %arg0, %c0_i32, %c0_i32_0 : i32, i32, i32
  }
  func.func @transform_1(%arg0: i32) -> (i32, i32) {
    %c0_i32 = arith.constant 0 : i32
    %c0_i32_0 = arith.constant 0 : i32
    %c0_i32_1 = arith.constant 0 : i32
    return %c0_i32, %c0_i32_0 : i32, i32
  }
  func.func @transform_2(%arg0: i32) -> (i32, i32) {
    %c0_i32 = arith.constant 0 : i32
    %c0_i32_0 = arith.constant 0 : i32
    %c0_i32_1 = arith.constant 0 : i32
    return %c0_i32, %c0_i32_0 : i32, i32
  }
  func.func @transform_3(%arg0: i32) -> (i32, i32) {
    %c0_i32 = arith.constant 0 : i32
    %c0_i32_0 = arith.constant 0 : i32
    %c0_i32_1 = arith.constant 0 : i32
    return %c0_i32, %c0_i32_0 : i32, i32
  }
  func.func @transform_4(%arg0: i32) -> (i32, i32) {
    %c0_i32 = arith.constant 0 : i32
    %c0_i32_0 = arith.constant 0 : i32
    %c0_i32_1 = arith.constant 0 : i32
    return %c0_i32, %c0_i32_0 : i32, i32
  }
  func.func @transform_5(%arg0: i32) -> (i32, i32) {
    %c0_i32 = arith.constant 0 : i32
    %c0_i32_0 = arith.constant 0 : i32
    %c0_i32_1 = arith.constant 0 : i32
    return %c0_i32, %c0_i32_0 : i32, i32
  }
  func.func @transform_6(%arg0: i32) -> (i32, i32) {
    %c0_i32 = arith.constant 0 : i32
    %c0_i32_0 = arith.constant 0 : i32
    %c0_i32_1 = arith.constant 0 : i32
    return %c0_i32, %c0_i32_0 : i32, i32
  }
  func.func @transform_7(%arg0: i32) -> (i32, i32) {
    %c0_i32 = arith.constant 0 : i32
    %c0_i32_0 = arith.constant 0 : i32
    %c0_i32_1 = arith.constant 0 : i32
    return %c0_i32, %c0_i32_0 : i32, i32
  }
  func.func @transform_8(%arg0: i32) -> (i32, i32) {
    %c0_i32 = arith.constant 0 : i32
    %c0_i32_0 = arith.constant 0 : i32
    %c0_i32_1 = arith.constant 0 : i32
    return %c0_i32, %c0_i32_0 : i32, i32
  }
  func.func @transform_9(%arg0: i32) -> (i32, i32) {
    %c0_i32 = arith.constant 0 : i32
    %c0_i32_0 = arith.constant 0 : i32
    %c0_i32_1 = arith.constant 0 : i32
    return %c0_i32, %c0_i32_0 : i32, i32
  }
  func.func @transform_10(%arg0: i32) -> (i32, i32) {
    %c0_i32 = arith.constant 0 : i32
    %c0_i32_0 = arith.constant 0 : i32
    %c0_i32_1 = arith.constant 0 : i32
    return %c0_i32, %c0_i32_0 : i32, i32
  }
  func.func @transform_11(%arg0: i32) -> (i32, i32) {
    %c0_i32 = arith.constant 0 : i32
    %c0_i32_0 = arith.constant 0 : i32
    %c0_i32_1 = arith.constant 0 : i32
    return %c0_i32, %c0_i32_0 : i32, i32
  }
  func.func @transform_12(%arg0: i32) -> (i32, i32) {
    %c0_i32 = arith.constant 0 : i32
    %c0_i32_0 = arith.constant 0 : i32
    %c0_i32_1 = arith.constant 0 : i32
    return %c0_i32, %c0_i32_0 : i32, i32
  }
  func.func @transform_13(%arg0: i32) -> (i32, i32) {
    %c0_i32 = arith.constant 0 : i32
    %c0_i32_0 = arith.constant 0 : i32
    %c0_i32_1 = arith.constant 0 : i32
    return %c0_i32, %c0_i32_0 : i32, i32
  }
  func.func @transform_14(%arg0: i32) -> (i32, i32) {
    %c0_i32 = arith.constant 0 : i32
    %c0_i32_0 = arith.constant 0 : i32
    %c0_i32_1 = arith.constant 0 : i32
    return %c0_i32, %c0_i32_0 : i32, i32
  }
  func.func @transform_15(%arg0: i32) -> (i32, i32) {
    %c0_i32 = arith.constant 0 : i32
    %c0_i32_0 = arith.constant 0 : i32
    %c0_i32_1 = arith.constant 0 : i32
    return %c0_i32, %c0_i32_0 : i32, i32
  }
  func.func @transform_16(%arg0: i32) -> (i32, i32) {
    %c0_i32 = arith.constant 0 : i32
    %c0_i32_0 = arith.constant 0 : i32
    %c0_i32_1 = arith.constant 0 : i32
    return %c0_i32, %c0_i32_0 : i32, i32
  }
  func.func @transform_17(%arg0: i32) -> (i32, i32, i32) {
    %c0_i32 = arith.constant 0 : i32
    %c0_i32_0 = arith.constant 0 : i32
    %c0_i32_1 = arith.constant 0 : i32
    return %arg0, %c0_i32, %c0_i32_0 : i32, i32, i32
  }
}

module attributes {stable_mosaic.version = 11 : i64} {
  func.func @_ln_linear_kernel(%arg0: i32, %arg1: memref<8x32xbf16, #tpu.memory_space<vmem>>, %arg2: memref<1x32xf32, #tpu.memory_space<vmem>>, %arg3: memref<1x32xf32, #tpu.memory_space<vmem>>, %arg4: memref<32x128xbf16, #tpu.memory_space<vmem>>, %arg5: memref<1x128xf32, #tpu.memory_space<vmem>>, %arg6: memref<8x128xf32, #tpu.memory_space<vmem>>) attributes {dimension_semantics = [#tpu.dimension_semantics<parallel>], iteration_bounds = array<i64: 2>, scalar_prefetch = 0 : i64, scratch_operands = 0 : i64, tpu.core_type = #tpu.core_type<tc>, window_params = [{transform_indices = @transform_0, window_bounds = array<i64: 8, 32>}, {pipeline_mode = #tpu.pipeline_mode<synchronous>, transform_indices = @transform_1, window_bounds = array<i64: 1, 32>}, {pipeline_mode = #tpu.pipeline_mode<synchronous>, transform_indices = @transform_2, window_bounds = array<i64: 1, 32>}, {pipeline_mode = #tpu.pipeline_mode<synchronous>, transform_indices = @transform_3, window_bounds = array<i64: 32, 128>}, {pipeline_mode = #tpu.pipeline_mode<synchronous>, transform_indices = @transform_4, window_bounds = array<i64: 1, 128>}, {transform_indices = @transform_5, window_bounds = array<i64: 8, 128>}]} {
    %c0 = arith.constant 0 : index
    %c0_0 = arith.constant 0 : index
    %0 = vector.load %arg1[%c0, %c0_0] : memref<8x32xbf16, #tpu.memory_space<vmem>>, vector<8x32xbf16>
    %1 = arith.extf %0 : vector<8x32xbf16> to vector<8x32xf32>
    %c0_1 = arith.constant 0 : index
    %c0_2 = arith.constant 0 : index
    %2 = vector.load %arg2[%c0_1, %c0_2] : memref<1x32xf32, #tpu.memory_space<vmem>>, vector<1x32xf32>
    %c0_3 = arith.constant 0 : index
    %c0_4 = arith.constant 0 : index
    %3 = vector.load %arg3[%c0_3, %c0_4] : memref<1x32xf32, #tpu.memory_space<vmem>>, vector<1x32xf32>
    %cst = arith.constant dense<0.000000e+00> : vector<8xf32>
    %4 = vector.multi_reduction <add>, %1, %cst [1] : vector<8x32xf32> to vector<8xf32>
    %5 = vector.shape_cast %4 : vector<8xf32> to vector<8x1xf32>
    %cst_5 = arith.constant 3.200000e+01 : f32
    %6 = vector.broadcast %cst_5 : f32 to vector<8x1xf32>
    %7 = arith.divf %5, %6 : vector<8x1xf32>
    %8 = vector.broadcast %7 : vector<8x1xf32> to vector<8x32xf32>
    %9 = arith.subf %1, %8 : vector<8x32xf32>
    %10 = arith.mulf %9, %9 : vector<8x32xf32>
    %cst_6 = arith.constant dense<0.000000e+00> : vector<8xf32>
    %11 = vector.multi_reduction <add>, %10, %cst_6 [1] : vector<8x32xf32> to vector<8xf32>
    %12 = vector.shape_cast %11 : vector<8xf32> to vector<8x1xf32>
    %cst_7 = arith.constant 3.200000e+01 : f32
    %13 = vector.broadcast %cst_7 : f32 to vector<8x1xf32>
    %14 = arith.divf %12, %13 : vector<8x1xf32>
    %15 = vector.broadcast %7 : vector<8x1xf32> to vector<8x32xf32>
    %16 = arith.subf %1, %15 : vector<8x32xf32>
    %cst_8 = arith.constant 9.99999974E-6 : f32
    %17 = vector.broadcast %cst_8 : f32 to vector<8x1xf32>
    %18 = arith.addf %14, %17 : vector<8x1xf32>
    %19 = math.rsqrt %18 : vector<8x1xf32>
    %20 = vector.broadcast %19 : vector<8x1xf32> to vector<8x32xf32>
    %21 = arith.mulf %16, %20 : vector<8x32xf32>
    %22 = vector.broadcast %2 : vector<1x32xf32> to vector<8x32xf32>
    %23 = arith.mulf %21, %22 : vector<8x32xf32>
    %24 = vector.broadcast %3 : vector<1x32xf32> to vector<8x32xf32>
    %25 = arith.addf %23, %24 : vector<8x32xf32>
    %26 = arith.truncf %25 : vector<8x32xf32> to vector<8x32xbf16>
    %c0_9 = arith.constant 0 : index
    %c0_10 = arith.constant 0 : index
    %27 = vector.load %arg4[%c0_9, %c0_10] : memref<32x128xbf16, #tpu.memory_space<vmem>>, vector<32x128xbf16>
    %cst_11 = arith.constant dense<0.000000e+00> : vector<8x128xf32>
    %28 = tpu.matmul %26, %27, %cst_11 {dimension_numbers = #tpu.dot_dimension_numbers<[1], [0], [0], [1], [0, 0, 1, 1], [], []>} : vector<8x32xbf16>, vector<32x128xbf16>, vector<8x128xf32> -> vector<8x128xf32>
    %c0_12 = arith.constant 0 : index
    %c0_13 = arith.constant 0 : index
    %29 = vector.load %arg5[%c0_12, %c0_13] : memref<1x128xf32, #tpu.memory_space<vmem>>, vector<1x128xf32>
    %30 = vector.broadcast %29 : vector<1x128xf32> to vector<8x128xf32>
    %31 = arith.addf %28, %30 : vector<8x128xf32>
    %c0_14 = arith.constant 0 : index
    %c0_15 = arith.constant 0 : index
    %32 = vector.load %arg6[%c0_14, %c0_15] : memref<8x128xf32, #tpu.memory_space<vmem>>, vector<8x128xf32>
    tpu.vector_store %arg6[%c0_14, %c0_15], %31 {strides = array<i32>} : memref<8x128xf32, #tpu.memory_space<vmem>>, vector<8x128xf32>,
    return
  }
  func.func @transform_0(%arg0: i32) -> (i32, i32) {
    %c0_i32 = arith.constant 0 : i32
    %c0_i32_0 = arith.constant 0 : i32
    return %arg0, %c0_i32 : i32, i32
  }
  func.func @transform_1(%arg0: i32) -> (i32, i32) {
    %c0_i32 = arith.constant 0 : i32
    %c0_i32_0 = arith.constant 0 : i32
    %c0_i32_1 = arith.constant 0 : i32
    return %c0_i32, %c0_i32_0 : i32, i32
  }
  func.func @transform_2(%arg0: i32) -> (i32, i32) {
    %c0_i32 = arith.constant 0 : i32
    %c0_i32_0 = arith.constant 0 : i32
    %c0_i32_1 = arith.constant 0 : i32
    return %c0_i32, %c0_i32_0 : i32, i32
  }
  func.func @transform_3(%arg0: i32) -> (i32, i32) {
    %c0_i32 = arith.constant 0 : i32
    %c0_i32_0 = arith.constant 0 : i32
    %c0_i32_1 = arith.constant 0 : i32
    return %c0_i32, %c0_i32_0 : i32, i32
  }
  func.func @transform_4(%arg0: i32) -> (i32, i32) {
    %c0_i32 = arith.constant 0 : i32
    %c0_i32_0 = arith.constant 0 : i32
    %c0_i32_1 = arith.constant 0 : i32
    return %c0_i32, %c0_i32_0 : i32, i32
  }
  func.func @transform_5(%arg0: i32) -> (i32, i32) {
    %c0_i32 = arith.constant 0 : i32
    %c0_i32_0 = arith.constant 0 : i32
    return %arg0, %c0_i32 : i32, i32
  }
}

module attributes {stable_mosaic.version = 11 : i64} {
  func.func @_decoder_layer_kernel(%arg0: i32, %arg1: memref<1x8x32xbf16, #tpu.memory_space<vmem>>, %arg2: memref<1x16x32xbf16, #tpu.memory_space<vmem>>, %arg3: memref<1x32xf32, #tpu.memory_space<vmem>>, %arg4: memref<1x32xf32, #tpu.memory_space<vmem>>, %arg5: memref<32x32xbf16, #tpu.memory_space<vmem>>, %arg6: memref<1x32xf32, #tpu.memory_space<vmem>>, %arg7: memref<32x32xbf16, #tpu.memory_space<vmem>>, %arg8: memref<1x32xf32, #tpu.memory_space<vmem>>, %arg9: memref<32x32xbf16, #tpu.memory_space<vmem>>, %arg10: memref<1x32xf32, #tpu.memory_space<vmem>>, %arg11: memref<32x32xbf16, #tpu.memory_space<vmem>>, %arg12: memref<1x32xf32, #tpu.memory_space<vmem>>, %arg13: memref<1x32xf32, #tpu.memory_space<vmem>>, %arg14: memref<1x32xf32, #tpu.memory_space<vmem>>, %arg15: memref<32x128xbf16, #tpu.memory_space<vmem>>, %arg16: memref<1x128xf32, #tpu.memory_space<vmem>>, %arg17: memref<128x32xbf16, #tpu.memory_space<vmem>>, %arg18: memref<1x32xf32, #tpu.memory_space<vmem>>, %arg19: memref<1x32xf32, #tpu.memory_space<vmem>>, %arg20: memref<1x32xf32, #tpu.memory_space<vmem>>, %arg21: memref<32x32xbf16, #tpu.memory_space<vmem>>, %arg22: memref<1x32xf32, #tpu.memory_space<vmem>>, %arg23: memref<32x32xbf16, #tpu.memory_space<vmem>>, %arg24: memref<1x32xf32, #tpu.memory_space<vmem>>, %arg25: memref<32x32xbf16, #tpu.memory_space<vmem>>, %arg26: memref<1x32xf32, #tpu.memory_space<vmem>>, %arg27: memref<32x32xbf16, #tpu.memory_space<vmem>>, %arg28: memref<1x32xf32, #tpu.memory_space<vmem>>, %arg29: memref<1x8x32xbf16, #tpu.memory_space<vmem>>) attributes {dimension_semantics = [#tpu.dimension_semantics<parallel>], iteration_bounds = array<i64: 2>, scalar_prefetch = 0 : i64, scratch_operands = 0 : i64, tpu.core_type = #tpu.core_type<tc>, window_params = [{transform_indices = @transform_0, window_bounds = array<i64: 1, 8, 32>}, {transform_indices = @transform_1, window_bounds = array<i64: 1, 16, 32>}, {pipeline_mode = #tpu.pipeline_mode<synchronous>, transform_indices = @transform_2, window_bounds = array<i64: 1, 32>}, {pipeline_mode = #tpu.pipeline_mode<synchronous>, transform_indices = @transform_3, window_bounds = array<i64: 1, 32>}, {pipeline_mode = #tpu.pipeline_mode<synchronous>, transform_indices = @transform_4, window_bounds = array<i64: 32, 32>}, {pipeline_mode = #tpu.pipeline_mode<synchronous>, transform_indices = @transform_5, window_bounds = array<i64: 1, 32>}, {pipeline_mode = #tpu.pipeline_mode<synchronous>, transform_indices = @transform_6, window_bounds = array<i64: 32, 32>}, {pipeline_mode = #tpu.pipeline_mode<synchronous>, transform_indices = @transform_7, window_bounds = array<i64: 1, 32>}, {pipeline_mode = #tpu.pipeline_mode<synchronous>, transform_indices = @transform_8, window_bounds = array<i64: 32, 32>}, {pipeline_mode = #tpu.pipeline_mode<synchronous>, transform_indices = @transform_9, window_bounds = array<i64: 1, 32>}, {pipeline_mode = #tpu.pipeline_mode<synchronous>, transform_indices = @transform_10, window_bounds = array<i64: 32, 32>}, {pipeline_mode = #tpu.pipeline_mode<synchronous>, transform_indices = @transform_11, window_bounds = array<i64: 1, 32>}, {pipeline_mode = #tpu.pipeline_mode<synchronous>, transform_indices = @transform_12, window_bounds = array<i64: 1, 32>}, {pipeline_mode = #tpu.pipeline_mode<synchronous>, transform_indices = @transform_13, window_bounds = array<i64: 1, 32>}, {pipeline_mode = #tpu.pipeline_mode<synchronous>, transform_indices = @transform_14, window_bounds = array<i64: 32, 128>}, {pipeline_mode = #tpu.pipeline_mode<synchronous>, transform_indices = @transform_15, window_bounds = array<i64: 1, 128>}, {pipeline_mode = #tpu.pipeline_mode<synchronous>, transform_indices = @transform_16, window_bounds = array<i64: 128, 32>}, {pipeline_mode = #tpu.pipeline_mode<synchronous>, transform_indices = @transform_17, window_bounds = array<i64: 1, 32>}, {pipeline_mode = #tpu.pipeline_mode<synchronous>, transform_indices = @transform_18, window_bounds = array<i64: 1, 32>}, {pipeline_mode = #tpu.pipeline_mode<synchronous>, transform_indices = @transform_19, window_bounds = array<i64: 1, 32>}, {pipeline_mode = #tpu.pipeline_mode<synchronous>, transform_indices = @transform_20, window_bounds = array<i64: 32, 32>}, {pipeline_mode = #tpu.pipeline_mode<synchronous>, transform_indices = @transform_21, window_bounds = array<i64: 1, 32>}, {pipeline_mode = #tpu.pipeline_mode<synchronous>, transform_indices = @transform_22, window_bounds = array<i64: 32, 32>}, {pipeline_mode = #tpu.pipeline_mode<synchronous>, transform_indices = @transform_23, window_bounds = array<i64: 1, 32>}, {pipeline_mode = #tpu.pipeline_mode<synchronous>, transform_indices = @transform_24, window_bounds = array<i64: 32, 32>}, {pipeline_mode = #tpu.pipeline_mode<synchronous>, transform_indices = @transform_25, window_bounds = array<i64: 1, 32>}, {pipeline_mode = #tpu.pipeline_mode<synchronous>, transform_indices = @transform_26, window_bounds = array<i64: 32, 32>}, {pipeline_mode = #tpu.pipeline_mode<synchronous>, transform_indices = @transform_27, window_bounds = array<i64: 1, 32>}, {transform_indices = @transform_28, window_bounds = array<i64: 1, 8, 32>}]} {
    %c0 = arith.constant 0 : index
    %c0_0 = arith.constant 0 : index
    %c0_1 = arith.constant 0 : index
    %0 = vector.load %arg1[%c0, %c0_0, %c0_1] : memref<1x8x32xbf16, #tpu.memory_space<vmem>>, vector<1x8x32xbf16>
    %1 = vector.shape_cast %0 : vector<1x8x32xbf16> to vector<8x32xbf16>
    %2 = arith.extf %1 : vector<8x32xbf16> to vector<8x32xf32>
    %c0_2 = arith.constant 0 : index
    %c0_3 = arith.constant 0 : index
    %c0_4 = arith.constant 0 : index
    %3 = vector.load %arg2[%c0_2, %c0_3, %c0_4] : memref<1x16x32xbf16, #tpu.memory_space<vmem>>, vector<1x16x32xbf16>
    %4 = vector.shape_cast %3 : vector<1x16x32xbf16> to vector<16x32xbf16>
    %c0_5 = arith.constant 0 : index
    %c0_6 = arith.constant 0 : index
    %5 = vector.load %arg3[%c0_5, %c0_6] : memref<1x32xf32, #tpu.memory_space<vmem>>, vector<1x32xf32>
    %c0_7 = arith.constant 0 : index
    %c0_8 = arith.constant 0 : index
    %6 = vector.load %arg4[%c0_7, %c0_8] : memref<1x32xf32, #tpu.memory_space<vmem>>, vector<1x32xf32>
    %cst = arith.constant dense<0.000000e+00> : vector<8xf32>
    %7 = vector.multi_reduction <add>, %2, %cst [1] : vector<8x32xf32> to vector<8xf32>
    %8 = vector.shape_cast %7 : vector<8xf32> to vector<8x1xf32>
    %cst_9 = arith.constant 3.200000e+01 : f32
    %9 = vector.broadcast %cst_9 : f32 to vector<8x1xf32>
    %10 = arith.divf %8, %9 : vector<8x1xf32>
    %11 = vector.broadcast %10 : vector<8x1xf32> to vector<8x32xf32>
    %12 = arith.subf %2, %11 : vector<8x32xf32>
    %13 = arith.mulf %12, %12 : vector<8x32xf32>
    %cst_10 = arith.constant dense<0.000000e+00> : vector<8xf32>
    %14 = vector.multi_reduction <add>, %13, %cst_10 [1] : vector<8x32xf32> to vector<8xf32>
    %15 = vector.shape_cast %14 : vector<8xf32> to vector<8x1xf32>
    %cst_11 = arith.constant 3.200000e+01 : f32
    %16 = vector.broadcast %cst_11 : f32 to vector<8x1xf32>
    %17 = arith.divf %15, %16 : vector<8x1xf32>
    %18 = vector.broadcast %10 : vector<8x1xf32> to vector<8x32xf32>
    %19 = arith.subf %2, %18 : vector<8x32xf32>
    %cst_12 = arith.constant 9.99999974E-6 : f32
    %20 = vector.broadcast %cst_12 : f32 to vector<8x1xf32>
    %21 = arith.addf %17, %20 : vector<8x1xf32>
    %22 = math.rsqrt %21 : vector<8x1xf32>
    %23 = vector.broadcast %22 : vector<8x1xf32> to vector<8x32xf32>
    %24 = arith.mulf %19, %23 : vector<8x32xf32>
    %25 = vector.broadcast %5 : vector<1x32xf32> to vector<8x32xf32>
    %26 = arith.mulf %24, %25 : vector<8x32xf32>
    %27 = vector.broadcast %6 : vector<1x32xf32> to vector<8x32xf32>
    %28 = arith.addf %26, %27 : vector<8x32xf32>
    %29 = arith.truncf %28 : vector<8x32xf32> to vector<8x32xbf16>
    %30 = arith.truncf %28 : vector<8x32xf32> to vector<8x32xbf16>
    %c0_13 = arith.constant 0 : index
    %c0_14 = arith.constant 0 : index
    %31 = vector.load %arg5[%c0_13, %c0_14] : memref<32x32xbf16, #tpu.memory_space<vmem>>, vector<32x32xbf16>
    %cst_15 = arith.constant dense<0.000000e+00> : vector<8x32xf32>
    %32 = tpu.matmul %30, %31, %cst_15 {dimension_numbers = #tpu.dot_dimension_numbers<[1], [0], [0], [1], [0, 0, 1, 1], [], []>} : vector<8x32xbf16>, vector<32x32xbf16>, vector<8x32xf32> -> vector<8x32xf32>
    %c0_16 = arith.constant 0 : index
    %c0_17 = arith.constant 0 : index
    %33 = vector.load %arg6[%c0_16, %c0_17] : memref<1x32xf32, #tpu.memory_space<vmem>>, vector<1x32xf32>
    %34 = vector.broadcast %33 : vector<1x32xf32> to vector<8x32xf32>
    %35 = arith.addf %32, %34 : vector<8x32xf32>
    %c0_18 = arith.constant 0 : index
    %c0_19 = arith.constant 0 : index
    %36 = vector.load %arg7[%c0_18, %c0_19] : memref<32x32xbf16, #tpu.memory_space<vmem>>, vector<32x32xbf16>
    %cst_20 = arith.constant dense<0.000000e+00> : vector<8x32xf32>
    %37 = tpu.matmul %29, %36, %cst_20 {dimension_numbers = #tpu.dot_dimension_numbers<[1], [0], [0], [1], [0, 0, 1, 1], [], []>} : vector<8x32xbf16>, vector<32x32xbf16>, vector<8x32xf32> -> vector<8x32xf32>
    %c0_21 = arith.constant 0 : index
    %c0_22 = arith.constant 0 : index
    %38 = vector.load %arg8[%c0_21, %c0_22] : memref<1x32xf32, #tpu.memory_space<vmem>>, vector<1x32xf32>
    %39 = vector.broadcast %38 : vector<1x32xf32> to vector<8x32xf32>
    %40 = arith.addf %37, %39 : vector<8x32xf32>
    %c0_23 = arith.constant 0 : index
    %c0_24 = arith.constant 0 : index
    %41 = vector.load %arg9[%c0_23, %c0_24] : memref<32x32xbf16, #tpu.memory_space<vmem>>, vector<32x32xbf16>
    %cst_25 = arith.constant dense<0.000000e+00> : vector<8x32xf32>
    %42 = tpu.matmul %29, %41, %cst_25 {dimension_numbers = #tpu.dot_dimension_numbers<[1], [0], [0], [1], [0, 0, 1, 1], [], []>} : vector<8x32xbf16>, vector<32x32xbf16>, vector<8x32xf32> -> vector<8x32xf32>
    %c0_26 = arith.constant 0 : index
    %c0_27 = arith.constant 0 : index
    %43 = vector.load %arg10[%c0_26, %c0_27] : memref<1x32xf32, #tpu.memory_space<vmem>>, vector<1x32xf32>
    %44 = vector.broadcast %43 : vector<1x32xf32> to vector<8x32xf32>
    %45 = arith.addf %42, %44 : vector<8x32xf32>
    %46 = arith.truncf %40 : vector<8x32xf32> to vector<8x32xbf16>
    %47 = tpu.iota {dimensions = array<i32: 1>} : vector<1x32xi32>
    %48 = tpu.iota {dimensions = array<i32: 0>} : vector<8x8xi32>
    %49 = tpu.iota {dimensions = array<i32: 1>} : vector<8x8xi32>
    %50 = arith.cmpi sgt, %49, %48 : vector<8x8xi32>
    %cst_28 = arith.constant 0.000000e+00 : f32
    %51 = vector.broadcast %cst_28 : f32 to vector<8x32xf32>
    %c0_i32 = arith.constant 0 : i32
    %52 = vector.broadcast %c0_i32 : i32 to vector<1x32xi32>
    %53 = arith.cmpi sge, %47, %52 : vector<1x32xi32>
    %c8_i32 = arith.constant 8 : i32
    %54 = vector.broadcast %c8_i32 : i32 to vector<1x32xi32>
    %55 = arith.cmpi slt, %47, %54 : vector<1x32xi32>
    %56 = arith.andi %53, %55 : vector<1x32xi1>
    %57 = arith.extui %56 : vector<1x32xi1> to vector<1x32xi32>
    %58 = arith.sitofp %57 : vector<1x32xi32> to vector<1x32xf32>
    %59 = vector.broadcast %58 : vector<1x32xf32> to vector<8x32xf32>
    %60 = arith.mulf %35, %59 : vector<8x32xf32>
    %61 = arith.truncf %60 : vector<8x32xf32> to vector<8x32xbf16>
    %cst_29 = arith.constant dense<0.000000e+00> : vector<8x8xf32>
    %62 = tpu.matmul %61, %46, %cst_29 {dimension_numbers = #tpu.dot_dimension_numbers<[1], [1], [0], [0], [0, 0, 1, 0], [], []>} : vector<8x32xbf16>, vector<8x32xbf16>, vector<8x8xf32> -> vector<8x8xf32>
    %cst_30 = arith.constant 0.353553385 : f32
    %63 = vector.broadcast %cst_30 : f32 to vector<8x8xf32>
    %64 = arith.mulf %62, %63 : vector<8x8xf32>
    %cst_31 = arith.constant -1.000000e+30 : f32
    %65 = vector.broadcast %cst_31 : f32 to vector<8x8xf32>
    %66 = arith.select %50, %65, %64 : vector<8x8xi1>, vector<8x8xf32>
    %cst_32 = arith.constant dense<0xFF800000> : vector<8xf32>
    %67 = vector.multi_reduction <maximumf>, %66, %cst_32 [1] : vector<8x8xf32> to vector<8xf32>
    %68 = vector.shape_cast %67 : vector<8xf32> to vector<8x1xf32>
    %69 = vector.broadcast %68 : vector<8x1xf32> to vector<8x8xf32>
    %70 = arith.subf %66, %69 : vector<8x8xf32>
    %71 = math.exp %70 : vector<8x8xf32>
    %cst_33 = arith.constant dense<0.000000e+00> : vector<8xf32>
    %72 = vector.multi_reduction <add>, %71, %cst_33 [1] : vector<8x8xf32> to vector<8xf32>
    %73 = vector.shape_cast %72 : vector<8xf32> to vector<8x1xf32>
    %74 = tpu.reciprocal %73 {approx = true} : vector<8x1xf32> -> vector<8x1xf32>
    %75 = vector.broadcast %74 : vector<8x1xf32> to vector<8x8xf32>
    %76 = arith.mulf %71, %75 : vector<8x8xf32>
    %77 = arith.truncf %76 : vector<8x8xf32> to vector<8x8xbf16>
    %78 = vector.broadcast %58 : vector<1x32xf32> to vector<8x32xf32>
    %79 = arith.mulf %45, %78 : vector<8x32xf32>
    %80 = arith.truncf %79 : vector<8x32xf32> to vector<8x32xbf16>
    %cst_34 = arith.constant dense<0.000000e+00> : vector<8x32xf32>
    %81 = tpu.matmul %77, %80, %cst_34 {dimension_numbers = #tpu.dot_dimension_numbers<[1], [0], [0], [1], [0, 0, 1, 1], [], []>} : vector<8x8xbf16>, vector<8x32xbf16>, vector<8x32xf32> -> vector<8x32xf32>
    %82 = arith.addf %51, %81 : vector<8x32xf32>
    %c8_i32_35 = arith.constant 8 : i32
    %83 = vector.broadcast %c8_i32_35 : i32 to vector<1x32xi32>
    %84 = arith.cmpi sge, %47, %83 : vector<1x32xi32>
    %c16_i32 = arith.constant 16 : i32
    %85 = vector.broadcast %c16_i32 : i32 to vector<1x32xi32>
    %86 = arith.cmpi slt, %47, %85 : vector<1x32xi32>
    %87 = arith.andi %84, %86 : vector<1x32xi1>
    %88 = arith.extui %87 : vector<1x32xi1> to vector<1x32xi32>
    %89 = arith.sitofp %88 : vector<1x32xi32> to vector<1x32xf32>
    %90 = vector.broadcast %89 : vector<1x32xf32> to vector<8x32xf32>
    %91 = arith.mulf %35, %90 : vector<8x32xf32>
    %92 = arith.truncf %91 : vector<8x32xf32> to vector<8x32xbf16>
    %cst_36 = arith.constant dense<0.000000e+00> : vector<8x8xf32>
    %93 = tpu.matmul %92, %46, %cst_36 {dimension_numbers = #tpu.dot_dimension_numbers<[1], [1], [0], [0], [0, 0, 1, 0], [], []>} : vector<8x32xbf16>, vector<8x32xbf16>, vector<8x8xf32> -> vector<8x8xf32>
    %cst_37 = arith.constant 0.353553385 : f32
    %94 = vector.broadcast %cst_37 : f32 to vector<8x8xf32>
    %95 = arith.mulf %93, %94 : vector<8x8xf32>
    %cst_38 = arith.constant -1.000000e+30 : f32
    %96 = vector.broadcast %cst_38 : f32 to vector<8x8xf32>
    %97 = arith.select %50, %96, %95 : vector<8x8xi1>, vector<8x8xf32>
    %cst_39 = arith.constant dense<0xFF800000> : vector<8xf32>
    %98 = vector.multi_reduction <maximumf>, %97, %cst_39 [1] : vector<8x8xf32> to vector<8xf32>
    %99 = vector.shape_cast %98 : vector<8xf32> to vector<8x1xf32>
    %100 = vector.broadcast %99 : vector<8x1xf32> to vector<8x8xf32>
    %101 = arith.subf %97, %100 : vector<8x8xf32>
    %102 = math.exp %101 : vector<8x8xf32>
    %cst_40 = arith.constant dense<0.000000e+00> : vector<8xf32>
    %103 = vector.multi_reduction <add>, %102, %cst_40 [1] : vector<8x8xf32> to vector<8xf32>
    %104 = vector.shape_cast %103 : vector<8xf32> to vector<8x1xf32>
    %105 = tpu.reciprocal %104 {approx = true} : vector<8x1xf32> -> vector<8x1xf32>
    %106 = vector.broadcast %105 : vector<8x1xf32> to vector<8x8xf32>
    %107 = arith.mulf %102, %106 : vector<8x8xf32>
    %108 = arith.truncf %107 : vector<8x8xf32> to vector<8x8xbf16>
    %109 = vector.broadcast %89 : vector<1x32xf32> to vector<8x32xf32>
    %110 = arith.mulf %45, %109 : vector<8x32xf32>
    %111 = arith.truncf %110 : vector<8x32xf32> to vector<8x32xbf16>
    %cst_41 = arith.constant dense<0.000000e+00> : vector<8x32xf32>
    %112 = tpu.matmul %108, %111, %cst_41 {dimension_numbers = #tpu.dot_dimension_numbers<[1], [0], [0], [1], [0, 0, 1, 1], [], []>} : vector<8x8xbf16>, vector<8x32xbf16>, vector<8x32xf32> -> vector<8x32xf32>
    %113 = arith.addf %82, %112 : vector<8x32xf32>
    %c16_i32_42 = arith.constant 16 : i32
    %114 = vector.broadcast %c16_i32_42 : i32 to vector<1x32xi32>
    %115 = arith.cmpi sge, %47, %114 : vector<1x32xi32>
    %c24_i32 = arith.constant 24 : i32
    %116 = vector.broadcast %c24_i32 : i32 to vector<1x32xi32>
    %117 = arith.cmpi slt, %47, %116 : vector<1x32xi32>
    %118 = arith.andi %115, %117 : vector<1x32xi1>
    %119 = arith.extui %118 : vector<1x32xi1> to vector<1x32xi32>
    %120 = arith.sitofp %119 : vector<1x32xi32> to vector<1x32xf32>
    %121 = vector.broadcast %120 : vector<1x32xf32> to vector<8x32xf32>
    %122 = arith.mulf %35, %121 : vector<8x32xf32>
    %123 = arith.truncf %122 : vector<8x32xf32> to vector<8x32xbf16>
    %cst_43 = arith.constant dense<0.000000e+00> : vector<8x8xf32>
    %124 = tpu.matmul %123, %46, %cst_43 {dimension_numbers = #tpu.dot_dimension_numbers<[1], [1], [0], [0], [0, 0, 1, 0], [], []>} : vector<8x32xbf16>, vector<8x32xbf16>, vector<8x8xf32> -> vector<8x8xf32>
    %cst_44 = arith.constant 0.353553385 : f32
    %125 = vector.broadcast %cst_44 : f32 to vector<8x8xf32>
    %126 = arith.mulf %124, %125 : vector<8x8xf32>
    %cst_45 = arith.constant -1.000000e+30 : f32
    %127 = vector.broadcast %cst_45 : f32 to vector<8x8xf32>
    %128 = arith.select %50, %127, %126 : vector<8x8xi1>, vector<8x8xf32>
    %cst_46 = arith.constant dense<0xFF800000> : vector<8xf32>
    %129 = vector.multi_reduction <maximumf>, %128, %cst_46 [1] : vector<8x8xf32> to vector<8xf32>
    %130 = vector.shape_cast %129 : vector<8xf32> to vector<8x1xf32>
    %131 = vector.broadcast %130 : vector<8x1xf32> to vector<8x8xf32>
    %132 = arith.subf %128, %131 : vector<8x8xf32>
    %133 = math.exp %132 : vector<8x8xf32>
    %cst_47 = arith.constant dense<0.000000e+00> : vector<8xf32>
    %134 = vector.multi_reduction <add>, %133, %cst_47 [1] : vector<8x8xf32> to vector<8xf32>
    %135 = vector.shape_cast %134 : vector<8xf32> to vector<8x1xf32>
    %136 = tpu.reciprocal %135 {approx = true} : vector<8x1xf32> -> vector<8x1xf32>
    %137 = vector.broadcast %136 : vector<8x1xf32> to vector<8x8xf32>
    %138 = arith.mulf %133, %137 : vector<8x8xf32>
    %139 = arith.truncf %138 : vector<8x8xf32> to vector<8x8xbf16>
    %140 = vector.broadcast %120 : vector<1x32xf32> to vector<8x32xf32>
    %141 = arith.mulf %45, %140 : vector<8x32xf32>
    %142 = arith.truncf %141 : vector<8x32xf32> to vector<8x32xbf16>
    %cst_48 = arith.constant dense<0.000000e+00> : vector<8x32xf32>
    %143 = tpu.matmul %139, %142, %cst_48 {dimension_numbers = #tpu.dot_dimension_numbers<[1], [0], [0], [1], [0, 0, 1, 1], [], []>} : vector<8x8xbf16>, vector<8x32xbf16>, vector<8x32xf32> -> vector<8x32xf32>
    %144 = arith.addf %113, %143 : vector<8x32xf32>
    %c24_i32_49 = arith.constant 24 : i32
    %145 = vector.broadcast %c24_i32_49 : i32 to vector<1x32xi32>
    %146 = arith.cmpi sge, %47, %145 : vector<1x32xi32>
    %c32_i32 = arith.constant 32 : i32
    %147 = vector.broadcast %c32_i32 : i32 to vector<1x32xi32>
    %148 = arith.cmpi slt, %47, %147 : vector<1x32xi32>
    %149 = arith.andi %146, %148 : vector<1x32xi1>
    %150 = arith.extui %149 : vector<1x32xi1> to vector<1x32xi32>
    %151 = arith.sitofp %150 : vector<1x32xi32> to vector<1x32xf32>
    %152 = vector.broadcast %151 : vector<1x32xf32> to vector<8x32xf32>
    %153 = arith.mulf %35, %152 : vector<8x32xf32>
    %154 = arith.truncf %153 : vector<8x32xf32> to vector<8x32xbf16>
    %cst_50 = arith.constant dense<0.000000e+00> : vector<8x8xf32>
    %155 = tpu.matmul %154, %46, %cst_50 {dimension_numbers = #tpu.dot_dimension_numbers<[1], [1], [0], [0], [0, 0, 1, 0], [], []>} : vector<8x32xbf16>, vector<8x32xbf16>, vector<8x8xf32> -> vector<8x8xf32>
    %cst_51 = arith.constant 0.353553385 : f32
    %156 = vector.broadcast %cst_51 : f32 to vector<8x8xf32>
    %157 = arith.mulf %155, %156 : vector<8x8xf32>
    %cst_52 = arith.constant -1.000000e+30 : f32
    %158 = vector.broadcast %cst_52 : f32 to vector<8x8xf32>
    %159 = arith.select %50, %158, %157 : vector<8x8xi1>, vector<8x8xf32>
    %cst_53 = arith.constant dense<0xFF800000> : vector<8xf32>
    %160 = vector.multi_reduction <maximumf>, %159, %cst_53 [1] : vector<8x8xf32> to vector<8xf32>
    %161 = vector.shape_cast %160 : vector<8xf32> to vector<8x1xf32>
    %162 = vector.broadcast %161 : vector<8x1xf32> to vector<8x8xf32>
    %163 = arith.subf %159, %162 : vector<8x8xf32>
    %164 = math.exp %163 : vector<8x8xf32>
    %cst_54 = arith.constant dense<0.000000e+00> : vector<8xf32>
    %165 = vector.multi_reduction <add>, %164, %cst_54 [1] : vector<8x8xf32> to vector<8xf32>
    %166 = vector.shape_cast %165 : vector<8xf32> to vector<8x1xf32>
    %167 = tpu.reciprocal %166 {approx = true} : vector<8x1xf32> -> vector<8x1xf32>
    %168 = vector.broadcast %167 : vector<8x1xf32> to vector<8x8xf32>
    %169 = arith.mulf %164, %168 : vector<8x8xf32>
    %170 = arith.truncf %169 : vector<8x8xf32> to vector<8x8xbf16>
    %171 = vector.broadcast %151 : vector<1x32xf32> to vector<8x32xf32>
    %172 = arith.mulf %45, %171 : vector<8x32xf32>
    %173 = arith.truncf %172 : vector<8x32xf32> to vector<8x32xbf16>
    %cst_55 = arith.constant dense<0.000000e+00> : vector<8x32xf32>
    %174 = tpu.matmul %170, %173, %cst_55 {dimension_numbers = #tpu.dot_dimension_numbers<[1], [0], [0], [1], [0, 0, 1, 1], [], []>} : vector<8x8xbf16>, vector<8x32xbf16>, vector<8x32xf32> -> vector<8x32xf32>
    %175 = arith.addf %144, %174 : vector<8x32xf32>
    %176 = arith.truncf %175 : vector<8x32xf32> to vector<8x32xbf16>
    %c0_56 = arith.constant 0 : index
    %c0_57 = arith.constant 0 : index
    %177 = vector.load %arg11[%c0_56, %c0_57] : memref<32x32xbf16, #tpu.memory_space<vmem>>, vector<32x32xbf16>
    %cst_58 = arith.constant dense<0.000000e+00> : vector<8x32xf32>
    %178 = tpu.matmul %176, %177, %cst_58 {dimension_numbers = #tpu.dot_dimension_numbers<[1], [0], [0], [1], [0, 0, 1, 1], [], []>} : vector<8x32xbf16>, vector<32x32xbf16>, vector<8x32xf32> -> vector<8x32xf32>
    %c0_59 = arith.constant 0 : index
    %c0_60 = arith.constant 0 : index
    %179 = vector.load %arg12[%c0_59, %c0_60] : memref<1x32xf32, #tpu.memory_space<vmem>>, vector<1x32xf32>
    %180 = vector.broadcast %179 : vector<1x32xf32> to vector<8x32xf32>
    %181 = arith.addf %178, %180 : vector<8x32xf32>
    %182 = arith.addf %2, %181 : vector<8x32xf32>
    %c0_61 = arith.constant 0 : index
    %c0_62 = arith.constant 0 : index
    %183 = vector.load %arg13[%c0_61, %c0_62] : memref<1x32xf32, #tpu.memory_space<vmem>>, vector<1x32xf32>
    %c0_63 = arith.constant 0 : index
    %c0_64 = arith.constant 0 : index
    %184 = vector.load %arg14[%c0_63, %c0_64] : memref<1x32xf32, #tpu.memory_space<vmem>>, vector<1x32xf32>
    %cst_65 = arith.constant dense<0.000000e+00> : vector<8xf32>
    %185 = vector.multi_reduction <add>, %182, %cst_65 [1] : vector<8x32xf32> to vector<8xf32>
    %186 = vector.shape_cast %185 : vector<8xf32> to vector<8x1xf32>
    %cst_66 = arith.constant 3.200000e+01 : f32
    %187 = vector.broadcast %cst_66 : f32 to vector<8x1xf32>
    %188 = arith.divf %186, %187 : vector<8x1xf32>
    %189 = vector.broadcast %188 : vector<8x1xf32> to vector<8x32xf32>
    %190 = arith.subf %182, %189 : vector<8x32xf32>
    %191 = arith.mulf %190, %190 : vector<8x32xf32>
    %cst_67 = arith.constant dense<0.000000e+00> : vector<8xf32>
    %192 = vector.multi_reduction <add>, %191, %cst_67 [1] : vector<8x32xf32> to vector<8xf32>
    %193 = vector.shape_cast %192 : vector<8xf32> to vector<8x1xf32>
    %cst_68 = arith.constant 3.200000e+01 : f32
    %194 = vector.broadcast %cst_68 : f32 to vector<8x1xf32>
    %195 = arith.divf %193, %194 : vector<8x1xf32>
    %196 = vector.broadcast %188 : vector<8x1xf32> to vector<8x32xf32>
    %197 = arith.subf %182, %196 : vector<8x32xf32>
    %cst_69 = arith.constant 9.99999974E-6 : f32
    %198 = vector.broadcast %cst_69 : f32 to vector<8x1xf32>
    %199 = arith.addf %195, %198 : vector<8x1xf32>
    %200 = math.rsqrt %199 : vector<8x1xf32>
    %201 = vector.broadcast %200 : vector<8x1xf32> to vector<8x32xf32>
    %202 = arith.mulf %197, %201 : vector<8x32xf32>
    %203 = vector.broadcast %183 : vector<1x32xf32> to vector<8x32xf32>
    %204 = arith.mulf %202, %203 : vector<8x32xf32>
    %205 = vector.broadcast %184 : vector<1x32xf32> to vector<8x32xf32>
    %206 = arith.addf %204, %205 : vector<8x32xf32>
    %207 = arith.truncf %206 : vector<8x32xf32> to vector<8x32xbf16>
    %c0_70 = arith.constant 0 : index
    %c0_71 = arith.constant 0 : index
    %208 = vector.load %arg15[%c0_70, %c0_71] : memref<32x128xbf16, #tpu.memory_space<vmem>>, vector<32x128xbf16>
    %cst_72 = arith.constant dense<0.000000e+00> : vector<8x128xf32>
    %209 = tpu.matmul %207, %208, %cst_72 {dimension_numbers = #tpu.dot_dimension_numbers<[1], [0], [0], [1], [0, 0, 1, 1], [], []>} : vector<8x32xbf16>, vector<32x128xbf16>, vector<8x128xf32> -> vector<8x128xf32>
    %c0_73 = arith.constant 0 : index
    %c0_74 = arith.constant 0 : index
    %210 = vector.load %arg16[%c0_73, %c0_74] : memref<1x128xf32, #tpu.memory_space<vmem>>, vector<1x128xf32>
    %211 = vector.broadcast %210 : vector<1x128xf32> to vector<8x128xf32>
    %212 = arith.addf %209, %211 : vector<8x128xf32>
    %cst_75 = arith.constant 5.000000e-01 : f32
    %213 = vector.broadcast %cst_75 : f32 to vector<8x128xf32>
    %214 = arith.mulf %213, %212 : vector<8x128xf32>
    %cst_76 = arith.constant 4.471500e-02 : f32
    %215 = vector.broadcast %cst_76 : f32 to vector<8x128xf32>
    %216 = arith.mulf %215, %212 : vector<8x128xf32>
    %217 = arith.mulf %216, %212 : vector<8x128xf32>
    %218 = arith.mulf %217, %212 : vector<8x128xf32>
    %219 = arith.addf %212, %218 : vector<8x128xf32>
    %cst_77 = arith.constant 0.797884583 : f32
    %220 = vector.broadcast %cst_77 : f32 to vector<8x128xf32>
    %221 = arith.mulf %220, %219 : vector<8x128xf32>
    %222 = math.tanh %221 : vector<8x128xf32>
    %cst_78 = arith.constant 1.000000e+00 : f32
    %223 = vector.broadcast %cst_78 : f32 to vector<8x128xf32>
    %224 = arith.addf %223, %222 : vector<8x128xf32>
    %225 = arith.mulf %214, %224 : vector<8x128xf32>
    %226 = arith.truncf %225 : vector<8x128xf32> to vector<8x128xbf16>
    %c0_79 = arith.constant 0 : index
    %c0_80 = arith.constant 0 : index
    %227 = vector.load %arg17[%c0_79, %c0_80] : memref<128x32xbf16, #tpu.memory_space<vmem>>, vector<128x32xbf16>
    %cst_81 = arith.constant dense<0.000000e+00> : vector<8x32xf32>
    %228 = tpu.matmul %226, %227, %cst_81 {dimension_numbers = #tpu.dot_dimension_numbers<[1], [0], [0], [1], [0, 0, 1, 1], [], []>} : vector<8x128xbf16>, vector<128x32xbf16>, vector<8x32xf32> -> vector<8x32xf32>
    %c0_82 = arith.constant 0 : index
    %c0_83 = arith.constant 0 : index
    %229 = vector.load %arg18[%c0_82, %c0_83] : memref<1x32xf32, #tpu.memory_space<vmem>>, vector<1x32xf32>
    %230 = vector.broadcast %229 : vector<1x32xf32> to vector<8x32xf32>
    %231 = arith.addf %228, %230 : vector<8x32xf32>
    %232 = arith.addf %182, %231 : vector<8x32xf32>
    %c0_84 = arith.constant 0 : index
    %c0_85 = arith.constant 0 : index
    %233 = vector.load %arg19[%c0_84, %c0_85] : memref<1x32xf32, #tpu.memory_space<vmem>>, vector<1x32xf32>
    %c0_86 = arith.constant 0 : index
    %c0_87 = arith.constant 0 : index
    %234 = vector.load %arg20[%c0_86, %c0_87] : memref<1x32xf32, #tpu.memory_space<vmem>>, vector<1x32xf32>
    %cst_88 = arith.constant dense<0.000000e+00> : vector<8xf32>
    %235 = vector.multi_reduction <add>, %232, %cst_88 [1] : vector<8x32xf32> to vector<8xf32>
    %236 = vector.shape_cast %235 : vector<8xf32> to vector<8x1xf32>
    %cst_89 = arith.constant 3.200000e+01 : f32
    %237 = vector.broadcast %cst_89 : f32 to vector<8x1xf32>
    %238 = arith.divf %236, %237 : vector<8x1xf32>
    %239 = vector.broadcast %238 : vector<8x1xf32> to vector<8x32xf32>
    %240 = arith.subf %232, %239 : vector<8x32xf32>
    %241 = arith.mulf %240, %240 : vector<8x32xf32>
    %cst_90 = arith.constant dense<0.000000e+00> : vector<8xf32>
    %242 = vector.multi_reduction <add>, %241, %cst_90 [1] : vector<8x32xf32> to vector<8xf32>
    %243 = vector.shape_cast %242 : vector<8xf32> to vector<8x1xf32>
    %cst_91 = arith.constant 3.200000e+01 : f32
    %244 = vector.broadcast %cst_91 : f32 to vector<8x1xf32>
    %245 = arith.divf %243, %244 : vector<8x1xf32>
    %246 = vector.broadcast %238 : vector<8x1xf32> to vector<8x32xf32>
    %247 = arith.subf %232, %246 : vector<8x32xf32>
    %cst_92 = arith.constant 9.99999974E-6 : f32
    %248 = vector.broadcast %cst_92 : f32 to vector<8x1xf32>
    %249 = arith.addf %245, %248 : vector<8x1xf32>
    %250 = math.rsqrt %249 : vector<8x1xf32>
    %251 = vector.broadcast %250 : vector<8x1xf32> to vector<8x32xf32>
    %252 = arith.mulf %247, %251 : vector<8x32xf32>
    %253 = vector.broadcast %233 : vector<1x32xf32> to vector<8x32xf32>
    %254 = arith.mulf %252, %253 : vector<8x32xf32>
    %255 = vector.broadcast %234 : vector<1x32xf32> to vector<8x32xf32>
    %256 = arith.addf %254, %255 : vector<8x32xf32>
    %257 = arith.truncf %256 : vector<8x32xf32> to vector<8x32xbf16>
    %c0_93 = arith.constant 0 : index
    %c0_94 = arith.constant 0 : index
    %258 = vector.load %arg21[%c0_93, %c0_94] : memref<32x32xbf16, #tpu.memory_space<vmem>>, vector<32x32xbf16>
    %cst_95 = arith.constant dense<0.000000e+00> : vector<8x32xf32>
    %259 = tpu.matmul %257, %258, %cst_95 {dimension_numbers = #tpu.dot_dimension_numbers<[1], [0], [0], [1], [0, 0, 1, 1], [], []>} : vector<8x32xbf16>, vector<32x32xbf16>, vector<8x32xf32> -> vector<8x32xf32>
    %c0_96 = arith.constant 0 : index
    %c0_97 = arith.constant 0 : index
    %260 = vector.load %arg22[%c0_96, %c0_97] : memref<1x32xf32, #tpu.memory_space<vmem>>, vector<1x32xf32>
    %261 = vector.broadcast %260 : vector<1x32xf32> to vector<8x32xf32>
    %262 = arith.addf %259, %261 : vector<8x32xf32>
    %c0_98 = arith.constant 0 : index
    %c0_99 = arith.constant 0 : index
    %263 = vector.load %arg23[%c0_98, %c0_99] : memref<32x32xbf16, #tpu.memory_space<vmem>>, vector<32x32xbf16>
    %cst_100 = arith.constant dense<0.000000e+00> : vector<16x32xf32>
    %264 = tpu.matmul %4, %263, %cst_100 {dimension_numbers = #tpu.dot_dimension_numbers<[1], [0], [0], [1], [0, 0, 1, 1], [], []>} : vector<16x32xbf16>, vector<32x32xbf16>, vector<16x32xf32> -> vector<16x32xf32>
    %c0_101 = arith.constant 0 : index
    %c0_102 = arith.constant 0 : index
    %265 = vector.load %arg24[%c0_101, %c0_102] : memref<1x32xf32, #tpu.memory_space<vmem>>, vector<1x32xf32>
    %266 = vector.broadcast %265 : vector<1x32xf32> to vector<16x32xf32>
    %267 = arith.addf %264, %266 : vector<16x32xf32>
    %c0_103 = arith.constant 0 : index
    %c0_104 = arith.constant 0 : index
    %268 = vector.load %arg25[%c0_103, %c0_104] : memref<32x32xbf16, #tpu.memory_space<vmem>>, vector<32x32xbf16>
    %cst_105 = arith.constant dense<0.000000e+00> : vector<16x32xf32>
    %269 = tpu.matmul %4, %268, %cst_105 {dimension_numbers = #tpu.dot_dimension_numbers<[1], [0], [0], [1], [0, 0, 1, 1], [], []>} : vector<16x32xbf16>, vector<32x32xbf16>, vector<16x32xf32> -> vector<16x32xf32>
    %c0_106 = arith.constant 0 : index
    %c0_107 = arith.constant 0 : index
    %270 = vector.load %arg26[%c0_106, %c0_107] : memref<1x32xf32, #tpu.memory_space<vmem>>, vector<1x32xf32>
    %271 = vector.broadcast %270 : vector<1x32xf32> to vector<16x32xf32>
    %272 = arith.addf %269, %271 : vector<16x32xf32>
    %273 = arith.truncf %267 : vector<16x32xf32> to vector<16x32xbf16>
    %274 = tpu.iota {dimensions = array<i32: 1>} : vector<1x32xi32>
    %cst_108 = arith.constant 0.000000e+00 : f32
    %275 = vector.broadcast %cst_108 : f32 to vector<8x32xf32>
    %c0_i32_109 = arith.constant 0 : i32
    %276 = vector.broadcast %c0_i32_109 : i32 to vector<1x32xi32>
    %277 = arith.cmpi sge, %274, %276 : vector<1x32xi32>
    %c8_i32_110 = arith.constant 8 : i32
    %278 = vector.broadcast %c8_i32_110 : i32 to vector<1x32xi32>
    %279 = arith.cmpi slt, %274, %278 : vector<1x32xi32>
    %280 = arith.andi %277, %279 : vector<1x32xi1>
    %281 = arith.extui %280 : vector<1x32xi1> to vector<1x32xi32>
    %282 = arith.sitofp %281 : vector<1x32xi32> to vector<1x32xf32>
    %283 = vector.broadcast %282 : vector<1x32xf32> to vector<8x32xf32>
    %284 = arith.mulf %262, %283 : vector<8x32xf32>
    %285 = arith.truncf %284 : vector<8x32xf32> to vector<8x32xbf16>
    %cst_111 = arith.constant dense<0.000000e+00> : vector<8x16xf32>
    %286 = tpu.matmul %285, %273, %cst_111 {dimension_numbers = #tpu.dot_dimension_numbers<[1], [1], [0], [0], [0, 0, 1, 0], [], []>} : vector<8x32xbf16>, vector<16x32xbf16>, vector<8x16xf32> -> vector<8x16xf32>
    %cst_112 = arith.constant 0.353553385 : f32
    %287 = vector.broadcast %cst_112 : f32 to vector<8x16xf32>
    %288 = arith.mulf %286, %287 : vector<8x16xf32>
    %cst_113 = arith.constant dense<0xFF800000> : vector<8xf32>
    %289 = vector.multi_reduction <maximumf>, %288, %cst_113 [1] : vector<8x16xf32> to vector<8xf32>
    %290 = vector.shape_cast %289 : vector<8xf32> to vector<8x1xf32>
    %291 = vector.broadcast %290 : vector<8x1xf32> to vector<8x16xf32>
    %292 = arith.subf %288, %291 : vector<8x16xf32>
    %293 = math.exp %292 : vector<8x16xf32>
    %cst_114 = arith.constant dense<0.000000e+00> : vector<8xf32>
    %294 = vector.multi_reduction <add>, %293, %cst_114 [1] : vector<8x16xf32> to vector<8xf32>
    %295 = vector.shape_cast %294 : vector<8xf32> to vector<8x1xf32>
    %296 = tpu.reciprocal %295 {approx = true} : vector<8x1xf32> -> vector<8x1xf32>
    %297 = vector.broadcast %296 : vector<8x1xf32> to vector<8x16xf32>
    %298 = arith.mulf %293, %297 : vector<8x16xf32>
    %299 = arith.truncf %298 : vector<8x16xf32> to vector<8x16xbf16>
    %300 = vector.broadcast %282 : vector<1x32xf32> to vector<16x32xf32>
    %301 = arith.mulf %272, %300 : vector<16x32xf32>
    %302 = arith.truncf %301 : vector<16x32xf32> to vector<16x32xbf16>
    %cst_115 = arith.constant dense<0.000000e+00> : vector<8x32xf32>
    %303 = tpu.matmul %299, %302, %cst_115 {dimension_numbers = #tpu.dot_dimension_numbers<[1], [0], [0], [1], [0, 0, 1, 1], [], []>} : vector<8x16xbf16>, vector<16x32xbf16>, vector<8x32xf32> -> vector<8x32xf32>
    %304 = arith.addf %275, %303 : vector<8x32xf32>
    %c8_i32_116 = arith.constant 8 : i32
    %305 = vector.broadcast %c8_i32_116 : i32 to vector<1x32xi32>
    %306 = arith.cmpi sge, %274, %305 : vector<1x32xi32>
    %c16_i32_117 = arith.constant 16 : i32
    %307 = vector.broadcast %c16_i32_117 : i32 to vector<1x32xi32>
    %308 = arith.cmpi slt, %274, %307 : vector<1x32xi32>
    %309 = arith.andi %306, %308 : vector<1x32xi1>
    %310 = arith.extui %309 : vector<1x32xi1> to vector<1x32xi32>
    %311 = arith.sitofp %310 : vector<1x32xi32> to vector<1x32xf32>
    %312 = vector.broadcast %311 : vector<1x32xf32> to vector<8x32xf32>
    %313 = arith.mulf %262, %312 : vector<8x32xf32>
    %314 = arith.truncf %313 : vector<8x32xf32> to vector<8x32xbf16>
    %cst_118 = arith.constant dense<0.000000e+00> : vector<8x16xf32>
    %315 = tpu.matmul %314, %273, %cst_118 {dimension_numbers = #tpu.dot_dimension_numbers<[1], [1], [0], [0], [0, 0, 1, 0], [], []>} : vector<8x32xbf16>, vector<16x32xbf16>, vector<8x16xf32> -> vector<8x16xf32>
    %cst_119 = arith.constant 0.353553385 : f32
    %316 = vector.broadcast %cst_119 : f32 to vector<8x16xf32>
    %317 = arith.mulf %315, %316 : vector<8x16xf32>
    %cst_120 = arith.constant dense<0xFF800000> : vector<8xf32>
    %318 = vector.multi_reduction <maximumf>, %317, %cst_120 [1] : vector<8x16xf32> to vector<8xf32>
    %319 = vector.shape_cast %318 : vector<8xf32> to vector<8x1xf32>
    %320 = vector.broadcast %319 : vector<8x1xf32> to vector<8x16xf32>
    %321 = arith.subf %317, %320 : vector<8x16xf32>
    %322 = math.exp %321 : vector<8x16xf32>
    %cst_121 = arith.constant dense<0.000000e+00> : vector<8xf32>
    %323 = vector.multi_reduction <add>, %322, %cst_121 [1] : vector<8x16xf32> to vector<8xf32>
    %324 = vector.shape_cast %323 : vector<8xf32> to vector<8x1xf32>
    %325 = tpu.reciprocal %324 {approx = true} : vector<8x1xf32> -> vector<8x1xf32>
    %326 = vector.broadcast %325 : vector<8x1xf32> to vector<8x16xf32>
    %327 = arith.mulf %322, %326 : vector<8x16xf32>
    %328 = arith.truncf %327 : vector<8x16xf32> to vector<8x16xbf16>
    %329 = vector.broadcast %311 : vector<1x32xf32> to vector<16x32xf32>
    %330 = arith.mulf %272, %329 : vector<16x32xf32>
    %331 = arith.truncf %330 : vector<16x32xf32> to vector<16x32xbf16>
    %cst_122 = arith.constant dense<0.000000e+00> : vector<8x32xf32>
    %332 = tpu.matmul %328, %331, %cst_122 {dimension_numbers = #tpu.dot_dimension_numbers<[1], [0], [0], [1], [0, 0, 1, 1], [], []>} : vector<8x16xbf16>, vector<16x32xbf16>, vector<8x32xf32> -> vector<8x32xf32>
    %333 = arith.addf %304, %332 : vector<8x32xf32>
    %c16_i32_123 = arith.constant 16 : i32
    %334 = vector.broadcast %c16_i32_123 : i32 to vector<1x32xi32>
    %335 = arith.cmpi sge, %274, %334 : vector<1x32xi32>
    %c24_i32_124 = arith.constant 24 : i32
    %336 = vector.broadcast %c24_i32_124 : i32 to vector<1x32xi32>
    %337 = arith.cmpi slt, %274, %336 : vector<1x32xi32>
    %338 = arith.andi %335, %337 : vector<1x32xi1>
    %339 = arith.extui %338 : vector<1x32xi1> to vector<1x32xi32>
    %340 = arith.sitofp %339 : vector<1x32xi32> to vector<1x32xf32>
    %341 = vector.broadcast %340 : vector<1x32xf32> to vector<8x32xf32>
    %342 = arith.mulf %262, %341 : vector<8x32xf32>
    %343 = arith.truncf %342 : vector<8x32xf32> to vector<8x32xbf16>
    %cst_125 = arith.constant dense<0.000000e+00> : vector<8x16xf32>
    %344 = tpu.matmul %343, %273, %cst_125 {dimension_numbers = #tpu.dot_dimension_numbers<[1], [1], [0], [0], [0, 0, 1, 0], [], []>} : vector<8x32xbf16>, vector<16x32xbf16>, vector<8x16xf32> -> vector<8x16xf32>
    %cst_126 = arith.constant 0.353553385 : f32
    %345 = vector.broadcast %cst_126 : f32 to vector<8x16xf32>
    %346 = arith.mulf %344, %345 : vector<8x16xf32>
    %cst_127 = arith.constant dense<0xFF800000> : vector<8xf32>
    %347 = vector.multi_reduction <maximumf>, %346, %cst_127 [1] : vector<8x16xf32> to vector<8xf32>
    %348 = vector.shape_cast %347 : vector<8xf32> to vector<8x1xf32>
    %349 = vector.broadcast %348 : vector<8x1xf32> to vector<8x16xf32>
    %350 = arith.subf %346, %349 : vector<8x16xf32>
    %351 = math.exp %350 : vector<8x16xf32>
    %cst_128 = arith.constant dense<0.000000e+00> : vector<8xf32>
    %352 = vector.multi_reduction <add>, %351, %cst_128 [1] : vector<8x16xf32> to vector<8xf32>
    %353 = vector.shape_cast %352 : vector<8xf32> to vector<8x1xf32>
    %354 = tpu.reciprocal %353 {approx = true} : vector<8x1xf32> -> vector<8x1xf32>
    %355 = vector.broadcast %354 : vector<8x1xf32> to vector<8x16xf32>
    %356 = arith.mulf %351, %355 : vector<8x16xf32>
    %357 = arith.truncf %356 : vector<8x16xf32> to vector<8x16xbf16>
    %358 = vector.broadcast %340 : vector<1x32xf32> to vector<16x32xf32>
    %359 = arith.mulf %272, %358 : vector<16x32xf32>
    %360 = arith.truncf %359 : vector<16x32xf32> to vector<16x32xbf16>
    %cst_129 = arith.constant dense<0.000000e+00> : vector<8x32xf32>
    %361 = tpu.matmul %357, %360, %cst_129 {dimension_numbers = #tpu.dot_dimension_numbers<[1], [0], [0], [1], [0, 0, 1, 1], [], []>} : vector<8x16xbf16>, vector<16x32xbf16>, vector<8x32xf32> -> vector<8x32xf32>
    %362 = arith.addf %333, %361 : vector<8x32xf32>
    %c24_i32_130 = arith.constant 24 : i32
    %363 = vector.broadcast %c24_i32_130 : i32 to vector<1x32xi32>
    %364 = arith.cmpi sge, %274, %363 : vector<1x32xi32>
    %c32_i32_131 = arith.constant 32 : i32
    %365 = vector.broadcast %c32_i32_131 : i32 to vector<1x32xi32>
    %366 = arith.cmpi slt, %274, %365 : vector<1x32xi32>
    %367 = arith.andi %364, %366 : vector<1x32xi1>
    %368 = arith.extui %367 : vector<1x32xi1> to vector<1x32xi32>
    %369 = arith.sitofp %368 : vector<1x32xi32> to vector<1x32xf32>
    %370 = vector.broadcast %369 : vector<1x32xf32> to vector<8x32xf32>
    %371 = arith.mulf %262, %370 : vector<8x32xf32>
    %372 = arith.truncf %371 : vector<8x32xf32> to vector<8x32xbf16>
    %cst_132 = arith.constant dense<0.000000e+00> : vector<8x16xf32>
    %373 = tpu.matmul %372, %273, %cst_132 {dimension_numbers = #tpu.dot_dimension_numbers<[1], [1], [0], [0], [0, 0, 1, 0], [], []>} : vector<8x32xbf16>, vector<16x32xbf16>, vector<8x16xf32> -> vector<8x16xf32>
    %cst_133 = arith.constant 0.353553385 : f32
    %374 = vector.broadcast %cst_133 : f32 to vector<8x16xf32>
    %375 = arith.mulf %373, %374 : vector<8x16xf32>
    %cst_134 = arith.constant dense<0xFF800000> : vector<8xf32>
    %376 = vector.multi_reduction <maximumf>, %375, %cst_134 [1] : vector<8x16xf32> to vector<8xf32>
    %377 = vector.shape_cast %376 : vector<8xf32> to vector<8x1xf32>
    %378 = vector.broadcast %377 : vector<8x1xf32> to vector<8x16xf32>
    %379 = arith.subf %375, %378 : vector<8x16xf32>
    %380 = math.exp %379 : vector<8x16xf32>
    %cst_135 = arith.constant dense<0.000000e+00> : vector<8xf32>
    %381 = vector.multi_reduction <add>, %380, %cst_135 [1] : vector<8x16xf32> to vector<8xf32>
    %382 = vector.shape_cast %381 : vector<8xf32> to vector<8x1xf32>
    %383 = tpu.reciprocal %382 {approx = true} : vector<8x1xf32> -> vector<8x1xf32>
    %384 = vector.broadcast %383 : vector<8x1xf32> to vector<8x16xf32>
    %385 = arith.mulf %380, %384 : vector<8x16xf32>
    %386 = arith.truncf %385 : vector<8x16xf32> to vector<8x16xbf16>
    %387 = vector.broadcast %369 : vector<1x32xf32> to vector<16x32xf32>
    %388 = arith.mulf %272, %387 : vector<16x32xf32>
    %389 = arith.truncf %388 : vector<16x32xf32> to vector<16x32xbf16>
    %cst_136 = arith.constant dense<0.000000e+00> : vector<8x32xf32>
    %390 = tpu.matmul %386, %389, %cst_136 {dimension_numbers = #tpu.dot_dimension_numbers<[1], [0], [0], [1], [0, 0, 1, 1], [], []>} : vector<8x16xbf16>, vector<16x32xbf16>, vector<8x32xf32> -> vector<8x32xf32>
    %391 = arith.addf %362, %390 : vector<8x32xf32>
    %392 = arith.truncf %391 : vector<8x32xf32> to vector<8x32xbf16>
    %c0_137 = arith.constant 0 : index
    %c0_138 = arith.constant 0 : index
    %393 = vector.load %arg27[%c0_137, %c0_138] : memref<32x32xbf16, #tpu.memory_space<vmem>>, vector<32x32xbf16>
    %cst_139 = arith.constant dense<0.000000e+00> : vector<8x32xf32>
    %394 = tpu.matmul %392, %393, %cst_139 {dimension_numbers = #tpu.dot_dimension_numbers<[1], [0], [0], [1], [0, 0, 1, 1], [], []>} : vector<8x32xbf16>, vector<32x32xbf16>, vector<8x32xf32> -> vector<8x32xf32>
    %c0_140 = arith.constant 0 : index
    %c0_141 = arith.constant 0 : index
    %395 = vector.load %arg28[%c0_140, %c0_141] : memref<1x32xf32, #tpu.memory_space<vmem>>, vector<1x32xf32>
    %396 = vector.broadcast %395 : vector<1x32xf32> to vector<8x32xf32>
    %397 = arith.addf %394, %396 : vector<8x32xf32>
    %398 = arith.addf %232, %397 : vector<8x32xf32>
    %399 = arith.truncf %398 : vector<8x32xf32> to vector<8x32xbf16>
    %c0_142 = arith.constant 0 : index
    %c0_143 = arith.constant 0 : index
    %c0_144 = arith.constant 0 : index
    %400 = vector.load %arg29[%c0_142, %c0_143, %c0_144] : memref<1x8x32xbf16, #tpu.memory_space<vmem>>, vector<1x8x32xbf16>
    %401 = vector.shape_cast %400 : vector<1x8x32xbf16> to vector<8x32xbf16>
    %402 = vector.shape_cast %399 : vector<8x32xbf16> to vector<1x8x32xbf16>
    tpu.vector_store %arg29[%c0_142, %c0_143, %c0_144], %402 {strides = array<i32>} : memref<1x8x32xbf16, #tpu.memory_space<vmem>>, vector<1x8x32xbf16>,
    return
  }
  func.func @transform_0(%arg0: i32) -> (i32, i32, i32) {
    %c0_i32 = arith.constant 0 : i32
    %c0_i32_0 = arith.constant 0 : i32
    %c0_i32_1 = arith.constant 0 : i32
    return %arg0, %c0_i32, %c0_i32_0 : i32, i32, i32
  }
  func.func @transform_1(%arg0: i32) -> (i32, i32, i32) {
    %c0_i32 = arith.constant 0 : i32
    %c0_i32_0 = arith.constant 0 : i32
    %c0_i32_1 = arith.constant 0 : i32
    return %arg0, %c0_i32, %c0_i32_0 : i32, i32, i32
  }
  func.func @transform_2(%arg0: i32) -> (i32, i32) {
    %c0_i32 = arith.constant 0 : i32
    %c0_i32_0 = arith.constant 0 : i32
    %c0_i32_1 = arith.constant 0 : i32
    return %c0_i32, %c0_i32_0 : i32, i32
  }
  func.func @transform_3(%arg0: i32) -> (i32, i32) {
    %c0_i32 = arith.constant 0 : i32
    %c0_i32_0 = arith.constant 0 : i32
    %c0_i32_1 = arith.constant 0 : i32
    return %c0_i32, %c0_i32_0 : i32, i32
  }
  func.func @transform_4(%arg0: i32) -> (i32, i32) {
    %c0_i32 = arith.constant 0 : i32
    %c0_i32_0 = arith.constant 0 : i32
    %c0_i32_1 = arith.constant 0 : i32
    return %c0_i32, %c0_i32_0 : i32, i32
  }
  func.func @transform_5(%arg0: i32) -> (i32, i32) {
    %c0_i32 = arith.constant 0 : i32
    %c0_i32_0 = arith.constant 0 : i32
    %c0_i32_1 = arith.constant 0 : i32
    return %c0_i32, %c0_i32_0 : i32, i32
  }
  func.func @transform_6(%arg0: i32) -> (i32, i32) {
    %c0_i32 = arith.constant 0 : i32
    %c0_i32_0 = arith.constant 0 : i32
    %c0_i32_1 = arith.constant 0 : i32
    return %c0_i32, %c0_i32_0 : i32, i32
  }
  func.func @transform_7(%arg0: i32) -> (i32, i32) {
    %c0_i32 = arith.constant 0 : i32
    %c0_i32_0 = arith.constant 0 : i32
    %c0_i32_1 = arith.constant 0 : i32
    return %c0_i32, %c0_i32_0 : i32, i32
  }
  func.func @transform_8(%arg0: i32) -> (i32, i32) {
    %c0_i32 = arith.constant 0 : i32
    %c0_i32_0 = arith.constant 0 : i32
    %c0_i32_1 = arith.constant 0 : i32
    return %c0_i32, %c0_i32_0 : i32, i32
  }
  func.func @transform_9(%arg0: i32) -> (i32, i32) {
    %c0_i32 = arith.constant 0 : i32
    %c0_i32_0 = arith.constant 0 : i32
    %c0_i32_1 = arith.constant 0 : i32
    return %c0_i32, %c0_i32_0 : i32, i32
  }
  func.func @transform_10(%arg0: i32) -> (i32, i32) {
    %c0_i32 = arith.constant 0 : i32
    %c0_i32_0 = arith.constant 0 : i32
    %c0_i32_1 = arith.constant 0 : i32
    return %c0_i32, %c0_i32_0 : i32, i32
  }
  func.func @transform_11(%arg0: i32) -> (i32, i32) {
    %c0_i32 = arith.constant 0 : i32
    %c0_i32_0 = arith.constant 0 : i32
    %c0_i32_1 = arith.constant 0 : i32
    return %c0_i32, %c0_i32_0 : i32, i32
  }
  func.func @transform_12(%arg0: i32) -> (i32, i32) {
    %c0_i32 = arith.constant 0 : i32
    %c0_i32_0 = arith.constant 0 : i32
    %c0_i32_1 = arith.constant 0 : i32
    return %c0_i32, %c0_i32_0 : i32, i32
  }
  func.func @transform_13(%arg0: i32) -> (i32, i32) {
    %c0_i32 = arith.constant 0 : i32
    %c0_i32_0 = arith.constant 0 : i32
    %c0_i32_1 = arith.constant 0 : i32
    return %c0_i32, %c0_i32_0 : i32, i32
  }
  func.func @transform_14(%arg0: i32) -> (i32, i32) {
    %c0_i32 = arith.constant 0 : i32
    %c0_i32_0 = arith.constant 0 : i32
    %c0_i32_1 = arith.constant 0 : i32
    return %c0_i32, %c0_i32_0 : i32, i32
  }
  func.func @transform_15(%arg0: i32) -> (i32, i32) {
    %c0_i32 = arith.constant 0 : i32
    %c0_i32_0 = arith.constant 0 : i32
    %c0_i32_1 = arith.constant 0 : i32
    return %c0_i32, %c0_i32_0 : i32, i32
  }
  func.func @transform_16(%arg0: i32) -> (i32, i32) {
    %c0_i32 = arith.constant 0 : i32
    %c0_i32_0 = arith.constant 0 : i32
    %c0_i32_1 = arith.constant 0 : i32
    return %c0_i32, %c0_i32_0 : i32, i32
  }
  func.func @transform_17(%arg0: i32) -> (i32, i32) {
    %c0_i32 = arith.constant 0 : i32
    %c0_i32_0 = arith.constant 0 : i32
    %c0_i32_1 = arith.constant 0 : i32
    return %c0_i32, %c0_i32_0 : i32, i32
  }
  func.func @transform_18(%arg0: i32) -> (i32, i32) {
    %c0_i32 = arith.constant 0 : i32
    %c0_i32_0 = arith.constant 0 : i32
    %c0_i32_1 = arith.constant 0 : i32
    return %c0_i32, %c0_i32_0 : i32, i32
  }
  func.func @transform_19(%arg0: i32) -> (i32, i32) {
    %c0_i32 = arith.constant 0 : i32
    %c0_i32_0 = arith.constant 0 : i32
    %c0_i32_1 = arith.constant 0 : i32
    return %c0_i32, %c0_i32_0 : i32, i32
  }
  func.func @transform_20(%arg0: i32) -> (i32, i32) {
    %c0_i32 = arith.constant 0 : i32
    %c0_i32_0 = arith.constant 0 : i32
    %c0_i32_1 = arith.constant 0 : i32
    return %c0_i32, %c0_i32_0 : i32, i32
  }
  func.func @transform_21(%arg0: i32) -> (i32, i32) {
    %c0_i32 = arith.constant 0 : i32
    %c0_i32_0 = arith.constant 0 : i32
    %c0_i32_1 = arith.constant 0 : i32
    return %c0_i32, %c0_i32_0 : i32, i32
  }
  func.func @transform_22(%arg0: i32) -> (i32, i32) {
    %c0_i32 = arith.constant 0 : i32
    %c0_i32_0 = arith.constant 0 : i32
    %c0_i32_1 = arith.constant 0 : i32
    return %c0_i32, %c0_i32_0 : i32, i32
  }
  func.func @transform_23(%arg0: i32) -> (i32, i32) {
    %c0_i32 = arith.constant 0 : i32
    %c0_i32_0 = arith.constant 0 : i32
    %c0_i32_1 = arith.constant 0 : i32
    return %c0_i32, %c0_i32_0 : i32, i32
  }
  func.func @transform_24(%arg0: i32) -> (i32, i32) {
    %c0_i32 = arith.constant 0 : i32
    %c0_i32_0 = arith.constant 0 : i32
    %c0_i32_1 = arith.constant 0 : i32
    return %c0_i32, %c0_i32_0 : i32, i32
  }
  func.func @transform_25(%arg0: i32) -> (i32, i32) {
    %c0_i32 = arith.constant 0 : i32
    %c0_i32_0 = arith.constant 0 : i32
    %c0_i32_1 = arith.constant 0 : i32
    return %c0_i32, %c0_i32_0 : i32, i32
  }
  func.func @transform_26(%arg0: i32) -> (i32, i32) {
    %c0_i32 = arith.constant 0 : i32
    %c0_i32_0 = arith.constant 0 : i32
    %c0_i32_1 = arith.constant 0 : i32
    return %c0_i32, %c0_i32_0 : i32, i32
  }
  func.func @transform_27(%arg0: i32) -> (i32, i32) {
    %c0_i32 = arith.constant 0 : i32
    %c0_i32_0 = arith.constant 0 : i32
    %c0_i32_1 = arith.constant 0 : i32
    return %c0_i32, %c0_i32_0 : i32, i32
  }
  func.func @transform_28(%arg0: i32) -> (i32, i32, i32) {
    %c0_i32 = arith.constant 0 : i32
    %c0_i32_0 = arith.constant 0 : i32
    %c0_i32_1 = arith.constant 0 : i32
    return %arg0, %c0_i32, %c0_i32_0 : i32, i32, i32
  }
}

</mosaic_0001>

<bundles_post_ra>
// kernel: ocr_forward.4
= control target key start
LH: loop header
LB: loop body
LE: loop exit
PB: predicated region body
PF: predicated region fallthrough
CT: control target
= control target key end

     0   :  { %s372_s12 = smov 0   ;;  %s395_s0 = inlined_call_operand.vmem [shape: f32[32,16], index: 0, kind: input, shape index: {}]   ;;  %s396_s1 = inlined_call_operand.vmem [shape: bf16[16,32], index: 1, kind: input, shape index: {}]   ;;  %s397_s2 = inlined_call_operand.vmem [shape: f32[1,32], index: 2, kind: input, shape index: {}]   ;;  %s398_s3 = inlined_call_operand.vmem [shape: bf16[32,32], index: 3, kind: output, shape index: {}]  }
   0x1 LB: > { %s305_s13 = sadd.s32 4294967295, %s348_s12   ;;  %p309_p0 = scmp.ge.s32.totalorder %s348_s12, 1  ;;  %s348_s12 = sphi %s372_s12, %s13_s12  }
   0x2   : > { %p138_p1 = scmp.lt.s32.totalorder %s348_s12, 3 }
   0x4   : > { %p139_p2 = pnand %p309_p0, %p138_p1 }
   0x5   : > { %v341_v0 = vld [vmem:[%s396_s1] sm:$0xff] (!%p139_p2)   ;;  %v350_v1 = vmov (!%p139_p2), 0.0   ;;  %s310_s16 = sshll.u32 (!%p139_p2), %s305_s13, 1  ;;  %vm351_vm0 = vmmov (!%p139_p2), 0   ;;  %vm193_vm1 = vcmask (!%p139_p2), 130048   ;;  %vm246_vm2 = vcmask (!%p139_p2), 257024  }
   0x6   : > { %142 = sbr.rel (%p139_p2) target bundleno = 238 (0xee), region = 32  ;;  %325 = vmatprep.subr.bf16.mxu0 (!%p139_p2), %v350_v1  ;;  %327 = vmatprep.mubr.msk.bf16.mxu0 (!%p139_p2), %vm351_vm0, %v350_v1  ;;  %p163_p3 = scmp.lt.s32.totalorder (!%p139_p2), %s310_s16, 3  ;;  %v314_v5 = vld [vmem:[%s397_s2] ss:$0 sm:$0xff] (!%p139_p2) }
   0x7   : > { %326 = vmatpush3.bf16.msra.mxu0 (!%p139_p2), %v341_v0 }
   0xd   : > { %s400_s16 = smov (!%p163_p3, %s310_s16), 3 }
   0xe   : > { %s311_s17 = sshll.u32 %s400_s16, 3  ;;  %s313_s23 = sshll.u32 %s400_s16, 2 }
   0xf   : > { %s166_s20 = scalar_lea.vmem %s395_s0, %s311_s17  ;;  %s172_s26 = scalar_lea.vmem %s398_s3, %s313_s23 }
  0x10   : > { %v175_v2 = vld [vmem:[%s166_s20] sm:$0xff]  ;;  %v176_v3 = vld [vmem:[%s166_s20 + $0x8] sm:$0xff] }
  0x11   : > { %v177_v4 = vpack.c.bf16 %v176_v3, %v175_v2 }
  0x13   : > { %328 = vmatmul.mubr.msk.bf16.vlgmr.msra.gmra.mrb[0].mxu0 %vm193_vm1, %v177_v4 }
  0xe6   : > { %v231_v6 = vpop.f32.mrb[0].mxu0 }
  0xe7   : > { %v232_v7 = vadd.f32 %v314_v5, %v231_v6  ;;  %v329_v8 = vpop.f32.mrb[1].mxu0 }
  0xe8   : > { %v234_v9 = vpop.f32.mrb[2].mxu0 }
  0xe9   : > { %v321_v10 = vpack.c.bf16 %v232_v7, %v232_v7  ;;  %v235_v11 = vadd.f32 %v314_v5, %v234_v9  ;;  %v330_v12 = vpop.f32.mrb[3].mxu0 }
  0xeb   : > { %247 = vst.msk [vmem:[%s172_s26] sm:$0xf] %vm246_vm2, %v321_v10  ;;  %v322_v13 = vpack.c.bf16 %v235_v11, %v235_v11 }
  0xed   : > { %248 = vst.msk [vmem:[%s172_s26 + $0x4] sm:$0xf] %vm246_vm2, %v322_v13 }
  0xee PF: > { %s13_s12 = sadd.s32 1, %s348_s12  }
  0xef   : > { %p10_p4 = scmp.ge.s32.totalorder %s13_s12, 4  }
  0xf1   :  { %12 = sbr.rel (!%p10_p4) target bundleno = 1 (0x1), region = 62 }

// kernel: ocr_forward.7
= control target key start
LH: loop header
LB: loop body
LE: loop exit
PB: predicated region body
PF: predicated region fallthrough
CT: control target
= control target key end

     0   :  { %s455_s18 = smov 0   ;;  %s494_s0 = inlined_call_operand.vmem [shape: bf16[16,32], index: 0, kind: input, shape index: {}]   ;;  %s495_s1 = inlined_call_operand.vmem [shape: f32[1,32], index: 1, kind: input, shape index: {}]   ;;  %s496_s2 = inlined_call_operand.vmem [shape: f32[1,32], index: 2, kind: input, shape index: {}]   ;;  %s497_s3 = inlined_call_operand.vmem [shape: bf16[32,128], index: 3, kind: input, shape index: {}]   ;;  %s498_s4 = inlined_call_operand.vmem [shape: f32[1,128], index: 4, kind: input, shape index: {}]   ;;  %s499_s5 = inlined_call_operand.vmem [shape: f32[16,128], index: 5, kind: output, shape index: {}]  }
   0x1 LB: > { %s375_s19 = sadd.s32 4294967295, %s421_s18   ;;  %p379_p0 = scmp.ge.s32.totalorder %s421_s18, 1  ;;  %s421_s18 = sphi %s455_s18, %s15_s18  }
   0x2   : > { %p186_p1 = scmp.lt.s32.totalorder %s421_s18, 3 }
   0x4   : > { %p187_p2 = pnand %p379_p0, %p186_p1 }
   0x5   : > { %p212_p3 = scmp.lt.s32.totalorder (!%p187_p2), %s375_s19, 1  ;;  %vm225_vm0 = vcmask (!%p187_p2), 261120   ;;  %v411_v8 = vld [vmem:[%s497_s3] sm:$0xff] (!%p187_p2)   ;;  %v423_v9 = vmov (!%p187_p2), 0.0   ;;  %v412_v10 = vld [vmem:[%s497_s3 + $0x8] sm:$0xff] (!%p187_p2)   ;;  %vm424_vm1 = vmmov (!%p187_p2), 0  }
   0x6   : > { %190 = sbr.rel (%p187_p2) target bundleno = 549 (0x225), region = 40  ;;  %393 = vmatprep.subr.bf16.mxu0 (!%p187_p2), %v423_v9  ;;  %397 = vmatprep.mubr.msk.bf16.mxu0 (!%p187_p2), %vm424_vm1, %v423_v9  ;;  %v382_v15 = vld [vmem:[%s495_s1] ss:$0 sm:$0xff] (!%p187_p2) }
   0x7   : > { %394 = vmatpush3.bf16.msra.mxu0 (!%p187_p2), %v411_v8  ;;  %v383_v17 = vld [vmem:[%s496_s2] ss:$0 sm:$0xff] (!%p187_p2) }
   0x8   : > { %395 = vmatprep.subr.bf16.mxu0 (!%p187_p2), %v423_v9  ;;  %v384_v21 = vld [vmem:[%s498_s4] ss:$0 sm:$0xff] (!%p187_p2) }
   0xb   : > { %396 = vmatpush3.bf16.msra.mxu0 (!%p187_p2), %v412_v10 }
   0xd   : > { %s501_s19 = smov (!%p212_p3, %s375_s19), 1 }
   0xe   : > { %s380_s20 = sshll.u32 %s501_s19, 2  ;;  %s381_s7 = sshll.u32 %s501_s19, 3 }
   0xf   : > { %s215_s23 = scalar_lea.vmem %s494_s0, %s380_s20  ;;  %s219_s12 = scalar_lea.vmem %s499_s5, %s381_s7 }
  0x10   : > { %v221_v0 = vld [vmem:[%s215_s23] sm:$0xf] }
  0x11   : > { %v222_v1 = vunpack.c.l.bf16 %v221_v0 }
  0x13   : > { %v226_v2 = vsel %vm225_vm0, %v222_v1, 0.0 }
  0x14   : > { %227 = vadd.xlane.f32.xlu0 %v226_v2 }
  0xa1   : > { %v228_v3 = vpop.xlane.xlu0 %227 }
  0xa2   : > { %v230_v4 = vmul.f32 0.03125, %v228_v3 }
  0xa4   : > { %v231_v5 = vsub.f32 %v222_v1, %v230_v4 }
  0xa6   : > { %v232_v6 = vmul.f32 %v231_v5, %v231_v5 }
  0xa8   : > { %v233_v7 = vsel %vm225_vm0, %v232_v6, 0.0 }
  0xa9   : > { %234 = vadd.xlane.f32.xlu0 %v233_v7 }
 0x136   : > { %v235_v11 = vpop.xlane.xlu0 %234 }
 0x137   : > { %v236_v12 = vmul.f32 0.03125, %v235_v11 }
 0x139   : > { %v237_v13 = vadd.f32 1e-05, %v236_v12 }
 0x13b   : > { %413 = vrsqrt.f32 %v237_v13 }
 0x145   : > { %v414_v14 = vpop.eup %413 }
 0x146   : > { %v239_v16 = vmul.f32 %v414_v14, %v231_v5 }
 0x148   : > { %v246_v18 = vmul.f32 %v382_v15, %v239_v16 }
 0x14a   : > { %v253_v19 = vadd.f32 %v383_v17, %v246_v18 }
 0x14c   : > { %v254_v20 = vpack.c.bf16 %v253_v19, %v253_v19 }
 0x14e   : > { %398 = vmatmul.mubr.msk.bf16.vlgmr.msra.gmra.mrb[0].mxu0 %vm225_vm0, %v254_v20 }
 0x221   : > { %v315_v22 = vpop.f32.mrb[0].mxu0 }
 0x222   : > { %v316_v23 = vadd.f32 %v384_v21, %v315_v22  ;;  %v399_v24 = vpop.f32.mrb[1].mxu0 }
 0x223   : > { %v318_v25 = vpop.f32.mrb[2].mxu0 }
 0x224   : > { %321 = vst [vmem:[%s219_s12] sm:$0xff] %v316_v23  ;;  %v400_v26 = vpop.f32.mrb[3].mxu0 }
 0x225 PF: > { %s15_s18 = sadd.s32 1, %s421_s18  }
 0x226   : > { %p12_p4 = scmp.ge.s32.totalorder %s15_s18, 4  }
 0x228   :  { %14 = sbr.rel (!%p12_p4) target bundleno = 1 (0x1), region = 70 }

// kernel: ocr_forward.5
= control target key start
LH: loop header
LB: loop body
LE: loop exit
PB: predicated region body
PF: predicated region fallthrough
CT: control target
= control target key end

     0   :  { %s2442_s24 = smov 0   ;;  %s2805_s0 = inlined_call_operand.vmem [shape: bf16[2,17,32], index: 0, kind: input, shape index: {}]   ;;  %s2806_s1 = inlined_call_operand.vmem [shape: f32[1,32], index: 1, kind: input, shape index: {}]   ;;  %s2807_s2 = inlined_call_operand.vmem [shape: f32[1,32], index: 2, kind: input, shape index: {}]   ;;  %s2808_s3 = inlined_call_operand.vmem [shape: bf16[32,32], index: 3, kind: input, shape index: {}]   ;;  %s2809_s4 = inlined_call_operand.vmem [shape: f32[1,32], index: 4, kind: input, shape index: {}]   ;;  %s2810_s5 = inlined_call_operand.vmem [shape: bf16[32,32], index: 5, kind: input, shape index: {}]   ;;  %s2811_s6 = inlined_call_operand.vmem [shape: f32[1,32], index: 6, kind: input, shape index: {}]   ;;  %s2812_s7 = inlined_call_operand.vmem [shape: bf16[32,32], index: 7, kind: input, shape index: {}]   ;;  %s2813_s8 = inlined_call_operand.vmem [shape: f32[1,32], index: 8, kind: input, shape index: {}]   ;;  %s2814_s9 = inlined_call_operand.vmem [shape: bf16[32,32], index: 9, kind: input, shape index: {}]   ;;  %s2815_s10 = inlined_call_operand.vmem [shape: f32[1,32], index: 10, kind: input, shape index: {}]   ;;  %s2816_s11 = inlined_call_operand.vmem [shape: f32[1,32], index: 11, kind: input, shape index: {}]   ;;  %s2817_s12 = inlined_call_operand.vmem [shape: f32[1,32], index: 12, kind: input, shape index: {}]   ;;  %s2818_s13 = inlined_call_operand.vmem [shape: bf16[32,128], index: 13, kind: input, shape index: {}]   ;;  %s2819_s14 = inlined_call_operand.vmem [shape: f32[1,128], index: 14, kind: input, shape index: {}]   ;;  %s2820_s15 = inlined_call_operand.vmem [shape: bf16[128,32], index: 15, kind: input, shape index: {}]   ;;  %s2821_s16 = inlined_call_operand.vmem [shape: f32[1,32], index: 16, kind: input, shape index: {}]   ;;  %s2822_s17 = inlined_call_operand.vmem [shape: bf16[2,17,32], index: 17, kind: output, shape index: {}]  }
   0x1   :  { %2823 = sst [smem:[#allocation2_spill]] %s2805_s0 }
   0x2   :  { %2824 = sst [smem:[#allocation3_spill]] %s2806_s1 }
   0x3 LB: > { %s1964_s25 = sadd.s32 4294967295, %s2348_s24   ;;  %p1968_p0 = scmp.ge.s32.totalorder %s2348_s24, 1  ;;  %s2348_s24 = sphi %s2442_s24, %s27_s24  }
   0x4   : > { %p487_p1 = scmp.lt.s32.totalorder %s2348_s24, 3 }
   0x6   : > { %p488_p2 = pnand %p1968_p0, %p487_p1 }
   0x7   : > { %p539_p3 = scmp.lt.s32.totalorder (!%p488_p2), %s1964_s25, 1  ;;  %vm558_vm0 = vcmask (!%p488_p2), 261120   ;;  %s2825_s29 = sld [smem:[#allocation2_spill]] (!%p488_p2)  ;;  %vm565_vm1 = vcmask (!%p488_p2), 253952   ;;  %v2258_v23 = vld [vmem:[%s2808_s3] sm:$0xff] (!%p488_p2)   ;;  %v2259_v24 = vld [vmem:[%s2808_s3 + $0x8] sm:$0xff] (!%p488_p2)   ;;  %v841_v54 = vlaneseq (!%p488_p2) }
   0x8   : > { %491 = sbr.rel (%p488_p2) target bundleno = 2378 (0x94a), region = 88  ;;  %2103 = vmatprep.subr.bf16.mxu0 (!%p488_p2), %v2258_v23  ;;  %v2260_v25 = vld [vmem:[%s2810_s5] sm:$0xff] (!%p488_p2)   ;;  %s2826_s27 = sld [smem:[#allocation3_spill]] (!%p488_p2)  ;;  %v2261_v51 = vld [vmem:[%s2810_s5 + $0x8] sm:$0xff] (!%p488_p2)   ;;  %v2350_v58 = vmov (!%p488_p2), 0.0   ;;  %vm1071_vm12 = vcmask (!%p488_p2), 1040384  }
   0x9   : > { %2104 = vmatpush3.bf16.msra.mxu0 (!%p488_p2), %v2258_v23  ;;  %v1972_v43 = vld [vmem:[%s2807_s2] ss:$0 sm:$0xff] (!%p488_p2)  ;;  %v2263_v53 = vld [vmem:[%s2812_s7 + $0x8] sm:$0xff] (!%p488_p2)   ;;  %v842_v55 = vand.u32 (!%p488_p2), 127, %v841_v54  ;;  %vm916_vm13 = vcmask (!%p488_p2), 138240   ;;  %vm923_vm14 = vcmask (!%p488_p2), 131072  }
   0xa   : > { %2105 = vmatprep.subr.bf16.mxu0 (!%p488_p2), %v2259_v24  ;;  %v2262_v52 = vld [vmem:[%s2812_s7] sm:$0xff] (!%p488_p2)   ;;  %vm1904_vm15 = vsmask.f32 (!%p488_p2), 256 }
   0xb   : > { %vm958_vm2 = vcmp.ge.s32.totalorder (!%p488_p2), %v842_v55, 8  ;;  %vm959_vm3 = vcmp.lt.s32.totalorder (!%p488_p2), %v842_v55, 16  ;;  %vm1182_vm4 = vcmp.ge.s32.totalorder (!%p488_p2), %v842_v55, 16  ;;  %vm1183_vm5 = vcmp.lt.s32.totalorder (!%p488_p2), %v842_v55, 24  ;;  %v1973_v56 = vld [vmem:[%s2809_s4] ss:$0 sm:$0xff] (!%p488_p2) }
   0xc   : > { %vm1349_vm6 = vcmp.ge.s32.totalorder (!%p488_p2), %v842_v55, 24  ;;  %vm1350_vm7 = vcmp.lt.s32.totalorder (!%p488_p2), %v842_v55, 32  ;;  %vm960_vm8 = vmand (!%p488_p2), %vm958_vm2, %vm959_vm3  ;;  %vm844_vm11 = vcmp.lt.s32.totalorder (!%p488_p2), %v842_v55, 8  ;;  %vm1900_vm2 = vcmask (!%p488_p2), 257024  }
   0xd   : > { %2106 = vmatpush3.bf16.msra.mxu0 (!%p488_p2), %v2259_v24  ;;  %vm1184_vm9 = vmand (!%p488_p2), %vm1182_vm4, %vm1183_vm5  ;;  %v2509_v59 = vsel (!%p488_p2), %vm960_vm8, 1.0, %v2350_v58 }
   0xe   : > { %2111 = vmatprep.subr.bf16.mxu0 (!%p488_p2), %v2260_v25  ;;  %v1971_v37 = vld [vmem:[%s2826_s27] ss:$0 sm:$0xff] (!%p488_p2)  ;;  %vm1351_vm10 = vmand (!%p488_p2), %vm1349_vm6, %vm1350_vm7  ;;  %v2511_v61 = vsel (!%p488_p2), %vm1184_vm9, 1.0, %v2350_v58 }
   0xf   : > { %s2828_s25 = smov (!%p539_p3, %s1964_s25), 1  ;;  %v2513_v62 = vsel %vm1351_vm10, 1.0, %v2350_v58 }
  0x10   : > { %s2247_s26 = smul.u32 12, %s2828_s25 }
  0x12   : > { %s543_s0 = scalar_lea.vmem %s2825_s29, %s2247_s26 }
  0x13   : > { %v2038_v0 = vld [vmem:[%s543_s0] sm:$0xff]   ;;  %v552_v1 = vld [vmem:[%s543_s0 + $0x8] sm:$0x1]  ;;  %s548_s0 = scalar_lea.vmem %s2822_s17, %s2247_s26 }
  0x14   : > { %v2458_v2 = vunpack.c.l.bf16 %v2038_v0  ;;  %v2460_v3 = vunpack.c.l.bf16 %v552_v1  ;;  %v2462_v4 = vunpack.c.h.bf16 %v2038_v0  ;;  %v2515_v1 = vsel %vm844_vm11, 1.0, %v2350_v58 }
  0x16   : > { %v559_v5 = vsel %vm558_vm0, %v2458_v2, 0.0  ;;  %v566_v6 = vsel %vm565_vm1, %v2460_v3, 0.0  ;;  %v562_v7 = vsel %vm558_vm0, %v2462_v4, 0.0 }
  0x17   : > { %560 = vadd.xlane.f32.xlu0 %v559_v5  ;;  %567 = vadd.xlane.f32.xlu1 %v566_v6 }
  0x1b   : > { %563 = vadd.xlane.f32.xlu0 %v562_v7 }
  0xa4   : > { %v561_v8 = vpop.xlane.xlu0 %560  ;;  %v568_v9 = vpop.xlane.xlu1 %567 }
  0xa5   : > { %v570_v10 = vmul.f32 0.03125, %v561_v8  ;;  %v572_v11 = vmul.f32 0.03125, %v568_v9 }
  0xa7   : > { %v573_v12 = vsub.f32 %v2458_v2, %v570_v10  ;;  %v575_v13 = vsub.f32 %v2460_v3, %v572_v11 }
  0xa8   : > { %v564_v14 = vpop.xlane.xlu0 %563 }
  0xa9   : > { %v571_v15 = vmul.f32 0.03125, %v564_v14  ;;  %v576_v16 = vmul.f32 %v573_v12, %v573_v12  ;;  %v578_v17 = vmul.f32 %v575_v13, %v575_v13 }
  0xab   : > { %v574_v18 = vsub.f32 %v2462_v4, %v571_v15  ;;  %v579_v19 = vsel %vm558_vm0, %v576_v16, 0.0  ;;  %v585_v20 = vsel %vm565_vm1, %v578_v17, 0.0 }
  0xac   : > { %580 = vadd.xlane.f32.xlu1 %v579_v19 }
  0xad   : > { %v577_v21 = vmul.f32 %v574_v18, %v574_v18 }
  0xaf   : > { %v582_v22 = vsel %vm558_vm0, %v577_v21, 0.0 }
  0xb0   : > { %586 = vadd.xlane.f32.xlu1 %v585_v20  ;;  %583 = vadd.xlane.f32.xlu0 %v582_v22  ;;  %v1978_v20 = vld [vmem:[%s2811_s6] ss:$0 sm:$0xff] }
 0x139   : > { %v581_v26 = vpop.xlane.xlu1 %580 }
 0x13a   : > { %v588_v27 = vmul.f32 0.03125, %v581_v26 }
 0x13c   : > { %v591_v28 = vadd.f32 1e-05, %v588_v27 }
 0x13d   : > { %v587_v29 = vpop.xlane.xlu1 %586  ;;  %v584_v30 = vpop.xlane.xlu0 %583 }
 0x13e   : > { %2276 = vrsqrt.f32 %v591_v28  ;;  %v590_v31 = vmul.f32 0.03125, %v587_v29  ;;  %v589_v32 = vmul.f32 0.03125, %v584_v30  ;;  %v1983_v28 = vld [vmem:[%s2813_s8] ss:$0 sm:$0xff] }
 0x140   : > { %v593_v33 = vadd.f32 1e-05, %v590_v31  ;;  %v592_v34 = vadd.f32 1e-05, %v589_v32 }
 0x142   : > { %2278 = vrsqrt.f32 %v593_v33 }
 0x143   : > { %2280 = vrsqrt.f32 %v592_v34 }
 0x148   : > { %v2277_v35 = vpop.eup %2276 }
 0x149   : > { %v597_v36 = vmul.f32 %v2277_v35, %v573_v12 }
 0x14b   : > { %v606_v42 = vmul.f32 %v1971_v37, %v597_v36  ;;  %v2351_v36 = vmov 0  }
 0x14c   : > { %v2279_v38 = vpop.eup %2278 }
 0x14d   : > { %v2281_v39 = vpop.eup %2280  ;;  %v599_v40 = vmul.f32 %v2279_v38, %v575_v13  ;;  %v615_v47 = vadd.f32 %v1972_v43, %v606_v42 }
 0x14e   : > { %v598_v41 = vmul.f32 %v2281_v39, %v574_v18 }
 0x14f   : > { %v608_v44 = vmul.f32 %v1971_v37, %v599_v40 }
 0x150   : > { %v607_v45 = vmul.f32 %v1971_v37, %v598_v41  ;;  %v1073_v37 = vsel %vm1071_vm12, 65535, %v2351_v36 }
 0x151   : > { %v617_v46 = vadd.f32 %v1972_v43, %v608_v44 }
 0x152   : > { %v616_v48 = vadd.f32 %v1972_v43, %v607_v45 }
 0x153   : > { %v619_v49 = vpack.c.bf16 %v617_v46, %v617_v46 }
 0x154   : > { %v618_v50 = vpack.c.bf16 %v616_v48, %v615_v47 }
 0x156   : > { %2107 = vmatprep.mubr.msk.bf16.mxu0 %vm558_vm0, %v618_v50 }
 0x157   : > { %2108 = vmatmul.mubr.msk.bf16.vlgmr.msra.gmra.mrb[0].mxu0 %vm558_vm0, %v619_v49 }
 0x158   : > { %2112 = vmatpush3.bf16.msra.mxu0 %v2260_v25  ;;  %2115 = vmatprep.mubr.msk.bf16.mxu0 %vm558_vm0, %v618_v50 }
 0x159   : > { %2113 = vmatprep.subr.bf16.mxu0 %v2261_v51 }
 0x15c   : > { %2114 = vmatpush3.bf16.msra.mxu0 %v2261_v51 }
 0x15d   : > { %2119 = vmatprep.subr.bf16.mxu0 %v2262_v52 }
 0x15f   : > { %2116 = vmatmul.mubr.msk.bf16.vlgmr.msra.gmra.mrb[4].mxu0 %vm558_vm0, %v619_v49 }
 0x160   : > { %2120 = vmatpush3.bf16.msra.mxu0 %v2262_v52  ;;  %2123 = vmatprep.mubr.msk.bf16.mxu0 %vm558_vm0, %v618_v50 }
 0x161   : > { %2121 = vmatprep.subr.bf16.mxu0 %v2263_v53 }
 0x164   : > { %2122 = vmatpush3.bf16.msra.mxu0 %v2263_v53 }
 0x167   : > { %2124 = vmatmul.mubr.msk.bf16.vlgmr.msra.gmra.mrb[8].mxu0 %vm558_vm0, %v619_v49 }
 0x22a   : > { %v2109_v57 = vpop.f32.mrb[0].mxu0 }
 0x22b   : > { %v683_v60 = vpop.f32.mrb[1].mxu0  ;;  %v692_v38 = vadd.f32 %v2109_v57, %v1973_v56 }
 0x22c   : > { %v684_v63 = vadd.f32 %v1973_v56, %v683_v60  ;;  %v2110_v0 = vpop.f32.mrb[2].mxu0 }
 0x22d   : > { %v686_v5 = vpop.f32.mrb[3].mxu0 }
 0x22e   : > { %v687_v6 = vadd.f32 %v1973_v56, %v686_v5  ;;  %v963_v7 = vmul.f32 %v2509_v59, %v684_v63  ;;  %v2519_v8 = vmul.f32 %v2511_v61, %v684_v63  ;;  %v2522_v9 = vmul.f32 %v2513_v62, %v684_v63 }
 0x22f   : > { %v848_v10 = vmul.f32 %v2515_v1, %v684_v63 }
 0x230   : > { %v964_v11 = vmul.f32 %v2509_v59, %v687_v6  ;;  %v2527_v12 = vmul.f32 %v2511_v61, %v687_v6  ;;  %v2530_v13 = vmul.f32 %v2513_v62, %v687_v6  ;;  %v849_v14 = vmul.f32 %v2515_v1, %v687_v6 }
 0x232   : > { %v2117_v15 = vpop.f32.mrb[4].mxu0  ;;  %v851_v16 = vpack.c.bf16 %v849_v14, %v848_v10  ;;  %v966_v17 = vpack.c.bf16 %v964_v11, %v963_v7  ;;  %v1190_v18 = vpack.c.bf16 %v2527_v12, %v2519_v8  ;;  %v1357_v19 = vpack.c.bf16 %v2530_v13, %v2522_v9 }
 0x233   : > { %v754_v21 = vpop.f32.mrb[5].mxu0  ;;  %v763_v24 = vadd.f32 %v2117_v15, %v1978_v20  ;;  %v965_v7 = vmul.f32 %v2509_v59, %v692_v38  ;;  %v850_v10 = vmul.f32 %v2515_v1, %v692_v38  ;;  %v1356_v8 = vmul.f32 %v2513_v62, %v692_v38 }
 0x234   : > { %v2118_v22 = vpop.f32.mrb[6].mxu0  ;;  %2131 = vmatprep.mubr.msk.bf16.mxu1 %vm558_vm0, %v851_v16  ;;  %2139 = vmatprep.mubr.msk.bf16.mxu0 %vm558_vm0, %v966_v17  ;;  %v755_v25 = vadd.f32 %v1978_v20, %v754_v21 }
 0x235   : > { %v757_v23 = vpop.f32.mrb[7].mxu0  ;;  %v2547_v29 = vpack.c.bf16 %v763_v24, %v763_v24  ;;  %v967_v14 = vpack.c.bf16 %v965_v7, %v965_v7  ;;  %v852_v15 = vpack.c.bf16 %v850_v10, %v850_v10  ;;  %v1358_v12 = vpack.c.bf16 %v1356_v8, %v1356_v8 }
 0x236   : > { %v758_v26 = vadd.f32 %v1978_v20, %v757_v23 }
 0x237   : > { %v863_v44 = vsel %vm558_vm0, %v2547_v29, 0 }
 0x238   : > { %v2542_v27 = vpack.c.bf16 %v758_v26, %v755_v25 }
 0x23a   : > { %v2125_v30 = vpop.f32.mrb[8].mxu0  ;;  %2239 = vmatprep.subr.msk.bf16.mxu1 %vm558_vm0, %v2542_v27  ;;  %2241 = vmatprep.subr.msk.bf16.mxu0 %vm558_vm0, %v2542_v27  ;;  %v860_v31 = vsel %vm558_vm0, %v2542_v27, 0 }
 0x23b   : > { %v834_v32 = vadd.f32 %v2125_v30, %v1983_v28  ;;  %v825_v33 = vpop.f32.mrb[9].mxu0  ;;  %2128 = vmatpush3.bf16.xpose.msra.mxu1 %v860_v31  ;;  %2136 = vmatpush3.bf16.xpose.msra.mxu0 %v860_v31 }
 0x23c   : > { %v826_v34 = vadd.f32 %v1983_v28, %v825_v33  ;;  %v2126_v35 = vpop.f32.mrb[10].mxu0  ;;  %2240 = vmatprep.subr.msk.bf16.mxu1 %vm558_vm0, %v2547_v29  ;;  %2242 = vmatprep.subr.msk.bf16.mxu0 %vm558_vm0, %v2547_v29 }
 0x23d   : > { %v828_v39 = vpop.f32.mrb[11].mxu0  ;;  %v955_v40 = vmul.f32 %v2515_v1, %v834_v32  ;;  %v1286_v41 = vmul.f32 %v2511_v61, %v834_v32  ;;  %v1453_v42 = vmul.f32 %v2513_v62, %v834_v32  ;;  %v1062_v55 = vmul.f32 %v2509_v59, %v834_v32 }
 0x23e   : > { %v829_v43 = vadd.f32 %v1983_v28, %v828_v39  ;;  %v1060_v45 = vmul.f32 %v2509_v59, %v826_v34  ;;  %v1284_v46 = vmul.f32 %v2511_v61, %v826_v34  ;;  %v953_v47 = vmul.f32 %v2515_v1, %v826_v34 }
 0x23f   : > { %v957_v48 = vpack.c.bf16 %v955_v40, %v955_v40  ;;  %v1288_v49 = vpack.c.bf16 %v1286_v41, %v1286_v41  ;;  %v1451_v50 = vmul.f32 %v2513_v62, %v826_v34  ;;  %v1455_v58 = vpack.c.bf16 %v1453_v42, %v1453_v42 }
 0x240   : > { %v1061_v51 = vmul.f32 %v2509_v59, %v829_v43  ;;  %v954_v52 = vmul.f32 %v2515_v1, %v829_v43  ;;  %v1285_v53 = vmul.f32 %v2511_v61, %v829_v43  ;;  %v1452_v54 = vmul.f32 %v2513_v62, %v829_v43 }
 0x241   : > { %v2573_v56 = vand.u32 %v1073_v37, %v957_v48  ;;  %v2575_v57 = vand.u32 %v1288_v49, %v1073_v37  ;;  %v2583_v6 = vand.u32 %v1455_v58, %v1073_v37  ;;  %v1064_v11 = vpack.c.bf16 %v1062_v55, %v1062_v55 }
 0x242   : > { %v1063_v60 = vpack.c.bf16 %v1061_v51, %v1060_v45  ;;  %v2577_v63 = vpack.c.bf16 %v954_v52, %v953_v47  ;;  %v2579_v0 = vpack.c.bf16 %v1285_v53, %v1284_v46  ;;  %v2581_v5 = vpack.c.bf16 %v1452_v54, %v1451_v50 }
 0x243   : > { %2130 = vmatpush3.bf16.xpose.msra.mxu1 %v863_v44  ;;  %2138 = vmatpush3.bf16.xpose.msra.mxu0 %v863_v44  ;;  %v1075_v16 = vand.u32 %v1073_v37, %v1064_v11  ;;  %v1189_v59 = vmul.f32 %v2511_v61, %v692_v38 }
 0x244   : > { %2143 = vmatprep.subr.bf16.mxu1 %v1063_v60  ;;  %2243 = vmatprep.subr.msk.bf16.mxu0 %vm558_vm0, %v2542_v27 }
 0x245   : > { %v1191_v1 = vpack.c.bf16 %v1189_v59, %v1189_v59 }
 0x24a   : > { %2132 = vmatmul.mubr.msk.bf16.vlgmr.msra.gmra.mrb[0].mxu1 %vm558_vm0, %v852_v15  ;;  %2140 = vmatmul.mubr.msk.bf16.vlgmr.msra.gmra.mrb[12].mxu0 %vm558_vm0, %v967_v14 }
 0x24b   : > { %2144 = vmatpush3.bf16.msra.mxu1 %v1063_v60  ;;  %2160 = vmatpush3.bf16.xpose.msra.mxu0 %v860_v31 }
 0x24c   : > { %2163 = vmatprep.mubr.msk.bf16.mxu0 %vm558_vm0, %v1190_v18  ;;  %2145 = vmatprep.subr.bf16.mxu1 %v1075_v16 }
 0x24d   : > { %2244 = vmatprep.subr.msk.bf16.mxu0 %vm558_vm0, %v2547_v29 }
 0x24f   : > { %2146 = vmatpush3.bf16.msra.mxu1 %v1075_v16 }
 0x250   : > { %2151 = vmatprep.subr.bf16.mxu1 %v2577_v63 }
 0x253   : > { %2162 = vmatpush3.bf16.xpose.msra.mxu0 %v863_v44 }
 0x254   : > { %2245 = vmatprep.subr.msk.bf16.mxu0 %vm558_vm0, %v2542_v27 }
 0x25a   : > { %2164 = vmatmul.mubr.msk.bf16.vlgmr.msra.gmra.mrb[16].mxu0 %vm558_vm0, %v1191_v1 }
 0x25b   : > { %2176 = vmatpush3.bf16.xpose.msra.mxu0 %v860_v31  ;;  %2179 = vmatprep.mubr.msk.bf16.mxu0 %vm558_vm0, %v1357_v19 }
 0x25c   : > { %2246 = vmatprep.subr.msk.bf16.mxu0 %vm558_vm0, %v2547_v29 }
 0x263   : > { %2178 = vmatpush3.bf16.xpose.msra.mxu0 %v863_v44 }
 0x26a   : > { %2180 = vmatmul.mubr.msk.bf16.vlgmr.msra.gmra.mrb[20].mxu0 %vm558_vm0, %v1358_v12 }
 0x31d   : > { %v2133_v61 = vpop.f32.mrb[0].mxu1  ;;  %v2141_v17 = vpop.f32.mrb[12].mxu0 }
 0x31e   : > { %v899_v18 = vpop.f32.mrb[1].mxu1  ;;  %v1008_v20 = vpop.f32.mrb[13].mxu0  ;;  %v1024_v19 = vmul.f32 0.35355338, %v2141_v17  ;;  %v915_v29 = vmul.f32 0.35355338, %v2133_v61 }
 0x31f   : > { %v1022_v21 = vmul.f32 0.35355338, %v1008_v20  ;;  %v2134_v22 = vpop.f32.mrb[2].mxu1  ;;  %v2142_v23 = vpop.f32.mrb[14].mxu0  ;;  %v913_v62 = vmul.f32 0.35355338, %v899_v18 }
 0x320   : > { %v902_v9 = vpop.f32.mrb[3].mxu1  ;;  %v1011_v13 = vpop.f32.mrb[15].mxu0  ;;  %v1031_v28 = vsel %vm923_vm14, %v1024_v19, -inf  ;;  %v924_v32 = vsel %vm923_vm14, %v915_v29, -inf }
 0x321   : > { %v1023_v24 = vmul.f32 0.35355338, %v1011_v13  ;;  %v1025_v25 = vsel %vm916_vm13, %v1022_v21, -inf  ;;  %v914_v27 = vmul.f32 0.35355338, %v902_v9  ;;  %v917_v30 = vsel %vm916_vm13, %v913_v62, -inf }
 0x322   : > { %1026 = vmax.xlane.f32.xlu0 %v1025_v25 }
 0x323   : > { %v1028_v26 = vsel %vm916_vm13, %v1023_v24, -inf  ;;  %v920_v31 = vsel %vm916_vm13, %v914_v27, -inf }
 0x324   : > { %1029 = vmax.xlane.f32.xlu1 %v1028_v26 }
 0x326   : > { %1032 = vmax.xlane.f32.xlu0 %v1031_v28 }
 0x328   : > { %918 = vmax.xlane.f32.xlu1 %v917_v30 }
 0x32a   : > { %921 = vmax.xlane.f32.xlu0 %v920_v31 }
 0x32c   : > { %925 = vmax.xlane.f32.xlu1 %v924_v32 }
 0x32d   : > { %v2165_v33 = vpop.f32.mrb[16].mxu0 }
 0x32e   : > { %v1232_v34 = vpop.f32.mrb[17].mxu0  ;;  %v2616_v38 = vmul.f32 0.35355338, %v2165_v33 }
 0x32f   : > { %v1246_v35 = vmul.f32 0.35355338, %v1232_v34  ;;  %v2166_v36 = vpop.f32.mrb[18].mxu0 }
 0x330   : > { %v1235_v37 = vpop.f32.mrb[19].mxu0  ;;  %v1255_v42 = vsel %vm923_vm14, %v2616_v38, -inf }
 0x331   : > { %v1247_v39 = vmul.f32 0.35355338, %v1235_v37  ;;  %v1249_v40 = vsel %vm916_vm13, %v1246_v35, -inf }
 0x332   : > { %1250 = vmax.xlane.f32.xlu0 %v1249_v40 }
 0x333   : > { %v1252_v41 = vsel %vm916_vm13, %v1247_v39, -inf }
 0x334   : > { %1253 = vmax.xlane.f32.xlu1 %v1252_v41 }
 0x336   : > { %1256 = vmax.xlane.f32.xlu0 %v1255_v42 }
 0x33d   : > { %v2181_v43 = vpop.f32.mrb[20].mxu0 }
 0x33e   : > { %v1399_v44 = vpop.f32.mrb[21].mxu0  ;;  %v2624_v48 = vmul.f32 0.35355338, %v2181_v43 }
 0x33f   : > { %v2622_v45 = vmul.f32 0.35355338, %v1399_v44  ;;  %v2182_v46 = vpop.f32.mrb[22].mxu0 }
 0x340   : > { %v1402_v47 = vpop.f32.mrb[23].mxu0  ;;  %v1422_v52 = vsel %vm923_vm14, %v2624_v48, -inf }
 0x341   : > { %v2626_v49 = vmul.f32 0.35355338, %v1402_v47  ;;  %v1416_v50 = vsel %vm916_vm13, %v2622_v45, -inf }
 0x342   : > { %1417 = vmax.xlane.f32.xlu1 %v1416_v50 }
 0x343   : > { %v1419_v51 = vsel %vm916_vm13, %v2626_v49, -inf }
 0x344   : > { %1420 = vmax.xlane.f32.xlu0 %v1419_v51 }
 0x346   : > { %1423 = vmax.xlane.f32.xlu1 %v1422_v52 }
 0x3af   : > { %v1027_v53 = vpop.xlane.xlu0 %1026 }
 0x3b0   : > { %v1034_v54 = vsub.f32 %v1022_v21, %v1027_v53 }
 0x3b1   : > { %v1030_v55 = vpop.xlane.xlu1 %1029 }
 0x3b2   : > { %v1037_v58 = vmul.f32 1.442695, %v1034_v54  ;;  %v1035_v60 = vsub.f32 %v1023_v24, %v1030_v55 }
 0x3b3   : > { %v1033_v7 = vpop.xlane.xlu0 %1032 }
 0x3b4   : > { %2282 = vpow2.f32 %v1037_v58  ;;  %v1039_v10 = vmul.f32 1.442695, %v1035_v60  ;;  %v1036_v11 = vsub.f32 %v1024_v19, %v1033_v7 }
 0x3b5   : > { %v919_v14 = vpop.xlane.xlu1 %918 }
 0x3b6   : > { %2284 = vpow2.f32 %v1039_v10  ;;  %v1041_v15 = vmul.f32 1.442695, %v1036_v11  ;;  %v927_v16 = vsub.f32 %v913_v62, %v919_v14 }
 0x3b7   : > { %v922_v59 = vpop.xlane.xlu0 %921 }
 0x3b8   : > { %2286 = vpow2.f32 %v1041_v15  ;;  %v930_v1 = vmul.f32 1.442695, %v927_v16  ;;  %v928_v8 = vsub.f32 %v914_v27, %v922_v59 }
 0x3b9   : > { %v926_v12 = vpop.xlane.xlu1 %925 }
 0x3ba   : > { %2288 = vpow2.f32 %v930_v1  ;;  %v932_v61 = vmul.f32 1.442695, %v928_v8  ;;  %v929_v17 = vsub.f32 %v915_v29, %v926_v12 }
 0x3bc   : > { %2290 = vpow2.f32 %v932_v61  ;;  %v934_v18 = vmul.f32 1.442695, %v929_v17 }
 0x3be   : > { %v2634_v20 = vpop.eup %2282  ;;  %2292 = vpow2.f32 %v934_v18 }
 0x3bf   : > { %v1251_v21 = vpop.xlane.xlu0 %1250  ;;  %v1043_v22 = vsel %vm916_vm13, %v2634_v20, 0.0 }
 0x3c0   : > { %v2638_v23 = vpop.eup %2284  ;;  %v1258_v9 = vsub.f32 %v1246_v35, %v1251_v21  ;;  %1044 = vadd.xlane.f32.xlu0 %v1043_v22 }
 0x3c1   : > { %v1254_v13 = vpop.xlane.xlu1 %1253  ;;  %v1046_v19 = vsel %vm916_vm13, %v2638_v23, 0.0 }
 0x3c2   : > { %v2642_v24 = vpop.eup %2286  ;;  %v1261_v25 = vmul.f32 1.442695, %v1258_v9  ;;  %v1259_v62 = vsub.f32 %v1247_v39, %v1254_v13  ;;  %1047 = vadd.xlane.f32.xlu1 %v1046_v19 }
 0x3c3   : > { %v1257_v26 = vpop.xlane.xlu0 %1256  ;;  %v1049_v27 = vsel %vm923_vm14, %v2642_v24, 0.0 }
 0x3c4   : > { %v2646_v28 = vpop.eup %2288  ;;  %2294 = vpow2.f32 %v1261_v25  ;;  %v1263_v29 = vmul.f32 1.442695, %v1259_v62  ;;  %v1260_v30 = vsub.f32 %v2616_v38, %v1257_v26  ;;  %1050 = vadd.xlane.f32.xlu0 %v1049_v27 }
 0x3c5   : > { %v936_v31 = vsel %vm916_vm13, %v2646_v28, 0.0 }
 0x3c6   : > { %v2651_v32 = vpop.eup %2290  ;;  %2296 = vpow2.f32 %v1263_v29  ;;  %v1265_v33 = vmul.f32 1.442695, %v1260_v30  ;;  %937 = vadd.xlane.f32.xlu1 %v936_v31 }
 0x3c7   : > { %v939_v34 = vsel %vm916_vm13, %v2651_v32, 0.0 }
 0x3c8   : > { %v2655_v35 = vpop.eup %2292  ;;  %2298 = vpow2.f32 %v1265_v33  ;;  %940 = vadd.xlane.f32.xlu0 %v939_v34 }
 0x3c9   : > { %v942_v36 = vsel %vm923_vm14, %v2655_v35, 0.0 }
 0x3ca   : > { %943 = vadd.xlane.f32.xlu1 %v942_v36 }
 0x3ce   : > { %v2659_v37 = vpop.eup %2294 }
 0x3cf   : > { %v1418_v38 = vpop.xlane.xlu1 %1417  ;;  %v1267_v39 = vsel %vm916_vm13, %v2659_v37, 0.0 }
 0x3d0   : > { %v2663_v40 = vpop.eup %2296  ;;  %v1425_v41 = vsub.f32 %v2622_v45, %v1418_v38  ;;  %1268 = vadd.xlane.f32.xlu0 %v1267_v39 }
 0x3d1   : > { %v1421_v42 = vpop.xlane.xlu0 %1420  ;;  %v1270_v43 = vsel %vm916_vm13, %v2663_v40, 0.0 }
 0x3d2   : > { %v2668_v44 = vpop.eup %2298  ;;  %v1428_v46 = vmul.f32 1.442695, %v1425_v41  ;;  %v1426_v47 = vsub.f32 %v2626_v49, %v1421_v42  ;;  %1271 = vadd.xlane.f32.xlu1 %v1270_v43  ;;  %v2265_v43 = vld [vmem:[%s2814_s9 + $0x8] sm:$0xff]  }
 0x3d3   : > { %v1424_v50 = vpop.xlane.xlu1 %1423  ;;  %v1273_v51 = vsel %vm923_vm14, %v2668_v44, 0.0 }
 0x3d4   : > { %2300 = vpow2.f32 %v1428_v46  ;;  %v1430_v52 = vmul.f32 1.442695, %v1426_v47  ;;  %v1427_v53 = vsub.f32 %v2624_v48, %v1424_v50  ;;  %1274 = vadd.xlane.f32.xlu0 %v1273_v51 }
 0x3d6   : > { %2302 = vpow2.f32 %v1430_v52  ;;  %v1432_v45 = vmul.f32 1.442695, %v1427_v53  ;;  %v2008_v52 = vld [vmem:[%s2815_s10] ss:$0 sm:$0xff] }
 0x3d8   : > { %2304 = vpow2.f32 %v1432_v45 }
 0x3de   : > { %v2674_v54 = vpop.eup %2300 }
 0x3df   : > { %v1434_v55 = vsel %vm916_vm13, %v2674_v54, 0.0 }
 0x3e0   : > { %v2678_v58 = vpop.eup %2302  ;;  %1435 = vadd.xlane.f32.xlu1 %v1434_v55 }
 0x3e1   : > { %v1437_v49 = vsel %vm916_vm13, %v2678_v58, 0.0 }
 0x3e2   : > { %v2682_v60 = vpop.eup %2304  ;;  %1438 = vadd.xlane.f32.xlu0 %v1437_v49 }
 0x3e3   : > { %v1440_v48 = vsel %vm923_vm14, %v2682_v60, 0.0 }
 0x3e4   : > { %1441 = vadd.xlane.f32.xlu1 %v1440_v48 }
 0x44d   : > { %v1045_v7 = vpop.xlane.xlu0 %1044 }
 0x44e   : > { %2306 = vrcp.f32 %v1045_v7 }
 0x44f   : > { %v1048_v10 = vpop.xlane.xlu1 %1047 }
 0x450   : > { %2308 = vrcp.f32 %v1048_v10 }
 0x451   : > { %v1051_v11 = vpop.xlane.xlu0 %1050 }
 0x452   : > { %2310 = vrcp.f32 %v1051_v11 }
 0x453   : > { %v938_v14 = vpop.xlane.xlu1 %937 }
 0x454   : > { %2312 = vrcp.f32 %v938_v14 }
 0x455   : > { %v941_v15 = vpop.xlane.xlu0 %940 }
 0x456   : > { %2314 = vrcp.f32 %v941_v15 }
 0x457   : > { %v944_v16 = vpop.xlane.xlu1 %943 }
 0x458   : > { %v2307_v59 = vpop.eup %2306  ;;  %2316 = vrcp.f32 %v944_v16 }
 0x459   : > { %v1055_v8 = vmul.f32 %v2307_v59, %v2634_v20 }
 0x45a   : > { %v2309_v1 = vpop.eup %2308 }
 0x45b   : > { %v1056_v12 = vmul.f32 %v2309_v1, %v2638_v23 }
 0x45c   : > { %v2311_v61 = vpop.eup %2310 }
 0x45d   : > { %v1057_v17 = vmul.f32 %v2311_v61, %v2642_v24  ;;  %v1269_v18 = vpop.xlane.xlu0 %1268  ;;  %v1058_v21 = vpack.c.bf16 %v1056_v12, %v1055_v8 }
 0x45e   : > { %v2313_v22 = vpop.eup %2312  ;;  %2318 = vrcp.f32 %v1269_v18 }
 0x45f   : > { %v1272_v9 = vpop.xlane.xlu1 %1271  ;;  %2147 = vmatprep.mubr.msk.bf16.mxu1 %vm916_vm13, %v1058_v21  ;;  %v1059_v13 = vpack.c.bf16 %v1057_v17, %v1057_v17  ;;  %v948_v25 = vmul.f32 %v2313_v22, %v2646_v28 }
 0x460   : > { %v2315_v19 = vpop.eup %2314  ;;  %2320 = vrcp.f32 %v1272_v9 }
 0x461   : > { %2148 = vmatmul.mubr.msk.bf16.vlgmr.msra.gmra.mrb[4].mxu1 %vm916_vm13, %v1059_v13  ;;  %v949_v20 = vmul.f32 %v2315_v19, %v2651_v32  ;;  %v1275_v23 = vpop.xlane.xlu0 %1274  ;;  %v2266_v19 = vld [vmem:[%s2818_s13] sm:$0xff]  }
 0x462   : > { %2152 = vmatpush3.bf16.msra.mxu1 %v2577_v63  ;;  %v2317_v62 = vpop.eup %2316  ;;  %2322 = vrcp.f32 %v1275_v23  ;;  %2199 = vmatprep.subr.bf16.mxu0 %v2266_v19 }
 0x463   : > { %2153 = vmatprep.subr.bf16.mxu1 %v2573_v56  ;;  %v951_v24 = vpack.c.bf16 %v949_v20, %v948_v25  ;;  %v950_v26 = vmul.f32 %v2317_v62, %v2655_v35  ;;  %v2267_v25 = vld [vmem:[%s2818_s13 + $0x8] sm:$0xff]   ;;  %2200 = vmatpush3.bf16.msra.mxu0 %v2266_v19 }
 0x464   : > { %2201 = vmatprep.subr.bf16.mxu0 %v2267_v25 }
 0x465   : > { %2155 = vmatprep.mubr.msk.bf16.mxu1 %vm916_vm13, %v951_v24  ;;  %v952_v29 = vpack.c.bf16 %v950_v26, %v950_v26 }
 0x466   : > { %2154 = vmatpush3.bf16.msra.mxu1 %v2573_v56 }
 0x467   : > { %2167 = vmatprep.subr.bf16.mxu1 %v2579_v0  ;;  %2202 = vmatpush3.bf16.msra.mxu0 %v2267_v25 }
 0x468   : > { %v2319_v27 = vpop.eup %2318 }
 0x469   : > { %v1279_v30 = vmul.f32 %v2319_v27, %v2659_v37 }
 0x46a   : > { %v2321_v28 = vpop.eup %2320 }
 0x46b   : > { %v1280_v63 = vmul.f32 %v2321_v28, %v2663_v40 }
 0x46c   : > { %v2323_v33 = vpop.eup %2322 }
 0x46d   : > { %v1436_v31 = vpop.xlane.xlu1 %1435  ;;  %2156 = vmatmul.mubr.msk.bf16.vlgmr.msra.gmra.mrb[4].mxu1 %vm916_vm13, %v952_v29  ;;  %v1282_v32 = vpack.c.bf16 %v1280_v63, %v1279_v30  ;;  %v1281_v35 = vmul.f32 %v2323_v33, %v2668_v44 }
 0x46e   : > { %2324 = vrcp.f32 %v1436_v31  ;;  %2168 = vmatpush3.bf16.msra.mxu1 %v2579_v0  ;;  %v2013_v31 = vld [vmem:[%s2816_s11] ss:$0 sm:$0xff] }
 0x46f   : > { %2169 = vmatprep.subr.bf16.mxu1 %v2575_v57  ;;  %2171 = vmatprep.mubr.msk.bf16.mxu1 %vm916_vm13, %v1282_v32  ;;  %v1439_v56 = vpop.xlane.xlu0 %1438  ;;  %v1283_v36 = vpack.c.bf16 %v1281_v35, %v1281_v35 }
 0x470   : > { %2326 = vrcp.f32 %v1439_v56 }
 0x471   : > { %v1442_v34 = vpop.xlane.xlu1 %1441 }
 0x472   : > { %2328 = vrcp.f32 %v1442_v34  ;;  %2170 = vmatpush3.bf16.msra.mxu1 %v2575_v57  ;;  %v2264_v57 = vld [vmem:[%s2814_s9] sm:$0xff]  }
 0x473   : > { %2183 = vmatprep.subr.bf16.mxu1 %v2581_v5 }
 0x478   : > { %v2325_v37 = vpop.eup %2324 }
 0x479   : > { %2172 = vmatmul.mubr.msk.bf16.vlgmr.msra.gmra.mrb[4].mxu1 %vm916_vm13, %v1283_v36  ;;  %v1446_v38 = vmul.f32 %v2325_v37, %v2674_v54  ;;  %v2014_v36 = vld [vmem:[%s2817_s12] ss:$0 sm:$0xff] }
 0x47a   : > { %v2327_v0 = vpop.eup %2326  ;;  %2184 = vmatpush3.bf16.msra.mxu1 %v2581_v5 }
 0x47b   : > { %2185 = vmatprep.subr.bf16.mxu1 %v2583_v6  ;;  %v1447_v39 = vmul.f32 %v2327_v0, %v2678_v58 }
 0x47c   : > { %v2329_v40 = vpop.eup %2328 }
 0x47d   : > { %v1449_v41 = vpack.c.bf16 %v1447_v39, %v1446_v38  ;;  %v1448_v42 = vmul.f32 %v2329_v40, %v2682_v60 }
 0x47e   : > { %2186 = vmatpush3.bf16.msra.mxu1 %v2583_v6 }
 0x47f   : > { %2187 = vmatprep.mubr.msk.bf16.mxu1 %vm916_vm13, %v1449_v41  ;;  %2191 = vmatprep.subr.bf16.mxu1 %v2264_v57  ;;  %v1450_v5 = vpack.c.bf16 %v1448_v42, %v1448_v42 }
 0x485   : > { %2188 = vmatmul.mubr.msk.bf16.vlgmr.msra.gmra.mrb[4].mxu1 %vm916_vm13, %v1450_v5  ;;  %v2268_v5 = vld [vmem:[%s2820_s15] sm:$0xff]  }
 0x486   : > { %2192 = vmatpush3.bf16.msra.mxu1 %v2264_v57 }
 0x487   : > { %2193 = vmatprep.subr.bf16.mxu1 %v2265_v43 }
 0x48a   : > { %2194 = vmatpush3.bf16.msra.mxu1 %v2265_v43  ;;  %v2269_v43 = vld [vmem:[%s2820_s15 + $0x8] sm:$0xff]  }
 0x48b   : > { %2207 = vmatprep.subr.bf16.mxu1 %v2268_v5 }
 0x558   : > { %v2189_v44 = vpop.f32.mrb[4].mxu1 }
 0x559   : > { %v1499_v46 = vpop.f32.mrb[5].mxu1  ;;  %v1517_v51 = vpack.c.bf16 %v2189_v44, %v2189_v44  ;;  %v2270_v44 = vld [vmem:[%s2820_s15 + $0x10] sm:$0xff]  }
 0x55a   : > { %v2190_v47 = vpop.f32.mrb[6].mxu1 }
 0x55b   : > { %v1502_v50 = vpop.f32.mrb[7].mxu1  ;;  %v2272_v47 = vld [vmem:[%s2820_s15 + $0x20] sm:$0xff]  }
 0x55c   : > { %v1516_v6 = vpack.c.bf16 %v1502_v50, %v1499_v46  ;;  %v2271_v46 = vld [vmem:[%s2820_s15 + $0x18] sm:$0xff]   ;;  %v2273_v50 = vld [vmem:[%s2820_s15 + $0x28] sm:$0xff]  }
 0x55e   : > { %2195 = vmatprep.mubr.msk.bf16.mxu1 %vm558_vm0, %v1516_v6  ;;  %v2274_v6 = vld [vmem:[%s2820_s15 + $0x30] sm:$0xff]  }
 0x55f   : > { %2196 = vmatmul.mubr.msk.bf16.vlgmr.msra.gmra.mrb[8].mxu1 %vm558_vm0, %v1517_v51  ;;  %v2275_v51 = vld [vmem:[%s2820_s15 + $0x38] sm:$0xff]  }
 0x560   : > { %2208 = vmatpush3.bf16.msra.mxu1 %v2268_v5 }
 0x561   : > { %2209 = vmatprep.subr.bf16.mxu1 %v2269_v43 }
 0x564   : > { %2210 = vmatpush3.bf16.msra.mxu1 %v2269_v43 }
 0x565   : > { %2211 = vmatprep.subr.bf16.mxu1 %v2270_v44 }
 0x568   : > { %2212 = vmatpush3.bf16.msra.mxu1 %v2270_v44 }
 0x569   : > { %2213 = vmatprep.subr.bf16.mxu1 %v2271_v46 }
 0x56c   : > { %2214 = vmatpush3.bf16.msra.mxu1 %v2271_v46 }
 0x56d   : > { %2215 = vmatprep.subr.bf16.mxu1 %v2272_v47 }
 0x570   : > { %2216 = vmatpush3.bf16.msra.mxu1 %v2272_v47 }
 0x571   : > { %2217 = vmatprep.subr.bf16.mxu1 %v2273_v50 }
 0x574   : > { %2218 = vmatpush3.bf16.msra.mxu1 %v2273_v50 }
 0x575   : > { %2219 = vmatprep.subr.bf16.mxu1 %v2274_v6 }
 0x578   : > { %2220 = vmatpush3.bf16.msra.mxu1 %v2274_v6 }
 0x579   : > { %2221 = vmatprep.subr.bf16.mxu1 %v2275_v51 }
 0x57c   : > { %2222 = vmatpush3.bf16.msra.mxu1 %v2275_v51 }
 0x632   : > { %v2197_v53 = vpop.f32.mrb[8].mxu1 }
 0x633   : > { %v1581_v45 = vpop.f32.mrb[9].mxu1  ;;  %v1590_v54 = vadd.f32 %v2197_v53, %v2008_v52 }
 0x634   : > { %v1582_v55 = vadd.f32 %v2008_v52, %v1581_v45  ;;  %v2198_v58 = vpop.f32.mrb[10].mxu1 }
 0x635   : > { %v1584_v49 = vpop.f32.mrb[11].mxu1  ;;  %v2732_v7 = vadd.f32 %v1590_v54, %v2460_v3 }
 0x636   : > { %v2729_v60 = vadd.f32 %v2458_v2, %v1582_v55  ;;  %v1585_v48 = vadd.f32 %v2008_v52, %v1584_v49  ;;  %v2015_v52 = vld [vmem:[%s2819_s14] ss:$0 sm:$0xff] }
 0x637   : > { %v1606_v15 = vsel %vm565_vm1, %v2732_v7, 0.0 }
 0x638   : > { %v2735_v10 = vadd.f32 %v2462_v4, %v1585_v48  ;;  %v1600_v11 = vsel %vm558_vm0, %v2729_v60, 0.0 }
 0x639   : > { %1601 = vadd.xlane.f32.xlu0 %v1600_v11 }
 0x63a   : > { %v1603_v14 = vsel %vm558_vm0, %v2735_v10, 0.0 }
 0x63b   : > { %1604 = vadd.xlane.f32.xlu1 %v1603_v14 }
 0x63d   : > { %1607 = vadd.xlane.f32.xlu0 %v1606_v15 }
 0x6c6   : > { %v1602_v2 = vpop.xlane.xlu0 %1601 }
 0x6c7   : > { %v1609_v16 = vmul.f32 0.03125, %v1602_v2 }
 0x6c8   : > { %v1605_v59 = vpop.xlane.xlu1 %1604 }
 0x6c9   : > { %v1612_v3 = vsub.f32 %v2729_v60, %v1609_v16  ;;  %v1610_v1 = vmul.f32 0.03125, %v1605_v59 }
 0x6ca   : > { %v1608_v4 = vpop.xlane.xlu0 %1607 }
 0x6cb   : > { %v1613_v8 = vsub.f32 %v2735_v10, %v1610_v1  ;;  %v1611_v12 = vmul.f32 0.03125, %v1608_v4  ;;  %v1615_v61 = vmul.f32 %v1612_v3, %v1612_v3 }
 0x6cd   : > { %v1614_v17 = vsub.f32 %v2732_v7, %v1611_v12  ;;  %v1618_v18 = vsel %vm558_vm0, %v1615_v61, 0.0  ;;  %v1616_v21 = vmul.f32 %v1613_v8, %v1613_v8 }
 0x6ce   : > { %1619 = vadd.xlane.f32.xlu1 %v1618_v18 }
 0x6cf   : > { %v1621_v22 = vsel %vm558_vm0, %v1616_v21, 0.0  ;;  %v1617_v9 = vmul.f32 %v1614_v17, %v1614_v17 }
 0x6d0   : > { %1622 = vadd.xlane.f32.xlu0 %v1621_v22 }
 0x6d1   : > { %v1624_v13 = vsel %vm565_vm1, %v1617_v9, 0.0 }
 0x6d2   : > { %1625 = vadd.xlane.f32.xlu1 %v1624_v13 }
 0x75b   : > { %v1620_v20 = vpop.xlane.xlu1 %1619 }
 0x75c   : > { %v1627_v23 = vmul.f32 0.03125, %v1620_v20 }
 0x75d   : > { %v1623_v24 = vpop.xlane.xlu0 %1622 }
 0x75e   : > { %v1630_v62 = vadd.f32 1e-05, %v1627_v23  ;;  %v1628_v26 = vmul.f32 0.03125, %v1623_v24 }
 0x75f   : > { %v1626_v27 = vpop.xlane.xlu1 %1625 }
 0x760   : > { %2330 = vrsqrt.f32 %v1630_v62  ;;  %v1631_v28 = vadd.f32 1e-05, %v1628_v26  ;;  %v1629_v29 = vmul.f32 0.03125, %v1626_v27 }
 0x762   : > { %2332 = vrsqrt.f32 %v1631_v28  ;;  %v1632_v30 = vadd.f32 1e-05, %v1629_v29 }
 0x764   : > { %2334 = vrsqrt.f32 %v1632_v30 }
 0x76a   : > { %v2331_v63 = vpop.eup %2330 }
 0x76b   : > { %v1636_v32 = vmul.f32 %v2331_v63, %v1612_v3  ;;  %v2020_v63 = vld [vmem:[%s2821_s16] ss:$0 sm:$0xff] }
 0x76c   : > { %v2333_v56 = vpop.eup %2332 }
 0x76d   : > { %v1637_v33 = vmul.f32 %v2333_v56, %v1613_v8  ;;  %v1645_v34 = vmul.f32 %v2013_v31, %v1636_v32 }
 0x76e   : > { %v2335_v35 = vpop.eup %2334 }
 0x76f   : > { %v1638_v37 = vmul.f32 %v2335_v35, %v1614_v17  ;;  %v1646_v0 = vmul.f32 %v2013_v31, %v1637_v33  ;;  %v1654_v39 = vadd.f32 %v2014_v36, %v1645_v34 }
 0x771   : > { %v1647_v38 = vmul.f32 %v2013_v31, %v1638_v37  ;;  %v1655_v57 = vadd.f32 %v2014_v36, %v1646_v0  ;;  %v1906_v37 = vld [vmem:[%s548_s0 + $0x8] sm:$0x1] }
 0x773   : > { %v1657_v40 = vpack.c.bf16 %v1655_v57, %v1654_v39  ;;  %v1656_v41 = vadd.f32 %v2014_v36, %v1647_v38 }
 0x775   : > { %2203 = vmatprep.mubr.msk.bf16.mxu0 %vm558_vm0, %v1657_v40  ;;  %v1658_v42 = vpack.c.bf16 %v1656_v41, %v1656_v41 }
 0x777   : > { %2204 = vmatmul.mubr.msk.bf16.vlgmr.msra.gmra.mrb[24].mxu0 %vm558_vm0, %v1658_v42  ;;  %vm1905_vm0 = vmand %vm565_vm1, %vm1904_vm15 }
 0x84a   : > { %v2205_v53 = vpop.f32.mrb[24].mxu0 }
 0x84b   : > { %v1731_v45 = vadd.f32 %v2205_v53, %v2015_v52  ;;  %v1722_v54 = vpop.f32.mrb[25].mxu0 }
 0x84c   : > { %v1723_v55 = vadd.f32 %v2015_v52, %v1722_v54  ;;  %v2206_v58 = vpop.f32.mrb[26].mxu0 }
 0x84d   : > { %v1741_v49 = vmul.f32 0.044715, %v1731_v45  ;;  %v1725_v48 = vpop.f32.mrb[27].mxu0  ;;  %v1738_v20 = vmul.f32 0.5, %v1731_v45 }
 0x84e   : > { %v1739_v11 = vmul.f32 0.044715, %v1723_v55  ;;  %v1726_v14 = vadd.f32 %v2015_v52, %v1725_v48  ;;  %v1736_v23 = vmul.f32 0.5, %v1723_v55 }
 0x84f   : > { %v1744_v15 = vmul.f32 %v1741_v49, %v1731_v45 }
 0x850   : > { %v1742_v2 = vmul.f32 %v1739_v11, %v1723_v55  ;;  %v1740_v16 = vmul.f32 0.044715, %v1726_v14  ;;  %v1737_v24 = vmul.f32 0.5, %v1726_v14 }
 0x851   : > { %v1747_v59 = vmul.f32 %v1744_v15, %v1731_v45 }
 0x852   : > { %v1745_v3 = vmul.f32 %v1742_v2, %v1723_v55  ;;  %v1743_v1 = vmul.f32 %v1740_v16, %v1726_v14 }
 0x853   : > { %v1750_v4 = vadd.f32 %v1747_v59, %v1731_v45 }
 0x854   : > { %v1746_v8 = vmul.f32 %v1743_v1, %v1726_v14  ;;  %v1748_v12 = vadd.f32 %v1745_v3, %v1723_v55 }
 0x855   : > { %v1753_v61 = vmul.f32 0.7978846, %v1750_v4 }
 0x856   : > { %v1749_v17 = vadd.f32 %v1746_v8, %v1726_v14  ;;  %v1751_v18 = vmul.f32 0.7978846, %v1748_v12 }
 0x857   : > { %2336 = vtanh.f32 %v1753_v61 }
 0x858   : > { %v1752_v21 = vmul.f32 0.7978846, %v1749_v17  ;;  %2338 = vtanh.f32 %v1751_v18 }
 0x85a   : > { %2340 = vtanh.f32 %v1752_v21 }
 0x861   : > { %v2337_v22 = vpop.eup %2336 }
 0x862   : > { %v2339_v9 = vpop.eup %2338  ;;  %v1759_v13 = vadd.f32 1.0, %v2337_v22 }
 0x863   : > { %v1757_v19 = vadd.f32 1.0, %v2339_v9 }
 0x864   : > { %v2341_v25 = vpop.eup %2340  ;;  %v1762_v26 = vmul.f32 %v1759_v13, %v1738_v20 }
 0x865   : > { %v1758_v62 = vadd.f32 1.0, %v2341_v25  ;;  %v1760_v27 = vmul.f32 %v1757_v19, %v1736_v23 }
 0x866   : > { %v1764_v30 = vpack.c.bf16 %v1762_v26, %v1762_v26 }
 0x867   : > { %v1761_v28 = vmul.f32 %v1758_v62, %v1737_v24 }
 0x869   : > { %v1763_v29 = vpack.c.bf16 %v1761_v28, %v1760_v27 }
 0x86b   : > { %2223 = vmatprep.mubr.bf16.mxu1 %v1763_v29 }
 0x86c   : > { %2224 = vmatmul.mubr.bf16.vlgmr.msra.gmra.mrb[12].mxu1 %v1764_v30 }
 0x93f   : > { %v2225_v31 = vpop.f32.mrb[12].mxu1 }
 0x940   : > { %v1879_v32 = vadd.f32 %v2225_v31, %v2020_v63  ;;  %v1870_v56 = vpop.f32.mrb[13].mxu1 }
 0x941   : > { %v1871_v33 = vadd.f32 %v2020_v63, %v1870_v56  ;;  %v2226_v34 = vpop.f32.mrb[14].mxu1 }
 0x942   : > { %v1886_v35 = vadd.f32 %v1879_v32, %v2732_v7  ;;  %v1873_v36 = vpop.f32.mrb[15].mxu1 }
 0x943   : > { %v1884_v0 = vadd.f32 %v1871_v33, %v2729_v60  ;;  %v1874_v38 = vadd.f32 %v2020_v63, %v1873_v36 }
 0x944   : > { %v2036_v39 = vpack.c.bf16 %v1886_v35, %v1886_v35 }
 0x945   : > { %v2034_v57 = vpack.c.bf16 %v1884_v0, %v1884_v0  ;;  %v1885_v40 = vadd.f32 %v1874_v38, %v2735_v10 }
 0x946   : > { %v1907_v41 = vsel %vm1905_vm0, %v2036_v39, %v1906_v37 }
 0x947   : > { %1908 = vst [vmem:[%s548_s0 + $0x8] sm:$0x1] %v1907_v41  ;;  %1901 = vst.msk [vmem:[%s548_s0] sm:$0xf] %vm1900_vm2, %v2034_v57  ;;  %v2035_v42 = vpack.c.bf16 %v1885_v40, %v1885_v40 }
 0x949   : > { %1902 = vst.msk [vmem:[%s548_s0 + $0x4] sm:$0xf] %vm1900_vm2, %v2035_v42 }
 0x94a PF: > { %s27_s24 = sadd.s32 1, %s2348_s24  }
 0x94b   : > { %p24_p4 = scmp.ge.s32.totalorder %s27_s24, 4  }
 0x94d   :  { %26 = sbr.rel (!%p24_p4) target bundleno = 3 (0x3), region = 118 }

// kernel: ocr_forward.6
= control target key start
LH: loop header
LB: loop body
LE: loop exit
PB: predicated region body
PF: predicated region fallthrough
CT: control target
= control target key end

     0   :  { %s3627_s0 = inlined_call_operand.vmem [shape: bf16[2,8,32], index: 0, kind: input, shape index: {}]   ;;  %s3628_s1 = inlined_call_operand.vmem [shape: bf16[2,16,32], index: 1, kind: input, shape index: {}]   ;;  %s3629_s2 = inlined_call_operand.vmem [shape: f32[1,32], index: 2, kind: input, shape index: {}]   ;;  %s3630_s3 = inlined_call_operand.vmem [shape: f32[1,32], index: 3, kind: input, shape index: {}]   ;;  %s3631_s4 = inlined_call_operand.vmem [shape: bf16[32,32], index: 4, kind: input, shape index: {}]   ;;  %s3632_s5 = inlined_call_operand.vmem [shape: f32[1,32], index: 5, kind: input, shape index: {}]   ;;  %s3633_s6 = inlined_call_operand.vmem [shape: bf16[32,32], index: 6, kind: input, shape index: {}]   ;;  %s3634_s7 = inlined_call_operand.vmem [shape: f32[1,32], index: 7, kind: input, shape index: {}]   ;;  %s3635_s8 = inlined_call_operand.vmem [shape: bf16[32,32], index: 8, kind: input, shape index: {}]   ;;  %s3636_s9 = inlined_call_operand.vmem [shape: f32[1,32], index: 9, kind: input, shape index: {}]   ;;  %s3637_s10 = inlined_call_operand.vmem [shape: bf16[32,32], index: 10, kind: input, shape index: {}]   ;;  %s3638_s11 = inlined_call_operand.vmem [shape: f32[1,32], index: 11, kind: input, shape index: {}]   ;;  %s3639_s12 = inlined_call_operand.vmem [shape: f32[1,32], index: 12, kind: input, shape index: {}]   ;;  %s3640_s13 = inlined_call_operand.vmem [shape: f32[1,32], index: 13, kind: input, shape index: {}]   ;;  %s3641_s14 = inlined_call_operand.vmem [shape: bf16[32,128], index: 14, kind: input, shape index: {}]   ;;  %s3642_s15 = inlined_call_operand.vmem [shape: f32[1,128], index: 15, kind: input, shape index: {}]   ;;  %s3643_s16 = inlined_call_operand.vmem [shape: bf16[128,32], index: 16, kind: input, shape index: {}]   ;;  %s3644_s17 = inlined_call_operand.vmem [shape: f32[1,32], index: 17, kind: input, shape index: {}]   ;;  %s3645_s18 = inlined_call_operand.vmem [shape: f32[1,32], index: 18, kind: input, shape index: {}]   ;;  %s3646_s19 = inlined_call_operand.vmem [shape: f32[1,32], index: 19, kind: input, shape index: {}]   ;;  %s3647_s20 = inlined_call_operand.vmem [shape: bf16[32,32], index: 20, kind: input, shape index: {}]   ;;  %s3648_s21 = inlined_call_operand.vmem [shape: f32[1,32], index: 21, kind: input, shape index: {}]   ;;  %s3649_s22 = inlined_call_operand.vmem [shape: bf16[32,32], index: 22, kind: input, shape index: {}]   ;;  %s3650_s23 = inlined_call_operand.vmem [shape: f32[1,32], index: 23, kind: input, shape index: {}]   ;;  %s3651_s24 = inlined_call_operand.vmem [shape: bf16[32,32], index: 24, kind: input, shape index: {}]   ;;  %s3652_s25 = inlined_call_operand.vmem [shape: f32[1,32], index: 25, kind: input, shape index: {}]   ;;  %s3653_s26 = inlined_call_operand.vmem [shape: bf16[32,32], index: 26, kind: input, shape index: {}]   ;;  %s3654_s27 = inlined_call_operand.vmem [shape: f32[1,32], index: 27, kind: input, shape index: {}]   ;;  %s3655_s28 = inlined_call_operand.vmem [shape: bf16[2,8,32], index: 28, kind: output, shape index: {}]  }
   0x1   :  { %3661 = sst [smem:[#allocation2_spill]] %s3627_s0 }
   0x2   :  { %3662 = sst [smem:[#allocation3_spill]] %s3628_s1 }
   0x3   :  { %3663 = sst [smem:[#allocation4_spill]] %s3629_s2 }
   0x4   :  { %3664 = sst [smem:[#allocation5_spill]] %s3630_s3 }
   0x5   :  { %3665 = sst [smem:[#allocation6_spill]] %s3631_s4 }
   0x6   :  { %3666 = sst [smem:[#allocation7_spill]] %s3632_s5 }
   0x7   :  { %3667 = sst [smem:[#allocation8_spill]] %s3633_s6 }
   0x8   :  { %3668 = sst [smem:[#allocation9_spill]] %s3634_s7 }
   0x9   :  { %3669 = sst [smem:[#allocation10_spill]] %s3635_s8  ;;  %s3224_s8 = smov 0  }
   0xa   :  { %3670 = sst [smem:[#allocation11_spill]] %s3636_s9 }
   0xb   :  { %3671 = sst [smem:[#allocation12_spill]] %s3637_s10 }
   0xc   :  { %3672 = sst [smem:[#allocation13_spill]] %s3638_s11 }
   0xd   :  { %3673 = sst [smem:[#allocation14_spill]] %s3639_s12 }
   0xe LB: > { %s2628_s5 = sadd.s32 4294967295, %s3075_s8   ;;  %p2632_p0 = scmp.ge.s32.totalorder %s3075_s8, 1  ;;  %s3075_s8 = sphi %s3224_s8, %s38_s8  }
   0xf   : > { %p771_p1 = scmp.lt.s32.totalorder %s3075_s8, 3 }
  0x11   : > { %p772_p2 = pnand %p2632_p0, %p771_p1 }
  0x12   : > { %p848_p3 = scmp.lt.s32.totalorder (!%p772_p2), %s2628_s5, 1  ;;  %vm868_vm0 = vcmask (!%p772_p2), 261120   ;;  %s3674_s10 = sld [smem:[#allocation2_spill]] (!%p772_p2)  ;;  %v3077_v10 = vmov (!%p772_p2), 0.0   ;;  %vm3078_vm1 = vmmov (!%p772_p2), 0   ;;  %v1091_v25 = vlaneseq (!%p772_p2) }
  0x13   : > { %775 = sbr.rel (%p772_p2) target bundleno = 3889 (0xf31), region = 132  ;;  %s3675_s2 = sld [smem:[#allocation3_spill]] (!%p772_p2)  ;;  %2780 = vmatprep.subr.bf16.mxu0 (!%p772_p2), %v3077_v10  ;;  %2788 = vmatprep.subr.bf16.mxu1 (!%p772_p2), %v3077_v10  ;;  %vm1235_vm12 = vcmask (!%p772_p2), 1043456   ;;  %vm1151_vm14 = vcmask (!%p772_p2), 64512   ;;  %vm2119_vm15 = vcmask (!%p772_p2), 130048  }
  0x14   : > { %s3676_s4 = sld [smem:[#allocation6_spill]] (!%p772_p2)  ;;  %s3677_s6 = sld [smem:[#allocation8_spill]] (!%p772_p2)  ;;  %2784 = vmatprep.mubr.msk.bf16.mxu0 (!%p772_p2), %vm3078_vm1, %v3077_v10  ;;  %2792 = vmatprep.mubr.msk.bf16.mxu1 (!%p772_p2), %vm3078_vm1, %v3077_v10  ;;  %v3298_v26 = vand.u32 (!%p772_p2), 127, %v1091_v25 }
  0x15   : > { %s3678_s1 = sld [smem:[#allocation4_spill]] (!%p772_p2)  ;;  %s3680_s29 = sld [smem:[#allocation10_spill]] (!%p772_p2) }
  0x16   : > { %vm1166_vm2 = vcmp.ge.s32.totalorder (!%p772_p2), %v3298_v26, 8  ;;  %vm1167_vm3 = vcmp.lt.s32.totalorder (!%p772_p2), %v3298_v26, 16  ;;  %vm1097_vm4 = vcmp.lt.s32.totalorder (!%p772_p2), %v3298_v26, 8  ;;  %vm1325_vm6 = vcmp.ge.s32.totalorder (!%p772_p2), %v3298_v26, 16  ;;  %s3685_s11 = sld [smem:[#allocation13_spill]] (!%p772_p2) }
  0x17   : > { %vm1168_vm5 = vmand (!%p772_p2), %vm1166_vm2, %vm1167_vm3  ;;  %vm1326_vm7 = vcmp.lt.s32.totalorder (!%p772_p2), %v3298_v26, 24  ;;  %vm1438_vm8 = vcmp.ge.s32.totalorder (!%p772_p2), %v3298_v26, 24  ;;  %vm1439_vm9 = vcmp.lt.s32.totalorder (!%p772_p2), %v3298_v26, 32  ;;  %v3314_v40 = vsel (!%p772_p2), %vm1097_vm4, 1.0, %v3077_v10 }
  0x18   : > { %v3317_v41 = vsel (!%p772_p2), %vm1168_vm5, 1.0, %v3077_v10  ;;  %vm1327_vm10 = vmand (!%p772_p2), %vm1325_vm6, %vm1326_vm7 }
  0x19   : > { %vm1440_vm11 = vmand (!%p772_p2), %vm1438_vm8, %vm1439_vm9  ;;  %v3328_v49 = vsel (!%p772_p2), %vm1327_vm10, 1.0, %v3077_v10 }
  0x1a   : > { %s3689_s5 = smov (!%p848_p3, %s2628_s5), 1  ;;  %v3002_v8 = vld [vmem:[%s3676_s4] sm:$0xff]   ;;  %v3004_v11 = vld [vmem:[%s3676_s4 + $0x8] sm:$0xff]   ;;  %v3331_v50 = vsel %vm1440_vm11, 1.0, %v3077_v10 }
  0x1b   : > { %s3660_s9 = sshll.u32 %s3689_s5, 2  ;;  %s2711_s30 = sshll.u32 %s3689_s5, 3  ;;  %v3003_v9 = vld [vmem:[%s3677_s6] sm:$0xff]   ;;  %2781 = vmatpush3.bf16.msra.mxu0 %v3002_v8  ;;  %v3005_v12 = vld [vmem:[%s3677_s6 + $0x8] sm:$0xff]   ;;  %v1094_v8 = vshrl.u32 %v1091_v25, 7 }
  0x1c   : > { %s851_s0 = scalar_lea.vmem %s3674_s10, %s3660_s9  ;;  %s3244_s7 = scalar_lea.vmem %s3675_s2, %s2711_s30  ;;  %2789 = vmatpush3.bf16.msra.mxu1 %v3003_v9  ;;  %2782 = vmatprep.subr.bf16.mxu0 %v3077_v10  ;;  %v2637_v17 = vld [vmem:[%s3678_s1] ss:$0 sm:$0xff]  ;;  %v3007_v24 = vld [vmem:[%s3680_s29 + $0x8] sm:$0xff]  }
  0x1d   : > { %v862_v0 = vld [vmem:[%s851_s0] sm:$0xf]  ;;  %2790 = vmatprep.subr.bf16.mxu1 %v3077_v10  ;;  %s3679_s10 = sld [smem:[#allocation5_spill]]  ;;  %s3681_s1 = sld [smem:[#allocation9_spill]]  ;;  %vm1095_vm13 = vcmp.gt.s32.totalorder %v3298_v26, %v1094_v8 }
  0x1e   : > { %v3246_v1 = vunpack.c.l.bf16 %v862_v0  ;;  %v3006_v22 = vld [vmem:[%s3680_s29] sm:$0xff]   ;;  %s3683_s2 = sld [smem:[#allocation11_spill]] }
  0x1f   : > { %2783 = vmatpush3.bf16.msra.mxu0 %v3004_v11 }
  0x20   : > { %v869_v2 = vsel %vm868_vm0, %v3246_v1, 0.0  ;;  %2791 = vmatpush3.bf16.msra.mxu1 %v3005_v12  ;;  %2796 = vmatprep.subr.bf16.mxu0 %v3077_v10 }
  0x21   : > { %870 = vadd.xlane.f32.xlu0 %v869_v2  ;;  %2804 = vmatprep.subr.bf16.mxu1 %v3077_v10 }
  0x23   : > { %v2638_v19 = vld [vmem:[%s3679_s10] ss:$0 sm:$0xff]  ;;  %s3682_s10 = sld [smem:[#allocation7_spill]] }
  0x24   : > { %v2643_v27 = vld [vmem:[%s3681_s1] ss:$0 sm:$0xff]  ;;  %s3684_s1 = sld [smem:[#allocation12_spill]] }
  0x25   : > { %v2647_v43 = vld [vmem:[%s3683_s2] ss:$0 sm:$0xff]  ;;  %s3686_s2 = sld [smem:[#allocation14_spill]] }
  0x29   : > { %v2639_v30 = vld [vmem:[%s3682_s10] ss:$0 sm:$0xff] }
  0xae   : > { %v871_v3 = vpop.xlane.xlu0 %870 }
  0xaf   : > { %v873_v4 = vmul.f32 0.03125, %v871_v3 }
  0xb1   : > { %v874_v5 = vsub.f32 %v3246_v1, %v873_v4 }
  0xb3   : > { %v875_v6 = vmul.f32 %v874_v5, %v874_v5 }
  0xb5   : > { %v876_v7 = vsel %vm868_vm0, %v875_v6, 0.0 }
  0xb6   : > { %877 = vadd.xlane.f32.xlu0 %v876_v7 }
 0x143   : > { %v878_v13 = vpop.xlane.xlu0 %877 }
 0x144   : > { %v879_v14 = vmul.f32 0.03125, %v878_v13 }
 0x146   : > { %v880_v15 = vadd.f32 1e-05, %v879_v14 }
 0x148   : > { %3029 = vrsqrt.f32 %v880_v15 }
 0x152   : > { %v3030_v16 = vpop.eup %3029 }
 0x153   : > { %v882_v18 = vmul.f32 %v3030_v16, %v874_v5 }
 0x155   : > { %v889_v20 = vmul.f32 %v2637_v17, %v882_v18 }
 0x157   : > { %v896_v21 = vadd.f32 %v2638_v19, %v889_v20 }
 0x159   : > { %v897_v23 = vpack.c.bf16 %v896_v21, %v896_v21 }
 0x15b   : > { %2785 = vmatmul.mubr.msk.bf16.vlgmr.msra.gmra.mrb[0].mxu0 %vm868_vm0, %v897_v23  ;;  %2793 = vmatmul.mubr.msk.bf16.vlgmr.msra.gmra.mrb[0].mxu1 %vm868_vm0, %v897_v23 }
 0x15c   : > { %2797 = vmatpush3.bf16.msra.mxu0 %v3006_v22  ;;  %2800 = vmatprep.mubr.msk.bf16.mxu0 %vm3078_vm1, %v3077_v10 }
 0x15d   : > { %2798 = vmatprep.subr.bf16.mxu0 %v3077_v10  ;;  %2806 = vmatprep.mubr.msk.bf16.mxu1 %vm3078_vm1, %v3077_v10 }
 0x160   : > { %2799 = vmatpush3.bf16.msra.mxu0 %v3007_v24 }
 0x161   : > { %2810 = vmatprep.subr.bf16.mxu0 %v3077_v10 }
 0x163   : > { %2801 = vmatmul.mubr.msk.bf16.vlgmr.msra.gmra.mrb[4].mxu0 %vm868_vm0, %v897_v23 }
 0x164   : > { %2812 = vmatprep.mubr.msk.bf16.mxu0 %vm3078_vm1, %v3077_v10 }
 0x22e   : > { %v958_v28 = vpop.f32.mrb[0].mxu0  ;;  %v1021_v29 = vpop.f32.mrb[0].mxu1 }
 0x22f   : > { %v1022_v31 = vadd.f32 %v2643_v27, %v1021_v29  ;;  %v2786_v32 = vpop.f32.mrb[1].mxu0  ;;  %v2794_v33 = vpop.f32.mrb[1].mxu1  ;;  %v959_v38 = vadd.f32 %v2639_v30, %v958_v28 }
 0x230   : > { %v961_v34 = vpop.f32.mrb[2].mxu0  ;;  %v1024_v35 = vpop.f32.mrb[2].mxu1 }
 0x231   : > { %v2787_v36 = vpop.f32.mrb[3].mxu0  ;;  %v2795_v37 = vpop.f32.mrb[3].mxu1  ;;  %v1090_v39 = vpack.c.bf16 %v1022_v31, %v1022_v31  ;;  %v1101_v44 = vmul.f32 %v3314_v40, %v959_v38  ;;  %v1171_v45 = vmul.f32 %v3317_v41, %v959_v38  ;;  %v1330_v4 = vmul.f32 %v3328_v49, %v959_v38 }
 0x232   : > { %v1443_v6 = vmul.f32 %v3331_v50, %v959_v38 }
 0x233   : > { %v1107_v42 = vsel %vm868_vm0, %v1090_v39, 0  ;;  %v1102_v57 = vpack.c.bf16 %v1101_v44, %v1101_v44  ;;  %v1172_v58 = vpack.c.bf16 %v1171_v45, %v1171_v45  ;;  %v1331_v5 = vpack.c.bf16 %v1330_v4, %v1330_v4 }
 0x234   : > { %2805 = vmatpush3.bf16.xpose.msra.mxu1 %v1107_v42  ;;  %2811 = vmatpush3.bf16.xpose.msra.mxu0 %v1107_v42  ;;  %v1444_v7 = vpack.c.bf16 %v1443_v6, %v1443_v6 }
 0x235   : > { %2828 = vmatprep.subr.bf16.mxu0 %v3077_v10  ;;  %2816 = vmatprep.subr.bf16.mxu1 %v3077_v10 }
 0x236   : > { %v1084_v46 = vpop.f32.mrb[4].mxu0 }
 0x237   : > { %v1085_v47 = vadd.f32 %v2647_v43, %v1084_v46  ;;  %v2802_v48 = vpop.f32.mrb[5].mxu0 }
 0x238   : > { %v1087_v51 = vpop.f32.mrb[6].mxu0 }
 0x239   : > { %v2803_v52 = vpop.f32.mrb[7].mxu0  ;;  %v1230_v53 = vmul.f32 %v3317_v41, %v1085_v47  ;;  %v1164_v54 = vmul.f32 %v3314_v40, %v1085_v47  ;;  %v1389_v55 = vmul.f32 %v3328_v49, %v1085_v47  ;;  %v1502_v56 = vmul.f32 %v3331_v50, %v1085_v47 }
 0x23b   : > { %v1231_v59 = vpack.c.bf16 %v1230_v53, %v1230_v53  ;;  %v1165_v60 = vpack.c.bf16 %v1164_v54, %v1164_v54  ;;  %v1390_v61 = vpack.c.bf16 %v1389_v55, %v1389_v55  ;;  %v1503_v62 = vpack.c.bf16 %v1502_v56, %v1502_v56  ;;  %2807 = vmatmul.mubr.msk.bf16.vlgmr.msra.gmra.mrb[4].mxu1 %vm868_vm0, %v1102_v57 }
 0x23c   : > { %2813 = vmatmul.mubr.msk.bf16.vlgmr.msra.gmra.mrb[8].mxu0 %vm868_vm0, %v1172_v58  ;;  %2818 = vmatprep.mubr.msk.bf16.mxu1 %vm3078_vm1, %v3077_v10 }
 0x23d   : > { %2829 = vmatpush3.bf16.xpose.msra.mxu0 %v1107_v42  ;;  %v1237_v63 = vsel %vm1235_vm12, %v1231_v59, 0  ;;  %2830 = vmatprep.mubr.msk.bf16.mxu0 %vm3078_vm1, %v3077_v10  ;;  %v3341_v0 = vsel %vm1235_vm12, %v1165_v60, 0  ;;  %v3343_v2 = vsel %vm1235_vm12, %v1390_v61, 0  ;;  %v3345_v3 = vsel %vm1235_vm12, %v1503_v62, 0  ;;  %v3008_v62 = vld [vmem:[%s3684_s1] sm:$0xff]  }
 0x23e   : > { %2817 = vmatpush3.bf16.msra.mxu1 %v1237_v63  ;;  %2840 = vmatprep.subr.bf16.mxu0 %v3077_v10 }
 0x23f   : > { %2822 = vmatprep.subr.bf16.mxu1 %v3077_v10 }
 0x244   : > { %2831 = vmatmul.mubr.msk.bf16.vlgmr.msra.gmra.mrb[12].mxu0 %vm868_vm0, %v1331_v5 }
 0x245   : > { %2841 = vmatpush3.bf16.xpose.msra.mxu0 %v1107_v42  ;;  %2842 = vmatprep.mubr.msk.bf16.mxu0 %vm3078_vm1, %v3077_v10 }
 0x246   : > { %2852 = vmatprep.subr.bf16.mxu0 %v3077_v10 }
 0x24c   : > { %2843 = vmatmul.mubr.msk.bf16.vlgmr.msra.gmra.mrb[16].mxu0 %vm868_vm0, %v1444_v7 }
 0x24d   : > { %2856 = vmatprep.mubr.msk.bf16.mxu0 %vm3078_vm1, %v3077_v10  ;;  %2853 = vmatpush3.bf16.msra.mxu0 %v3008_v62 }
 0x24e   : > { %2854 = vmatprep.subr.bf16.mxu0 %v3077_v10 }
 0x30e   : > { %v1143_v9 = vpop.f32.mrb[4].mxu1 }
 0x30f   : > { %v1210_v11 = vpop.f32.mrb[8].mxu0  ;;  %v1149_v12 = vmul.f32 0.35355338, %v1143_v9  ;;  %v2808_v14 = vpop.f32.mrb[5].mxu1 }
 0x310   : > { %v1216_v13 = vmul.f32 0.35355338, %v1210_v11  ;;  %v2814_v15 = vpop.f32.mrb[9].mxu0  ;;  %v1146_v16 = vpop.f32.mrb[6].mxu1 }
 0x311   : > { %v1213_v17 = vpop.f32.mrb[10].mxu0  ;;  %v2809_v18 = vpop.f32.mrb[7].mxu1  ;;  %v1150_v22 = vsel %vm1095_vm13, -1e+30, %v1149_v12 }
 0x312   : > { %v2815_v19 = vpop.f32.mrb[11].mxu0  ;;  %v1217_v20 = vsel %vm1095_vm13, -1e+30, %v1216_v13  ;;  %v1152_v24 = vsel %vm1151_vm14, %v1150_v22, -inf  ;;  %v3009_v18 = vld [vmem:[%s3684_s1 + $0x8] sm:$0xff]  }
 0x313   : > { %v1218_v21 = vsel %vm1151_vm14, %v1217_v20, -inf  ;;  %2855 = vmatpush3.bf16.msra.mxu0 %v3009_v18 }
 0x314   : > { %1219 = vmax.xlane.f32.xlu1 %v1218_v21  ;;  %2860 = vmatprep.subr.bf16.mxu0 %v3077_v10 }
 0x317   : > { %v1369_v23 = vpop.f32.mrb[12].mxu0 }
 0x318   : > { %v1375_v25 = vmul.f32 0.35355338, %v1369_v23  ;;  %1153 = vmax.xlane.f32.xlu1 %v1152_v24  ;;  %v2832_v27 = vpop.f32.mrb[13].mxu0  ;;  %v2663_v23 = vld [vmem:[%s3685_s11] ss:$0 sm:$0xff]  ;;  %s3687_s11 = sshll.u32 %s3689_s5, 2 }
 0x319   : > { %v1372_v28 = vpop.f32.mrb[14].mxu0  ;;  %s860_s12 = scalar_lea.vmem %s3655_s28, %s3687_s11 }
 0x31a   : > { %v2833_v29 = vpop.f32.mrb[15].mxu0  ;;  %v1376_v30 = vsel %vm1095_vm13, -1e+30, %v1375_v25 }
 0x31b   : > { %v1377_v31 = vsel %vm1151_vm14, %v1376_v30, -inf }
 0x31c   : > { %1378 = vmax.xlane.f32.xlu0 %v1377_v31 }
 0x31f   : > { %v1482_v32 = vpop.f32.mrb[16].mxu0 }
 0x320   : > { %v1488_v33 = vmul.f32 0.35355338, %v1482_v32  ;;  %v2844_v34 = vpop.f32.mrb[17].mxu0 }
 0x321   : > { %v1485_v35 = vpop.f32.mrb[18].mxu0 }
 0x322   : > { %v2845_v36 = vpop.f32.mrb[19].mxu0  ;;  %v1489_v37 = vsel %vm1095_vm13, -1e+30, %v1488_v33 }
 0x323   : > { %v1490_v38 = vsel %vm1151_vm14, %v1489_v37, -inf }
 0x324   : > { %1491 = vmax.xlane.f32.xlu1 %v1490_v38  ;;  %v3012_v38 = vld [vmem:[%s3643_s16] sm:$0xff]  }
 0x3a1   : > { %v1220_v39 = vpop.xlane.xlu1 %1219 }
 0x3a2   : > { %v1221_v42 = vsub.f32 %v1217_v20, %v1220_v39 }
 0x3a4   : > { %v1222_v43 = vmul.f32 1.442695, %v1221_v42 }
 0x3a5   : > { %v1154_v44 = vpop.xlane.xlu1 %1153 }
 0x3a6   : > { %3031 = vpow2.f32 %v1222_v43  ;;  %v1155_v45 = vsub.f32 %v1150_v22, %v1154_v44 }
 0x3a8   : > { %v1156_v46 = vmul.f32 1.442695, %v1155_v45  ;;  %v2667_v45 = vld [vmem:[%s3686_s2] ss:$0 sm:$0xff] }
 0x3a9   : > { %v1379_v47 = vpop.xlane.xlu0 %1378 }
 0x3aa   : > { %3033 = vpow2.f32 %v1156_v46  ;;  %v1380_v48 = vsub.f32 %v1376_v30, %v1379_v47  ;;  %v2668_v47 = vld [vmem:[%s3640_s13] ss:$0 sm:$0xff] }
 0x3ac   : > { %v1381_v51 = vmul.f32 1.442695, %v1380_v48 }
 0x3ae   : > { %3035 = vpow2.f32 %v1381_v51 }
 0x3b0   : > { %v3032_v52 = vpop.eup %3031 }
 0x3b1   : > { %v1492_v53 = vpop.xlane.xlu1 %1491  ;;  %v1224_v26 = vsel %vm1151_vm14, %v3032_v52, 0.0 }
 0x3b2   : > { %v1493_v54 = vsub.f32 %v1489_v37, %v1492_v53  ;;  %1225 = vadd.xlane.f32.xlu0 %v1224_v26  ;;  %v3010_v37 = vld [vmem:[%s3641_s14] sm:$0xff]   ;;  %v3013_v53 = vld [vmem:[%s3643_s16 + $0x8] sm:$0xff]   ;;  %v3014_v26 = vld [vmem:[%s3643_s16 + $0x10] sm:$0xff]  }
 0x3b4   : > { %v3034_v55 = vpop.eup %3033  ;;  %v1494_v56 = vmul.f32 1.442695, %v1493_v54  ;;  %v3015_v54 = vld [vmem:[%s3643_s16 + $0x18] sm:$0xff]  }
 0x3b5   : > { %v1158_v57 = vsel %vm1151_vm14, %v3034_v55, 0.0 }
 0x3b6   : > { %3037 = vpow2.f32 %v1494_v56  ;;  %1159 = vadd.xlane.f32.xlu1 %v1158_v57  ;;  %v3017_v56 = vld [vmem:[%s3643_s16 + $0x28] sm:$0xff]   ;;  %v3018_v57 = vld [vmem:[%s3643_s16 + $0x30] sm:$0xff]  }
 0x3b8   : > { %v3036_v58 = vpop.eup %3035 }
 0x3b9   : > { %v1383_v59 = vsel %vm1151_vm14, %v3036_v58, 0.0 }
 0x3ba   : > { %1384 = vadd.xlane.f32.xlu0 %v1383_v59  ;;  %v2669_v59 = vld [vmem:[%s3642_s15] ss:$0 sm:$0xff] }
 0x3c0   : > { %v3038_v60 = vpop.eup %3037 }
 0x3c1   : > { %v1496_v61 = vsel %vm1151_vm14, %v3038_v60, 0.0 }
 0x3c2   : > { %1497 = vadd.xlane.f32.xlu1 %v1496_v61 }
 0x43f   : > { %v1226_v63 = vpop.xlane.xlu0 %1225 }
 0x440   : > { %3039 = vrcp.f32 %v1226_v63 }
 0x443   : > { %v1160_v4 = vpop.xlane.xlu1 %1159 }
 0x444   : > { %3041 = vrcp.f32 %v1160_v4 }
 0x447   : > { %v1385_v8 = vpop.xlane.xlu0 %1384 }
 0x448   : > { %3043 = vrcp.f32 %v1385_v8 }
 0x44a   : > { %v3040_v5 = vpop.eup %3039 }
 0x44b   : > { %v1228_v6 = vmul.f32 %v3040_v5, %v3032_v52 }
 0x44d   : > { %v1229_v7 = vpack.c.bf16 %v1228_v6, %v1228_v6 }
 0x44e   : > { %v3042_v9 = vpop.eup %3041 }
 0x44f   : > { %2819 = vmatmul.mubr.msk.bf16.vlgmr.msra.gmra.mrb[8].mxu1 %vm1151_vm14, %v1229_v7  ;;  %v1162_v11 = vmul.f32 %v3042_v9, %v3034_v55  ;;  %v1498_v13 = vpop.xlane.xlu1 %1497  ;;  %v3016_v55 = vld [vmem:[%s3643_s16 + $0x20] sm:$0xff]  }
 0x450   : > { %2823 = vmatpush3.bf16.msra.mxu1 %v3341_v0  ;;  %2824 = vmatprep.mubr.msk.bf16.mxu1 %vm3078_vm1, %v3077_v10  ;;  %3045 = vrcp.f32 %v1498_v13 }
 0x451   : > { %2834 = vmatprep.subr.bf16.mxu1 %v3077_v10  ;;  %v1163_v12 = vpack.c.bf16 %v1162_v11, %v1162_v11 }
 0x452   : > { %v3044_v0 = vpop.eup %3043 }
 0x453   : > { %v1387_v14 = vmul.f32 %v3044_v0, %v3036_v58  ;;  %v3019_v58 = vld [vmem:[%s3643_s16 + $0x38] sm:$0xff]  }
 0x455   : > { %v1388_v15 = vpack.c.bf16 %v1387_v14, %v1387_v14 }
 0x45b   : > { %2825 = vmatmul.mubr.msk.bf16.vlgmr.msra.gmra.mrb[8].mxu1 %vm1151_vm14, %v1163_v12 }
 0x45c   : > { %2835 = vmatpush3.bf16.msra.mxu1 %v3343_v2  ;;  %2836 = vmatprep.mubr.msk.bf16.mxu1 %vm3078_vm1, %v3077_v10  ;;  %v3046_v2 = vpop.eup %3045 }
 0x45d   : > { %2846 = vmatprep.subr.bf16.mxu1 %v3077_v10  ;;  %v1500_v16 = vmul.f32 %v3046_v2, %v3038_v60 }
 0x45f   : > { %v1501_v17 = vpack.c.bf16 %v1500_v16, %v1500_v16 }
 0x467   : > { %2837 = vmatmul.mubr.msk.bf16.vlgmr.msra.gmra.mrb[8].mxu1 %vm1151_vm14, %v1388_v15  ;;  %v2673_v15 = vld [vmem:[%s3644_s17] ss:$0 sm:$0xff] }
 0x468   : > { %2847 = vmatpush3.bf16.msra.mxu1 %v3345_v3  ;;  %2848 = vmatprep.mubr.msk.bf16.mxu1 %vm3078_vm1, %v3077_v10 }
 0x469   : > { %2868 = vmatprep.subr.bf16.mxu1 %v3077_v10 }
 0x473   : > { %2849 = vmatmul.mubr.msk.bf16.vlgmr.msra.gmra.mrb[8].mxu1 %vm1151_vm14, %v1501_v17 }
 0x474   : > { %2884 = vmatprep.mubr.msk.bf16.mxu1 %vm3078_vm1, %v3077_v10  ;;  %2869 = vmatpush3.bf16.msra.mxu1 %v3012_v38 }
 0x475   : > { %2870 = vmatprep.subr.bf16.mxu1 %v3077_v10 }
 0x478   : > { %2871 = vmatpush3.bf16.msra.mxu1 %v3013_v53 }
 0x479   : > { %2872 = vmatprep.subr.bf16.mxu1 %v3077_v10 }
 0x47c   : > { %2873 = vmatpush3.bf16.msra.mxu1 %v3014_v26  ;;  %v2684_v26 = vld [vmem:[%s3648_s21] ss:$0 sm:$0xff] }
 0x47d   : > { %2874 = vmatprep.subr.bf16.mxu1 %v3077_v10 }
 0x480   : > { %2875 = vmatpush3.bf16.msra.mxu1 %v3015_v54 }
 0x481   : > { %2876 = vmatprep.subr.bf16.mxu1 %v3077_v10 }
 0x484   : > { %2877 = vmatpush3.bf16.msra.mxu1 %v3016_v55 }
 0x485   : > { %2878 = vmatprep.subr.bf16.mxu1 %v3077_v10 }
 0x488   : > { %2879 = vmatpush3.bf16.msra.mxu1 %v3017_v56 }
 0x489   : > { %2880 = vmatprep.subr.bf16.mxu1 %v3077_v10 }
 0x48c   : > { %2881 = vmatpush3.bf16.msra.mxu1 %v3018_v57 }
 0x48d   : > { %2882 = vmatprep.subr.bf16.mxu1 %v3077_v10 }
 0x490   : > { %2883 = vmatpush3.bf16.msra.mxu1 %v3019_v58 }
 0x491   : > { %2918 = vmatprep.subr.bf16.mxu1 %v3077_v10 }
 0x546   : > { %v1544_v3 = vpop.f32.mrb[8].mxu1 }
 0x547   : > { %v1551_v19 = vpack.c.bf16 %v1544_v3, %v1544_v3  ;;  %v2850_v20 = vpop.f32.mrb[9].mxu1 }
 0x548   : > { %v1547_v21 = vpop.f32.mrb[10].mxu1 }
 0x549   : > { %v2851_v22 = vpop.f32.mrb[11].mxu1  ;;  %2857 = vmatmul.mubr.msk.bf16.vlgmr.msra.gmra.mrb[20].mxu0 %vm868_vm0, %v1551_v19 }
 0x54a   : > { %2864 = vmatprep.mubr.msk.bf16.mxu0 %vm3078_vm1, %v3077_v10  ;;  %2861 = vmatpush3.bf16.msra.mxu0 %v3010_v37 }
 0x54b   : > { %2862 = vmatprep.subr.bf16.mxu0 %v3077_v10 }
 0x61c   : > { %v1612_v24 = vpop.f32.mrb[20].mxu0 }
 0x61d   : > { %v1613_v25 = vadd.f32 %v2663_v23, %v1612_v24  ;;  %v2858_v27 = vpop.f32.mrb[21].mxu0 }
 0x61e   : > { %v1615_v28 = vpop.f32.mrb[22].mxu0  ;;  %v3020_v27 = vld [vmem:[%s3647_s20] sm:$0xff]  }
 0x61f   : > { %v3411_v29 = vadd.f32 %v1613_v25, %v3246_v1  ;;  %v2859_v30 = vpop.f32.mrb[23].mxu0  ;;  %v3011_v1 = vld [vmem:[%s3641_s14 + $0x8] sm:$0xff]  }
 0x620   : > { %2863 = vmatpush3.bf16.msra.mxu0 %v3011_v1  ;;  %v3021_v28 = vld [vmem:[%s3647_s20 + $0x8] sm:$0xff]   ;;  %v3022_v1 = vld [vmem:[%s3649_s22] sm:$0xff]  }
 0x621   : > { %v1621_v31 = vsel %vm868_vm0, %v3411_v29, 0.0  ;;  %2888 = vmatprep.subr.bf16.mxu0 %v3077_v10 }
 0x622   : > { %1622 = vadd.xlane.f32.xlu0 %v1621_v31 }
 0x6af   : > { %v1623_v32 = vpop.xlane.xlu0 %1622 }
 0x6b0   : > { %v1624_v33 = vmul.f32 0.03125, %v1623_v32 }
 0x6b2   : > { %v1625_v34 = vsub.f32 %v3411_v29, %v1624_v33  ;;  %v2682_v33 = vld [vmem:[%s3645_s18] ss:$0 sm:$0xff] }
 0x6b4   : > { %v1626_v35 = vmul.f32 %v1625_v34, %v1625_v34 }
 0x6b6   : > { %v1627_v36 = vsel %vm868_vm0, %v1626_v35, 0.0  ;;  %v2683_v35 = vld [vmem:[%s3646_s19] ss:$0 sm:$0xff] }
 0x6b7   : > { %1628 = vadd.xlane.f32.xlu1 %v1627_v36 }
 0x744   : > { %v1629_v39 = vpop.xlane.xlu1 %1628 }
 0x745   : > { %v1630_v42 = vmul.f32 0.03125, %v1629_v39  ;;  %v3023_v39 = vld [vmem:[%s3649_s22 + $0x8] sm:$0xff]  }
 0x747   : > { %v1631_v43 = vadd.f32 1e-05, %v1630_v42  ;;  %v3024_v42 = vld [vmem:[%s3244_s7] sm:$0xff]  }
 0x749   : > { %3047 = vrsqrt.f32 %v1631_v43  ;;  %v3025_v43 = vld [vmem:[%s3651_s24] sm:$0xff]  }
 0x753   : > { %v3048_v44 = vpop.eup %3047 }
 0x754   : > { %v1633_v46 = vmul.f32 %v3048_v44, %v1625_v34  ;;  %v3026_v44 = vld [vmem:[%s3651_s24 + $0x8] sm:$0xff]  }
 0x756   : > { %v1640_v48 = vmul.f32 %v2667_v45, %v1633_v46 }
 0x758   : > { %v1647_v51 = vadd.f32 %v2668_v47, %v1640_v48 }
 0x75a   : > { %v1648_v52 = vpack.c.bf16 %v1647_v51, %v1647_v51  ;;  %v2688_v51 = vld [vmem:[%s3650_s23] ss:$0 sm:$0xff] }
 0x75c   : > { %2865 = vmatmul.mubr.msk.bf16.vlgmr.msra.gmra.mrb[24].mxu0 %vm868_vm0, %v1648_v52 }
 0x75d   : > { %2892 = vmatprep.mubr.msk.bf16.mxu0 %vm3078_vm1, %v3077_v10  ;;  %2889 = vmatpush3.bf16.msra.mxu0 %v3020_v27 }
 0x75e   : > { %2890 = vmatprep.subr.bf16.mxu0 %v3077_v10 }
 0x761   : > { %2891 = vmatpush3.bf16.msra.mxu0 %v3021_v28 }
 0x762   : > { %2896 = vmatprep.subr.bf16.mxu0 %v3077_v10 }
 0x82f   : > { %v1709_v60 = vpop.f32.mrb[24].mxu0 }
 0x830   : > { %v1710_v61 = vadd.f32 %v2669_v59, %v1709_v60  ;;  %v2866_v62 = vpop.f32.mrb[25].mxu0 }
 0x831   : > { %v1712_v63 = vpop.f32.mrb[26].mxu0 }
 0x832   : > { %v1716_v4 = vmul.f32 0.044715, %v1710_v61  ;;  %v2867_v5 = vpop.f32.mrb[27].mxu0  ;;  %v1715_v12 = vmul.f32 0.5, %v1710_v61 }
 0x834   : > { %v1717_v6 = vmul.f32 %v1716_v4, %v1710_v61 }
 0x836   : > { %v1718_v7 = vmul.f32 %v1717_v6, %v1710_v61 }
 0x838   : > { %v1719_v8 = vadd.f32 %v1718_v7, %v1710_v61 }
 0x83a   : > { %v1720_v9 = vmul.f32 0.7978846, %v1719_v8 }
 0x83c   : > { %3049 = vtanh.f32 %v1720_v9 }
 0x846   : > { %v3050_v11 = vpop.eup %3049 }
 0x847   : > { %v1722_v13 = vadd.f32 1.0, %v3050_v11 }
 0x849   : > { %v1723_v0 = vmul.f32 %v1722_v13, %v1715_v12 }
 0x84b   : > { %v1724_v14 = vpack.c.bf16 %v1723_v0, %v1723_v0  ;;  %v2693_v0 = vld [vmem:[%s3652_s25] ss:$0 sm:$0xff] }
 0x84d   : > { %2885 = vmatmul.mubr.bf16.vlgmr.msra.gmra.mrb[12].mxu1 %v1724_v14 }
 0x84e   : > { %2920 = vmatprep.mubr.msk.bf16.mxu1 %vm3078_vm1, %v3077_v10 }
 0x920   : > { %v1830_v2 = vpop.f32.mrb[12].mxu1 }
 0x921   : > { %v1831_v16 = vadd.f32 %v2673_v15, %v1830_v2  ;;  %v2886_v17 = vpop.f32.mrb[13].mxu1 }
 0x922   : > { %v1833_v18 = vpop.f32.mrb[14].mxu1 }
 0x923   : > { %v3475_v3 = vadd.f32 %v1831_v16, %v3411_v29  ;;  %v2887_v19 = vpop.f32.mrb[15].mxu1 }
 0x925   : > { %v1839_v20 = vsel %vm868_vm0, %v3475_v3, 0.0 }
 0x926   : > { %1840 = vadd.xlane.f32.xlu0 %v1839_v20 }
 0x9b3   : > { %v1841_v21 = vpop.xlane.xlu0 %1840 }
 0x9b4   : > { %v1842_v22 = vmul.f32 0.03125, %v1841_v21 }
 0x9b6   : > { %v1843_v23 = vsub.f32 %v3475_v3, %v1842_v22 }
 0x9b8   : > { %v1844_v24 = vmul.f32 %v1843_v23, %v1843_v23 }
 0x9ba   : > { %v1845_v25 = vsel %vm868_vm0, %v1844_v24, 0.0 }
 0x9bb   : > { %1846 = vadd.xlane.f32.xlu1 %v1845_v25 }
 0xa48   : > { %v1847_v29 = vpop.xlane.xlu1 %1846 }
 0xa49   : > { %v1848_v30 = vmul.f32 0.03125, %v1847_v29 }
 0xa4b   : > { %v1849_v31 = vadd.f32 1e-05, %v1848_v30 }
 0xa4d   : > { %3051 = vrsqrt.f32 %v1849_v31 }
 0xa57   : > { %v3052_v32 = vpop.eup %3051 }
 0xa58   : > { %v1851_v34 = vmul.f32 %v3052_v32, %v1843_v23 }
 0xa5a   : > { %v1858_v36 = vmul.f32 %v2682_v33, %v1851_v34 }
 0xa5c   : > { %v1865_v37 = vadd.f32 %v2683_v35, %v1858_v36 }
 0xa5e   : > { %v1866_v38 = vpack.c.bf16 %v1865_v37, %v1865_v37 }
 0xa60   : > { %2893 = vmatmul.mubr.msk.bf16.vlgmr.msra.gmra.mrb[28].mxu0 %vm868_vm0, %v1866_v38 }
 0xa61   : > { %2897 = vmatpush3.bf16.msra.mxu0 %v3022_v1  ;;  %2900 = vmatprep.mubr.msk.bf16.mxu0 %vm3078_vm1, %v3077_v10 }
 0xa62   : > { %2898 = vmatprep.subr.bf16.mxu0 %v3077_v10 }
 0xa65   : > { %2899 = vmatpush3.bf16.msra.mxu0 %v3023_v39 }
 0xa66   : > { %2904 = vmatprep.subr.bf16.mxu0 %v3077_v10 }
 0xa68   : > { %2901 = vmatmul.mubr.msk.bf16.vlgmr.msra.gmra.mrb[32].mxu0 %vm868_vm0, %v3024_v42 }
 0xa69   : > { %2908 = vmatprep.mubr.msk.bf16.mxu0 %vm3078_vm1, %v3077_v10  ;;  %2905 = vmatpush3.bf16.msra.mxu0 %v3025_v43 }
 0xa6a   : > { %2906 = vmatprep.subr.bf16.mxu0 %v3077_v10 }
 0xa6d   : > { %2907 = vmatpush3.bf16.msra.mxu0 %v3026_v44 }
 0xa6e   : > { %2912 = vmatprep.subr.bf16.mxu0 %v3077_v10 }
 0xa70   : > { %2909 = vmatmul.mubr.msk.bf16.vlgmr.msra.gmra.mrb[36].mxu0 %vm868_vm0, %v3024_v42 }
 0xa71   : > { %2914 = vmatprep.mubr.msk.bf16.mxu0 %vm3078_vm1, %v3077_v10 }
 0xb33   : > { %v1927_v45 = vpop.f32.mrb[28].mxu0 }
 0xb34   : > { %v2894_v46 = vpop.f32.mrb[29].mxu0  ;;  %v1928_v58 = vadd.f32 %v2684_v26, %v1927_v45 }
 0xb35   : > { %v1930_v47 = vpop.f32.mrb[30].mxu0 }
 0xb36   : > { %v2895_v48 = vpop.f32.mrb[31].mxu0  ;;  %v2070_v61 = vmul.f32 %v3314_v40, %v1928_v58  ;;  %v2135_v62 = vmul.f32 %v3317_v41, %v1928_v58  ;;  %v2282_v5 = vmul.f32 %v3328_v49, %v1928_v58  ;;  %v2387_v7 = vmul.f32 %v3331_v50, %v1928_v58 }
 0xb38   : > { %v2071_v63 = vpack.c.bf16 %v2070_v61, %v2070_v61  ;;  %v2136_v4 = vpack.c.bf16 %v2135_v62, %v2135_v62  ;;  %v2283_v6 = vpack.c.bf16 %v2282_v5, %v2282_v5  ;;  %v2388_v8 = vpack.c.bf16 %v2387_v7, %v2387_v7 }
 0xb3b   : > { %v1998_v52 = vpop.f32.mrb[32].mxu0 }
 0xb3c   : > { %v2902_v53 = vpop.f32.mrb[33].mxu0  ;;  %v1999_v55 = vadd.f32 %v2688_v51, %v1998_v52 }
 0xb3d   : > { %v2001_v54 = vpop.f32.mrb[34].mxu0 }
 0xb3e   : > { %v2002_v56 = vadd.f32 %v2688_v51, %v2001_v54  ;;  %v2903_v57 = vpop.f32.mrb[35].mxu0 }
 0xb40   : > { %v2069_v59 = vpack.c.bf16 %v2002_v56, %v1999_v55 }
 0xb42   : > { %v2076_v60 = vsel %vm868_vm0, %v2069_v59, 0 }
 0xb43   : > { %2913 = vmatpush3.bf16.xpose.msra.mxu0 %v2076_v60  ;;  %2919 = vmatpush3.bf16.xpose.msra.mxu1 %v2076_v60  ;;  %v2062_v9 = vpop.f32.mrb[36].mxu0 }
 0xb44   : > { %2936 = vmatprep.subr.bf16.mxu1 %v3077_v10  ;;  %2924 = vmatprep.subr.bf16.mxu0 %v3077_v10  ;;  %v2910_v11 = vpop.f32.mrb[37].mxu0  ;;  %v2063_v14 = vadd.f32 %v2693_v0, %v2062_v9 }
 0xb45   : > { %v2065_v12 = vpop.f32.mrb[38].mxu0  ;;  %v3027_v11 = vld [vmem:[%s3653_s26] sm:$0xff]  }
 0xb46   : > { %v2911_v13 = vpop.f32.mrb[39].mxu0  ;;  %v2066_v15 = vadd.f32 %v2693_v0, %v2065_v12  ;;  %v3552_v2 = vmul.f32 %v3314_v40, %v2063_v14  ;;  %v2193_v16 = vmul.f32 %v3317_v41, %v2063_v14  ;;  %v3556_v17 = vmul.f32 %v3328_v49, %v2063_v14 }
 0xb47   : > { %v3559_v18 = vmul.f32 %v3331_v50, %v2063_v14 }
 0xb48   : > { %v3562_v19 = vmul.f32 %v3314_v40, %v2066_v15  ;;  %v2194_v20 = vmul.f32 %v3317_v41, %v2066_v15  ;;  %v3566_v21 = vmul.f32 %v3328_v49, %v2066_v15  ;;  %v3569_v22 = vmul.f32 %v3331_v50, %v2066_v15 }
 0xb4a   : > { %2915 = vmatmul.mubr.msk.bf16.vlgmr.msra.gmra.mrb[40].mxu0 %vm868_vm0, %v2071_v63  ;;  %2921 = vmatmul.mubr.msk.bf16.vlgmr.msra.gmra.mrb[16].mxu1 %vm868_vm0, %v2136_v4  ;;  %v2195_v23 = vpack.c.bf16 %v2194_v20, %v2193_v16  ;;  %v2134_v24 = vpack.c.bf16 %v3562_v19, %v3552_v2  ;;  %v2342_v25 = vpack.c.bf16 %v3566_v21, %v3556_v17 }
 0xb4b   : > { %2937 = vmatpush3.bf16.xpose.msra.mxu1 %v2076_v60  ;;  %2938 = vmatprep.mubr.msk.bf16.mxu1 %vm3078_vm1, %v3077_v10  ;;  %v2447_v27 = vpack.c.bf16 %v3569_v22, %v3559_v18 }
 0xb4c   : > { %2948 = vmatprep.subr.bf16.mxu1 %v3077_v10  ;;  %2926 = vmatprep.mubr.msk.bf16.mxu0 %vm3078_vm1, %v3077_v10 }
 0xb4d   : > { %2925 = vmatpush3.bf16.msra.mxu0 %v2195_v23 }
 0xb4e   : > { %2930 = vmatprep.subr.bf16.mxu0 %v3077_v10 }
 0xb52   : > { %2939 = vmatmul.mubr.msk.bf16.vlgmr.msra.gmra.mrb[20].mxu1 %vm868_vm0, %v2283_v6 }
 0xb53   : > { %2949 = vmatpush3.bf16.xpose.msra.mxu1 %v2076_v60  ;;  %2950 = vmatprep.mubr.msk.bf16.mxu1 %vm3078_vm1, %v3077_v10 }
 0xb54   : > { %2960 = vmatprep.subr.bf16.mxu1 %v3077_v10 }
 0xb5a   : > { %2951 = vmatmul.mubr.msk.bf16.vlgmr.msra.gmra.mrb[24].mxu1 %vm868_vm0, %v2388_v8 }
 0xb5b   : > { %2964 = vmatprep.mubr.msk.bf16.mxu1 %vm3078_vm1, %v3077_v10  ;;  %2961 = vmatpush3.bf16.msra.mxu1 %v3027_v11 }
 0xb5c   : > { %2962 = vmatprep.subr.bf16.mxu1 %v3077_v10 }
 0xc1d   : > { %v2112_v40 = vpop.f32.mrb[40].mxu0  ;;  %v2174_v41 = vpop.f32.mrb[16].mxu1 }
 0xc1e   : > { %v2118_v49 = vmul.f32 0.35355338, %v2112_v40  ;;  %v2180_v28 = vmul.f32 0.35355338, %v2174_v41  ;;  %v2916_v50 = vpop.f32.mrb[41].mxu0  ;;  %v2922_v29 = vpop.f32.mrb[17].mxu1 }
 0xc1f   : > { %v2115_v30 = vpop.f32.mrb[42].mxu0  ;;  %v2177_v31 = vpop.f32.mrb[18].mxu1 }
 0xc20   : > { %v2917_v32 = vpop.f32.mrb[43].mxu0  ;;  %v2923_v33 = vpop.f32.mrb[19].mxu1  ;;  %v2181_v34 = vsel %vm2119_vm15, %v2180_v28, -inf  ;;  %v2120_v35 = vsel %vm2119_vm15, %v2118_v49, -inf }
 0xc21   : > { %2182 = vmax.xlane.f32.xlu0 %v2181_v34  ;;  %2121 = vmax.xlane.f32.xlu1 %v2120_v35 }
 0xc25   : > { %v2321_v36 = vpop.f32.mrb[20].mxu1 }
 0xc26   : > { %v2327_v37 = vmul.f32 0.35355338, %v2321_v36  ;;  %v2940_v1 = vpop.f32.mrb[21].mxu1 }
 0xc27   : > { %v2324_v38 = vpop.f32.mrb[22].mxu1 }
 0xc28   : > { %v2941_v39 = vpop.f32.mrb[23].mxu1  ;;  %v2328_v42 = vsel %vm2119_vm15, %v2327_v37, -inf }
 0xc29   : > { %2329 = vmax.xlane.f32.xlu0 %v2328_v42 }
 0xc2d   : > { %v2426_v43 = vpop.f32.mrb[24].mxu1 }
 0xc2e   : > { %v2432_v44 = vmul.f32 0.35355338, %v2426_v43  ;;  %v2952_v45 = vpop.f32.mrb[25].mxu1 }
 0xc2f   : > { %v2429_v46 = vpop.f32.mrb[26].mxu1 }
 0xc30   : > { %v2953_v47 = vpop.f32.mrb[27].mxu1  ;;  %v2433_v48 = vsel %vm2119_vm15, %v2432_v44, -inf }
 0xc31   : > { %2434 = vmax.xlane.f32.xlu1 %v2433_v48 }
 0xcae   : > { %v2183_v51 = vpop.xlane.xlu0 %2182  ;;  %v2122_v52 = vpop.xlane.xlu1 %2121 }
 0xcaf   : > { %v2184_v53 = vsub.f32 %v2180_v28, %v2183_v51  ;;  %v2123_v26 = vsub.f32 %v2118_v49, %v2122_v52  ;;  %v3028_v49 = vld [vmem:[%s3653_s26 + $0x8] sm:$0xff]  }
 0xcb0   : > { %2963 = vmatpush3.bf16.msra.mxu1 %v3028_v49 }
 0xcb1   : > { %v2185_v54 = vmul.f32 1.442695, %v2184_v53  ;;  %v2124_v55 = vmul.f32 1.442695, %v2123_v26 }
 0xcb3   : > { %3053 = vpow2.f32 %v2185_v54 }
 0xcb4   : > { %3055 = vpow2.f32 %v2124_v55 }
 0xcb6   : > { %v2330_v56 = vpop.xlane.xlu0 %2329 }
 0xcb7   : > { %v2331_v57 = vsub.f32 %v2327_v37, %v2330_v56 }
 0xcb9   : > { %v2332_v58 = vmul.f32 1.442695, %v2331_v57 }
 0xcbb   : > { %3057 = vpow2.f32 %v2332_v58 }
 0xcbd   : > { %v3054_v59 = vpop.eup %3053 }
 0xcbe   : > { %v3056_v60 = vpop.eup %3055  ;;  %v2435_v61 = vpop.xlane.xlu1 %2434  ;;  %v2187_v62 = vsel %vm2119_vm15, %v3054_v59, 0.0 }
 0xcbf   : > { %v2436_v63 = vsub.f32 %v2432_v44, %v2435_v61  ;;  %2188 = vadd.xlane.f32.xlu0 %v2187_v62  ;;  %v2126_v4 = vsel %vm2119_vm15, %v3056_v60, 0.0 }
 0xcc0   : > { %2127 = vadd.xlane.f32.xlu1 %v2126_v4 }
 0xcc1   : > { %v2437_v5 = vmul.f32 1.442695, %v2436_v63 }
 0xcc3   : > { %3059 = vpow2.f32 %v2437_v5 }
 0xcc5   : > { %v3058_v6 = vpop.eup %3057 }
 0xcc6   : > { %v2334_v7 = vsel %vm2119_vm15, %v3058_v6, 0.0 }
 0xcc7   : > { %2335 = vadd.xlane.f32.xlu0 %v2334_v7 }
 0xccd   : > { %v3060_v8 = vpop.eup %3059 }
 0xcce   : > { %v2439_v9 = vsel %vm2119_vm15, %v3060_v8, 0.0 }
 0xccf   : > { %2440 = vadd.xlane.f32.xlu1 %v2439_v9 }
 0xd4c   : > { %v2189_v12 = vpop.xlane.xlu0 %2188 }
 0xd4d   : > { %3061 = vrcp.f32 %v2189_v12  ;;  %v2128_v13 = vpop.xlane.xlu1 %2127 }
 0xd4e   : > { %3063 = vrcp.f32 %v2128_v13 }
 0xd54   : > { %v2336_v16 = vpop.xlane.xlu0 %2335 }
 0xd55   : > { %3065 = vrcp.f32 %v2336_v16 }
 0xd57   : > { %v3062_v0 = vpop.eup %3061 }
 0xd58   : > { %v2191_v14 = vmul.f32 %v3062_v0, %v3054_v59  ;;  %v3064_v20 = vpop.eup %3063 }
 0xd59   : > { %v2130_v23 = vmul.f32 %v3064_v20, %v3056_v60 }
 0xd5a   : > { %v2192_v15 = vpack.c.bf16 %v2191_v14, %v2191_v14 }
 0xd5b   : > { %v2131_v40 = vpack.c.bf16 %v2130_v23, %v2130_v23 }
 0xd5c   : > { %2927 = vmatmul.mubr.msk.bf16.vlgmr.msra.gmra.mrb[44].mxu0 %vm2119_vm15, %v2192_v15  ;;  %v2441_v2 = vpop.xlane.xlu1 %2440 }
 0xd5d   : > { %2931 = vmatpush3.bf16.msra.mxu0 %v2134_v24  ;;  %2932 = vmatprep.mubr.msk.bf16.mxu0 %vm3078_vm1, %v3077_v10  ;;  %3067 = vrcp.f32 %v2441_v2 }
 0xd5e   : > { %2942 = vmatprep.subr.bf16.mxu0 %v3077_v10 }
 0xd5f   : > { %v3066_v19 = vpop.eup %3065 }
 0xd60   : > { %v2338_v24 = vmul.f32 %v3066_v19, %v3058_v6 }
 0xd62   : > { %v2339_v41 = vpack.c.bf16 %v2338_v24, %v2338_v24 }
 0xd67   : > { %v3068_v17 = vpop.eup %3067 }
 0xd68   : > { %2933 = vmatmul.mubr.msk.bf16.vlgmr.msra.gmra.mrb[44].mxu0 %vm2119_vm15, %v2131_v40  ;;  %v2443_v21 = vmul.f32 %v3068_v17, %v3060_v8 }
 0xd69   : > { %2943 = vmatpush3.bf16.msra.mxu0 %v2342_v25  ;;  %2944 = vmatprep.mubr.msk.bf16.mxu0 %vm3078_vm1, %v3077_v10 }
 0xd6a   : > { %2954 = vmatprep.subr.bf16.mxu0 %v3077_v10  ;;  %v2444_v25 = vpack.c.bf16 %v2443_v21, %v2443_v21 }
 0xd74   : > { %2945 = vmatmul.mubr.msk.bf16.vlgmr.msra.gmra.mrb[44].mxu0 %vm2119_vm15, %v2339_v41 }
 0xd75   : > { %2955 = vmatpush3.bf16.msra.mxu0 %v2447_v27  ;;  %2956 = vmatprep.mubr.msk.bf16.mxu0 %vm3078_vm1, %v3077_v10  ;;  %v2705_v10 = vld [vmem:[%s3654_s27] ss:$0 sm:$0xff]  ;;  %vm2561_vm1 = vcmask 257024  }
 0xd80   : > { %2957 = vmatmul.mubr.msk.bf16.vlgmr.msra.gmra.mrb[44].mxu0 %vm2119_vm15, %v2444_v25 }
 0xe53   : > { %v2485_v28 = vpop.f32.mrb[44].mxu0 }
 0xe54   : > { %v2492_v50 = vpack.c.bf16 %v2485_v28, %v2485_v28  ;;  %v2958_v29 = vpop.f32.mrb[45].mxu0 }
 0xe55   : > { %v2488_v30 = vpop.f32.mrb[46].mxu0 }
 0xe56   : > { %v2959_v18 = vpop.f32.mrb[47].mxu0  ;;  %2965 = vmatmul.mubr.msk.bf16.vlgmr.msra.gmra.mrb[28].mxu1 %vm868_vm0, %v2492_v50 }
 0xf29   : > { %v2553_v22 = vpop.f32.mrb[28].mxu1 }
 0xf2a   : > { %v2554_v27 = vadd.f32 %v2705_v10, %v2553_v22  ;;  %v2966_v31 = vpop.f32.mrb[29].mxu1 }
 0xf2b   : > { %v2556_v32 = vpop.f32.mrb[30].mxu1 }
 0xf2c   : > { %v2559_v33 = vadd.f32 %v2554_v27, %v3475_v3  ;;  %v2967_v34 = vpop.f32.mrb[31].mxu1 }
 0xf2e   : > { %v2560_v35 = vpack.c.bf16 %v2559_v33, %v2559_v33 }
 0xf30   : > { %2562 = vst.msk [vmem:[%s860_s12] sm:$0xf] %vm2561_vm1, %v2560_v35 }
 0xf31 PF: > { %s38_s8 = sadd.s32 1, %s3075_s8  }
 0xf32   : > { %p35_p4 = scmp.ge.s32.totalorder %s38_s8, 4  }
 0xf34   :  { %37 = sbr.rel (!%p35_p4) target bundleno = 14 (0xe), region = 165 }

</bundles_post_ra>
